<compile_context>
chip_gen: v7x
topology: tpu7x:2x2x1
jax: 0.10.0
libtpu: 0.0.40
codegen_flags: <defaults>
</compile_context>

<pallas_src>
import functools

import jax
import jax.numpy as jnp
from jax.experimental import pallas as pl
from jax.experimental.pallas import tpu as pltpu


def _layernorm(x, gamma, beta, eps=1e-5):
    mu = jnp.mean(x, axis=-1, keepdims=True)
    var = jnp.mean(jnp.square(x - mu), axis=-1, keepdims=True)
    return (x - mu) * jax.lax.rsqrt(var + eps) * gamma + beta


def _gelu_tanh(x):
    c = 0.7978845608028654  # sqrt(2/pi)
    return 0.5 * x * (1.0 + jnp.tanh(c * (x + 0.044715 * x * x * x)))


def transformer_block_kernel(x_ref, g1_ref, b1_ref, wqkv_ref, wp_ref, bp_ref,
                             g2_ref, b2_ref, w1_ref, bf1_ref, w2_ref, bf2_ref,
                             o_ref, qkv_scr, attn_scr,
                             *, num_heads, head_dim, heads_per_group, scale):
    x = x_ref[...].astype(jnp.float32)                       # (N, C), residual kept f32
    C = num_heads * head_dim
    gw = heads_per_group * head_dim                          # lane width of one head group

    # ---- LayerNorm 1 (f32 statistics, eps=1e-5 = nn.LayerNorm default) ----
    xn = _layernorm(x, g1_ref[...], b1_ref[...])

    # ---- fused QKV projection (bias=False): bf16 operands on the MXU, f32 accumulation ----
    qkv_scr[...] = jnp.dot(xn.astype(jnp.bfloat16), wqkv_ref[...],
                           preferred_element_type=jnp.float32).astype(jnp.bfloat16)

    # ---- multi-head self-attention; head groups read/write aligned 128-lane slabs ----
    for g in range(num_heads // heads_per_group):
        base = g * gw
        q_slab = qkv_scr[:, base:base + gw]                  # (N, gw) bf16
        k_slab = qkv_scr[:, C + base:C + base + gw]
        v_slab = qkv_scr[:, 2 * C + base:2 * C + base + gw]
        outs = []
        for j in range(heads_per_group):
            lo = j * head_dim
            q = q_slab[:, lo:lo + head_dim]
            k = k_slab[:, lo:lo + head_dim]
            v = v_slab[:, lo:lo + head_dim]
            # scores = q @ k^T (contract head_dim, no explicit transpose), scaled in f32
            s = jax.lax.dot_general(q, k, (((1,), (1,)), ((), ())),
                                    preferred_element_type=jnp.float32) * scale
            m = jnp.max(s, axis=-1, keepdims=True)
            p = jnp.exp(s - m)                               # unnormalized probs (f32)
            l = jnp.sum(p, axis=-1, keepdims=True)           # (N, 1) row sums (f32)
            o = jnp.dot(p.astype(jnp.bfloat16), v, preferred_element_type=jnp.float32)
            # deferred softmax normalization: (N,1) EUP reciprocal instead of (N,N) divide
            outs.append(o * pl.reciprocal(l, approx=True))
        slab = outs[0] if heads_per_group == 1 else jnp.concatenate(outs, axis=-1)
        attn_scr[:, base:base + gw] = slab.astype(jnp.bfloat16)   # lane-aligned store

    # ---- output projection + first residual (f32) ----
    attn_out = jnp.dot(attn_scr[...], wp_ref[...],
                       preferred_element_type=jnp.float32) + bp_ref[...]
    h1 = x + attn_out                                        # dropout = identity (eval)

    # ---- LayerNorm 2 + FFN (GELU tanh approx) + second residual ----
    hn = _layernorm(h1, g2_ref[...], b2_ref[...])
    f = jnp.dot(hn.astype(jnp.bfloat16), w1_ref[...],
                preferred_element_type=jnp.float32) + bf1_ref[...]
    f = _gelu_tanh(f)
    f = jnp.dot(f.astype(jnp.bfloat16), w2_ref[...],
                preferred_element_type=jnp.float32) + bf2_ref[...]

    o_ref[...] = (h1 + f).astype(o_ref.dtype)


def transformer_block(x, params, num_heads):
    """x: (B, N, C) float32.  params: f32 dict with Linear weights stored as (in, out)
    and LN / bias params as (1, dim).  Returns (B, N, C) in x.dtype."""
    B, N, C = x.shape
    assert C % num_heads == 0, "embed_dim must be divisible by num_heads"
    head_dim = C // num_heads
    Hd = params["w_fc1"].shape[1]
    scale = float(head_dim) ** -0.5

    # Process heads in groups whose combined width is a full 128-lane slab.
    if head_dim <= 128 and 128 % head_dim == 0 and num_heads % (128 // head_dim) == 0:
        heads_per_group = 128 // head_dim
    else:
        heads_per_group = 1

    kernel = functools.partial(transformer_block_kernel,
                               num_heads=num_heads, head_dim=head_dim,
                               heads_per_group=heads_per_group, scale=scale)

    # MXU operands in bf16 (f32 accumulation in-kernel); LN params / biases stay f32.
    wqkv = params["w_qkv"].astype(jnp.bfloat16)
    wp = params["w_proj"].astype(jnp.bfloat16)
    w1 = params["w_fc1"].astype(jnp.bfloat16)
    w2 = params["w_fc2"].astype(jnp.bfloat16)

    # ---- cost estimate reflecting bf16 weights / f32 activations ----
    flops = B * (2 * N * C * 3 * C        # qkv projection
                 + 4 * N * N * C          # q@k^T and p@v over all heads
                 + 2 * N * C * C          # output projection
                 + 4 * N * C * Hd)        # fc1 + fc2
    transcendentals = B * (num_heads * N * N + N * Hd + num_heads * N)
    weight_bytes = 2 * (3 * C * C + C * C + 2 * C * Hd)          # bf16
    small_param_bytes = 4 * (6 * C + Hd)                          # f32 LN / biases
    bytes_accessed = 4 * 2 * B * N * C + weight_bytes + small_param_bytes

    # ---- VMEM budget from the real footprint (+25% and +4MB slack, clamped) ----
    def _vmem_limit(weight_bufs):
        scratch = 2 * (N * 3 * C + N * C)                    # bf16 qkv / attn scratch
        io = 4 * N * C * 2 * 2                               # x & out blocks, double-buffered
        temps = 4 * (N * Hd + 2 * N * N + 3 * N * C)         # ffn hidden, scores, h1/hn/attn_out
        total = weight_bufs * weight_bytes + 2 * small_param_bytes + scratch + io + temps
        return int(min(100 * 2**20, max(32 * 2**20, total * 5 // 4 + (4 << 20))))

    def _run(single_buffer_weights):
        if single_buffer_weights:
            # Constant index_map -> resident in VMEM; Buffered(1) avoids wasting a
            # second buffer on operands whose block never changes.
            const = lambda shape: pl.BlockSpec(shape, lambda b: (0, 0),
                                               pipeline_mode=pl.Buffered(1))
        else:
            const = lambda shape: pl.BlockSpec(shape, lambda b: (0, 0))
        out = pl.pallas_call(
            kernel,
            out_shape=jax.ShapeDtypeStruct((B, N, C), x.dtype),
            grid_spec=pltpu.PrefetchScalarGridSpec(
                num_scalar_prefetch=0,
                grid=(B,),
                in_specs=[
                    pl.BlockSpec((None, N, C), lambda b: (b, 0, 0)),   # x (per-batch block)
                    const((1, C)), const((1, C)),                      # ln1 gamma / beta
                    const((C, 3 * C)),                                 # w_qkv (bf16)
                    const((C, C)), const((1, C)),                      # w_proj, b_proj
                    const((1, C)), const((1, C)),                      # ln2 gamma / beta
                    const((C, Hd)), const((1, Hd)),                    # w_fc1, b_fc1
                    const((Hd, C)), const((1, C)),                     # w_fc2, b_fc2
                ],
                out_specs=pl.BlockSpec((None, N, C), lambda b: (b, 0, 0)),
                scratch_shapes=[pltpu.VMEM((N, 3 * C), jnp.bfloat16),  # fused qkv
                                pltpu.VMEM((N, C), jnp.bfloat16)],     # attention output
            ),
            compiler_params=pltpu.CompilerParams(
                dimension_semantics=("parallel",),
                vmem_limit_bytes=_vmem_limit(1 if single_buffer_weights else 2)),
            cost_estimate=pl.CostEstimate(flops=flops,
                                          transcendentals=transcendentals,
                                          bytes_accessed=bytes_accessed),
        )(x,
          params["ln1_g"], params["ln1_b"],
          wqkv,
          wp, params["b_proj"],
          params["ln2_g"], params["ln2_b"],
          w1, params["b_fc1"],
          w2, params["b_fc2"])
        return jax.block_until_ready(out)

    try:
        return _run(True)
    except Exception:
        # Fallback for JAX versions without BlockSpec(pipeline_mode=pl.Buffered(1)).
        return _run(False)


def reference_transformer_block(x, params, num_heads):
    """Pure-JAX f32 reference mirroring the PyTorch forward (eval mode, mask=None)."""
    B, N, C = x.shape
    head_dim = C // num_heads
    scale = float(head_dim) ** -0.5
    hp = jax.lax.Precision.HIGHEST

    def ln(y, g, b, eps=1e-5):
        mu = y.mean(-1, keepdims=True)
        var = ((y - mu) ** 2).mean(-1, keepdims=True)
        return (y - mu) / jnp.sqrt(var + eps) * g + b

    xn = ln(x, params["ln1_g"], params["ln1_b"])
    qkv = jnp.matmul(xn, params["w_qkv"], precision=hp)              # (B, N, 3C)
    qkv = qkv.reshape(B, N, 3, num_heads, head_dim)
    qkv = jnp.transpose(qkv, (2, 0, 3, 1, 4))                        # (3, B, H, N, Dh)
    q, k, v = qkv[0], qkv[1], qkv[2]
    attn = jnp.einsum("bhnd,bhmd->bhnm", q, k, precision=hp) * scale
    attn = jax.nn.softmax(attn, axis=-1)
    o = jnp.einsum("bhnm,bhmd->bhnd", attn, v, precision=hp)
    o = jnp.transpose(o, (0, 2, 1, 3)).reshape(B, N, C)
    o = jnp.matmul(o, params["w_proj"], precision=hp) + params["b_proj"]
    h1 = x + o
    hn = ln(h1, params["ln2_g"], params["ln2_b"])
    f = jnp.matmul(hn, params["w_fc1"], precision=hp) + params["b_fc1"]
    f = _gelu_tanh(f)
    f = jnp.matmul(f, params["w_fc2"], precision=hp) + params["b_fc2"]
    return h1 + f


if __name__ == "__main__":
    # Small but lane-aligned shapes consistent with the module:
    # batch=2, seq=16, embed_dim=128, num_heads=4 (head_dim=32), hidden_dim=256.
    B, N, C, NUM_HEADS, HID = 2, 16, 128, 4, 256

    keys = jax.random.split(jax.random.PRNGKey(0), 12)
    x = jax.random.normal(keys[0], (B, N, C), dtype=jnp.float32)
    params = {
        "ln1_g": 1.0 + 0.1 * jax.random.normal(keys[1], (1, C), jnp.float32),
        "ln1_b": 0.1 * jax.random.normal(keys[2], (1, C), jnp.float32),
        "w_qkv": 0.05 * jax.random.normal(keys[3], (C, 3 * C), jnp.float32),
        "w_proj": 0.05 * jax.random.normal(keys[4], (C, C), jnp.float32),
        "b_proj": 0.05 * jax.random.normal(keys[5], (1, C), jnp.float32),
        "ln2_g": 1.0 + 0.1 * jax.random.normal(keys[6], (1, C), jnp.float32),
        "ln2_b": 0.1 * jax.random.normal(keys[7], (1, C), jnp.float32),
        "w_fc1": 0.05 * jax.random.normal(keys[8], (C, HID), jnp.float32),
        "b_fc1": 0.05 * jax.random.normal(keys[9], (1, HID), jnp.float32),
        "w_fc2": 0.05 * jax.random.normal(keys[10], (HID, C), jnp.float32),
        "b_fc2": 0.05 * jax.random.normal(keys[11], (1, C), jnp.float32),
    }

    out = transformer_block(x, params, NUM_HEADS)
    out = jax.block_until_ready(out)

    ref = reference_transformer_block(x, params, NUM_HEADS)
    assert out.shape == (B, N, C), out.shape
    err = float(jnp.max(jnp.abs(out - ref)))
    # bf16 MXU operands + approx reciprocal in the kernel vs an all-f32 reference.
    assert err < 3e-2, "mismatch vs reference: max abs diff = %f" % err

    print("KERNEL_OK")
</pallas_src>

<mosaic_0001>
module attributes {stable_mosaic.version = 11 : i64} {
  func.func @transformer_block_kernel(%arg0: i32, %arg1: memref<1x16x128xf32, #tpu.memory_space<vmem>>, %arg2: memref<1x128xf32, #tpu.memory_space<vmem>>, %arg3: memref<1x128xf32, #tpu.memory_space<vmem>>, %arg4: memref<128x384xbf16, #tpu.memory_space<vmem>>, %arg5: memref<128x128xbf16, #tpu.memory_space<vmem>>, %arg6: memref<1x128xf32, #tpu.memory_space<vmem>>, %arg7: memref<1x128xf32, #tpu.memory_space<vmem>>, %arg8: memref<1x128xf32, #tpu.memory_space<vmem>>, %arg9: memref<128x256xbf16, #tpu.memory_space<vmem>>, %arg10: memref<1x256xf32, #tpu.memory_space<vmem>>, %arg11: memref<256x128xbf16, #tpu.memory_space<vmem>>, %arg12: memref<1x128xf32, #tpu.memory_space<vmem>>, %arg13: memref<1x16x128xf32, #tpu.memory_space<vmem>>, %arg14: memref<16x384xbf16, #tpu.memory_space<vmem>>, %arg15: memref<16x128xbf16, #tpu.memory_space<vmem>>) attributes {dimension_semantics = [#tpu.dimension_semantics<parallel>], iteration_bounds = array<i64: 2>, scalar_prefetch = 0 : i64, scratch_operands = 2 : i64, tpu.core_type = #tpu.core_type<tc>, window_params = [{transform_indices = @transform_0, window_bounds = array<i64: 1, 16, 128>}, {pipeline_mode = #tpu.pipeline_mode<synchronous>, transform_indices = @transform_1, window_bounds = array<i64: 1, 128>}, {pipeline_mode = #tpu.pipeline_mode<synchronous>, transform_indices = @transform_2, window_bounds = array<i64: 1, 128>}, {pipeline_mode = #tpu.pipeline_mode<synchronous>, transform_indices = @transform_3, window_bounds = array<i64: 128, 384>}, {pipeline_mode = #tpu.pipeline_mode<synchronous>, transform_indices = @transform_4, window_bounds = array<i64: 128, 128>}, {pipeline_mode = #tpu.pipeline_mode<synchronous>, transform_indices = @transform_5, window_bounds = array<i64: 1, 128>}, {pipeline_mode = #tpu.pipeline_mode<synchronous>, transform_indices = @transform_6, window_bounds = array<i64: 1, 128>}, {pipeline_mode = #tpu.pipeline_mode<synchronous>, transform_indices = @transform_7, window_bounds = array<i64: 1, 128>}, {pipeline_mode = #tpu.pipeline_mode<synchronous>, transform_indices = @transform_8, window_bounds = array<i64: 128, 256>}, {pipeline_mode = #tpu.pipeline_mode<synchronous>, transform_indices = @transform_9, window_bounds = array<i64: 1, 256>}, {pipeline_mode = #tpu.pipeline_mode<synchronous>, transform_indices = @transform_10, window_bounds = array<i64: 256, 128>}, {pipeline_mode = #tpu.pipeline_mode<synchronous>, transform_indices = @transform_11, window_bounds = array<i64: 1, 128>}, {transform_indices = @transform_12, window_bounds = array<i64: 1, 16, 128>}]} {
    %c0 = arith.constant 0 : index
    %c0_0 = arith.constant 0 : index
    %c0_1 = arith.constant 0 : index
    %0 = vector.load %arg1[%c0, %c0_0, %c0_1] : memref<1x16x128xf32, #tpu.memory_space<vmem>>, vector<1x16x128xf32>
    %1 = vector.shape_cast %0 : vector<1x16x128xf32> to vector<16x128xf32>
    %c0_2 = arith.constant 0 : index
    %c0_3 = arith.constant 0 : index
    %2 = vector.load %arg2[%c0_2, %c0_3] : memref<1x128xf32, #tpu.memory_space<vmem>>, vector<1x128xf32>
    %c0_4 = arith.constant 0 : index
    %c0_5 = arith.constant 0 : index
    %3 = vector.load %arg3[%c0_4, %c0_5] : memref<1x128xf32, #tpu.memory_space<vmem>>, vector<1x128xf32>
    %cst = arith.constant dense<0.000000e+00> : vector<16xf32>
    %4 = vector.multi_reduction <add>, %1, %cst [1] : vector<16x128xf32> to vector<16xf32>
    %5 = vector.shape_cast %4 : vector<16xf32> to vector<16x1xf32>
    %cst_6 = arith.constant 1.280000e+02 : f32
    %6 = vector.broadcast %cst_6 : f32 to vector<16x1xf32>
    %7 = arith.divf %5, %6 : vector<16x1xf32>
    %8 = vector.broadcast %7 : vector<16x1xf32> to vector<16x128xf32>
    %9 = arith.subf %1, %8 : vector<16x128xf32>
    %10 = arith.mulf %9, %9 : vector<16x128xf32>
    %cst_7 = arith.constant dense<0.000000e+00> : vector<16xf32>
    %11 = vector.multi_reduction <add>, %10, %cst_7 [1] : vector<16x128xf32> to vector<16xf32>
    %12 = vector.shape_cast %11 : vector<16xf32> to vector<16x1xf32>
    %cst_8 = arith.constant 1.280000e+02 : f32
    %13 = vector.broadcast %cst_8 : f32 to vector<16x1xf32>
    %14 = arith.divf %12, %13 : vector<16x1xf32>
    %15 = vector.broadcast %7 : vector<16x1xf32> to vector<16x128xf32>
    %16 = arith.subf %1, %15 : vector<16x128xf32>
    %cst_9 = arith.constant 9.99999974E-6 : f32
    %17 = vector.broadcast %cst_9 : f32 to vector<16x1xf32>
    %18 = arith.addf %14, %17 : vector<16x1xf32>
    %19 = math.rsqrt %18 : vector<16x1xf32>
    %20 = vector.broadcast %19 : vector<16x1xf32> to vector<16x128xf32>
    %21 = arith.mulf %16, %20 : vector<16x128xf32>
    %22 = vector.broadcast %2 : vector<1x128xf32> to vector<16x128xf32>
    %23 = arith.mulf %21, %22 : vector<16x128xf32>
    %24 = vector.broadcast %3 : vector<1x128xf32> to vector<16x128xf32>
    %25 = arith.addf %23, %24 : vector<16x128xf32>
    %26 = arith.truncf %25 : vector<16x128xf32> to vector<16x128xbf16>
    %c0_10 = arith.constant 0 : index
    %c0_11 = arith.constant 0 : index
    %27 = vector.load %arg4[%c0_10, %c0_11] : memref<128x384xbf16, #tpu.memory_space<vmem>>, vector<128x384xbf16>
    %cst_12 = arith.constant dense<0.000000e+00> : vector<16x384xf32>
    %28 = tpu.matmul %26, %27, %cst_12 {dimension_numbers = #tpu.dot_dimension_numbers<[1], [0], [0], [1], [0, 0, 1, 1], [], []>} : vector<16x128xbf16>, vector<128x384xbf16>, vector<16x384xf32> -> vector<16x384xf32>
    %29 = arith.truncf %28 : vector<16x384xf32> to vector<16x384xbf16>
    %c0_13 = arith.constant 0 : index
    %c0_14 = arith.constant 0 : index
    %30 = vector.load %arg14[%c0_13, %c0_14] : memref<16x384xbf16, #tpu.memory_space<vmem>>, vector<16x384xbf16>
    tpu.vector_store %arg14[%c0_13, %c0_14], %29 {strides = array<i32>} : memref<16x384xbf16, #tpu.memory_space<vmem>>, vector<16x384xbf16>,
    %c0_15 = arith.constant 0 : index
    %c0_16 = arith.constant 0 : index
    %31 = vector.load %arg14[%c0_15, %c0_16] : memref<16x384xbf16, #tpu.memory_space<vmem>>, vector<16x128xbf16>
    %c0_17 = arith.constant 0 : index
    %c128 = arith.constant 128 : index
    %32 = vector.load %arg14[%c0_17, %c128] : memref<16x384xbf16, #tpu.memory_space<vmem>>, vector<16x128xbf16>
    %c0_18 = arith.constant 0 : index
    %c256 = arith.constant 256 : index
    %33 = vector.load %arg14[%c0_18, %c256] : memref<16x384xbf16, #tpu.memory_space<vmem>>, vector<16x128xbf16>
    %34 = vector.extract_strided_slice %31 {offsets = [0, 0], sizes = [16, 32], strides = [1, 1]} : vector<16x128xbf16> to vector<16x32xbf16>
    %35 = vector.extract_strided_slice %32 {offsets = [0, 0], sizes = [16, 32], strides = [1, 1]} : vector<16x128xbf16> to vector<16x32xbf16>
    %36 = vector.extract_strided_slice %33 {offsets = [0, 0], sizes = [16, 32], strides = [1, 1]} : vector<16x128xbf16> to vector<16x32xbf16>
    %cst_19 = arith.constant dense<0.000000e+00> : vector<16x16xf32>
    %37 = tpu.matmul %34, %35, %cst_19 {dimension_numbers = #tpu.dot_dimension_numbers<[1], [1], [0], [0], [0, 0, 1, 0], [], []>} : vector<16x32xbf16>, vector<16x32xbf16>, vector<16x16xf32> -> vector<16x16xf32>
    %cst_20 = arith.constant 0.176776692 : f32
    %38 = vector.broadcast %cst_20 : f32 to vector<16x16xf32>
    %39 = arith.mulf %37, %38 : vector<16x16xf32>
    %cst_21 = arith.constant dense<0xFF800000> : vector<16xf32>
    %40 = vector.multi_reduction <maximumf>, %39, %cst_21 [1] : vector<16x16xf32> to vector<16xf32>
    %41 = vector.shape_cast %40 : vector<16xf32> to vector<16x1xf32>
    %42 = vector.broadcast %41 : vector<16x1xf32> to vector<16x16xf32>
    %43 = arith.subf %39, %42 : vector<16x16xf32>
    %44 = math.exp %43 : vector<16x16xf32>
    %cst_22 = arith.constant dense<0.000000e+00> : vector<16xf32>
    %45 = vector.multi_reduction <add>, %44, %cst_22 [1] : vector<16x16xf32> to vector<16xf32>
    %46 = vector.shape_cast %45 : vector<16xf32> to vector<16x1xf32>
    %47 = arith.truncf %44 : vector<16x16xf32> to vector<16x16xbf16>
    %cst_23 = arith.constant dense<0.000000e+00> : vector<16x32xf32>
    %48 = tpu.matmul %47, %36, %cst_23 {dimension_numbers = #tpu.dot_dimension_numbers<[1], [0], [0], [1], [0, 0, 1, 1], [], []>} : vector<16x16xbf16>, vector<16x32xbf16>, vector<16x32xf32> -> vector<16x32xf32>
    %49 = tpu.reciprocal %46 {approx = true} : vector<16x1xf32> -> vector<16x1xf32>
    %50 = vector.broadcast %49 : vector<16x1xf32> to vector<16x32xf32>
    %51 = arith.mulf %48, %50 : vector<16x32xf32>
    %52 = vector.extract_strided_slice %31 {offsets = [0, 32], sizes = [16, 32], strides = [1, 1]} : vector<16x128xbf16> to vector<16x32xbf16>
    %53 = vector.extract_strided_slice %32 {offsets = [0, 32], sizes = [16, 32], strides = [1, 1]} : vector<16x128xbf16> to vector<16x32xbf16>
    %54 = vector.extract_strided_slice %33 {offsets = [0, 32], sizes = [16, 32], strides = [1, 1]} : vector<16x128xbf16> to vector<16x32xbf16>
    %cst_24 = arith.constant dense<0.000000e+00> : vector<16x16xf32>
    %55 = tpu.matmul %52, %53, %cst_24 {dimension_numbers = #tpu.dot_dimension_numbers<[1], [1], [0], [0], [0, 0, 1, 0], [], []>} : vector<16x32xbf16>, vector<16x32xbf16>, vector<16x16xf32> -> vector<16x16xf32>
    %cst_25 = arith.constant 0.176776692 : f32
    %56 = vector.broadcast %cst_25 : f32 to vector<16x16xf32>
    %57 = arith.mulf %55, %56 : vector<16x16xf32>
    %cst_26 = arith.constant dense<0xFF800000> : vector<16xf32>
    %58 = vector.multi_reduction <maximumf>, %57, %cst_26 [1] : vector<16x16xf32> to vector<16xf32>
    %59 = vector.shape_cast %58 : vector<16xf32> to vector<16x1xf32>
    %60 = vector.broadcast %59 : vector<16x1xf32> to vector<16x16xf32>
    %61 = arith.subf %57, %60 : vector<16x16xf32>
    %62 = math.exp %61 : vector<16x16xf32>
    %cst_27 = arith.constant dense<0.000000e+00> : vector<16xf32>
    %63 = vector.multi_reduction <add>, %62, %cst_27 [1] : vector<16x16xf32> to vector<16xf32>
    %64 = vector.shape_cast %63 : vector<16xf32> to vector<16x1xf32>
    %65 = arith.truncf %62 : vector<16x16xf32> to vector<16x16xbf16>
    %cst_28 = arith.constant dense<0.000000e+00> : vector<16x32xf32>
    %66 = tpu.matmul %65, %54, %cst_28 {dimension_numbers = #tpu.dot_dimension_numbers<[1], [0], [0], [1], [0, 0, 1, 1], [], []>} : vector<16x16xbf16>, vector<16x32xbf16>, vector<16x32xf32> -> vector<16x32xf32>
    %67 = tpu.reciprocal %64 {approx = true} : vector<16x1xf32> -> vector<16x1xf32>
    %68 = vector.broadcast %67 : vector<16x1xf32> to vector<16x32xf32>
    %69 = arith.mulf %66, %68 : vector<16x32xf32>
    %70 = vector.extract_strided_slice %31 {offsets = [0, 64], sizes = [16, 32], strides = [1, 1]} : vector<16x128xbf16> to vector<16x32xbf16>
    %71 = vector.extract_strided_slice %32 {offsets = [0, 64], sizes = [16, 32], strides = [1, 1]} : vector<16x128xbf16> to vector<16x32xbf16>
    %72 = vector.extract_strided_slice %33 {offsets = [0, 64], sizes = [16, 32], strides = [1, 1]} : vector<16x128xbf16> to vector<16x32xbf16>
    %cst_29 = arith.constant dense<0.000000e+00> : vector<16x16xf32>
    %73 = tpu.matmul %70, %71, %cst_29 {dimension_numbers = #tpu.dot_dimension_numbers<[1], [1], [0], [0], [0, 0, 1, 0], [], []>} : vector<16x32xbf16>, vector<16x32xbf16>, vector<16x16xf32> -> vector<16x16xf32>
    %cst_30 = arith.constant 0.176776692 : f32
    %74 = vector.broadcast %cst_30 : f32 to vector<16x16xf32>
    %75 = arith.mulf %73, %74 : vector<16x16xf32>
    %cst_31 = arith.constant dense<0xFF800000> : vector<16xf32>
    %76 = vector.multi_reduction <maximumf>, %75, %cst_31 [1] : vector<16x16xf32> to vector<16xf32>
    %77 = vector.shape_cast %76 : vector<16xf32> to vector<16x1xf32>
    %78 = vector.broadcast %77 : vector<16x1xf32> to vector<16x16xf32>
    %79 = arith.subf %75, %78 : vector<16x16xf32>
    %80 = math.exp %79 : vector<16x16xf32>
    %cst_32 = arith.constant dense<0.000000e+00> : vector<16xf32>
    %81 = vector.multi_reduction <add>, %80, %cst_32 [1] : vector<16x16xf32> to vector<16xf32>
    %82 = vector.shape_cast %81 : vector<16xf32> to vector<16x1xf32>
    %83 = arith.truncf %80 : vector<16x16xf32> to vector<16x16xbf16>
    %cst_33 = arith.constant dense<0.000000e+00> : vector<16x32xf32>
    %84 = tpu.matmul %83, %72, %cst_33 {dimension_numbers = #tpu.dot_dimension_numbers<[1], [0], [0], [1], [0, 0, 1, 1], [], []>} : vector<16x16xbf16>, vector<16x32xbf16>, vector<16x32xf32> -> vector<16x32xf32>
    %85 = tpu.reciprocal %82 {approx = true} : vector<16x1xf32> -> vector<16x1xf32>
    %86 = vector.broadcast %85 : vector<16x1xf32> to vector<16x32xf32>
    %87 = arith.mulf %84, %86 : vector<16x32xf32>
    %88 = vector.extract_strided_slice %31 {offsets = [0, 96], sizes = [16, 32], strides = [1, 1]} : vector<16x128xbf16> to vector<16x32xbf16>
    %89 = vector.extract_strided_slice %32 {offsets = [0, 96], sizes = [16, 32], strides = [1, 1]} : vector<16x128xbf16> to vector<16x32xbf16>
    %90 = vector.extract_strided_slice %33 {offsets = [0, 96], sizes = [16, 32], strides = [1, 1]} : vector<16x128xbf16> to vector<16x32xbf16>
    %cst_34 = arith.constant dense<0.000000e+00> : vector<16x16xf32>
    %91 = tpu.matmul %88, %89, %cst_34 {dimension_numbers = #tpu.dot_dimension_numbers<[1], [1], [0], [0], [0, 0, 1, 0], [], []>} : vector<16x32xbf16>, vector<16x32xbf16>, vector<16x16xf32> -> vector<16x16xf32>
    %cst_35 = arith.constant 0.176776692 : f32
    %92 = vector.broadcast %cst_35 : f32 to vector<16x16xf32>
    %93 = arith.mulf %91, %92 : vector<16x16xf32>
    %cst_36 = arith.constant dense<0xFF800000> : vector<16xf32>
    %94 = vector.multi_reduction <maximumf>, %93, %cst_36 [1] : vector<16x16xf32> to vector<16xf32>
    %95 = vector.shape_cast %94 : vector<16xf32> to vector<16x1xf32>
    %96 = vector.broadcast %95 : vector<16x1xf32> to vector<16x16xf32>
    %97 = arith.subf %93, %96 : vector<16x16xf32>
    %98 = math.exp %97 : vector<16x16xf32>
    %cst_37 = arith.constant dense<0.000000e+00> : vector<16xf32>
    %99 = vector.multi_reduction <add>, %98, %cst_37 [1] : vector<16x16xf32> to vector<16xf32>
    %100 = vector.shape_cast %99 : vector<16xf32> to vector<16x1xf32>
    %101 = arith.truncf %98 : vector<16x16xf32> to vector<16x16xbf16>
    %cst_38 = arith.constant dense<0.000000e+00> : vector<16x32xf32>
    %102 = tpu.matmul %101, %90, %cst_38 {dimension_numbers = #tpu.dot_dimension_numbers<[1], [0], [0], [1], [0, 0, 1, 1], [], []>} : vector<16x16xbf16>, vector<16x32xbf16>, vector<16x32xf32> -> vector<16x32xf32>
    %103 = tpu.reciprocal %100 {approx = true} : vector<16x1xf32> -> vector<16x1xf32>
    %104 = vector.broadcast %103 : vector<16x1xf32> to vector<16x32xf32>
    %105 = arith.mulf %102, %104 : vector<16x32xf32>
    %106 = tpu.concatenate %51, %69, %87, %105 in 1 : vector<16x32xf32>, vector<16x32xf32>, vector<16x32xf32>, vector<16x32xf32> -> vector<16x128xf32>
    %107 = arith.truncf %106 : vector<16x128xf32> to vector<16x128xbf16>
    %c0_39 = arith.constant 0 : index
    %c0_40 = arith.constant 0 : index
    %108 = vector.load %arg15[%c0_39, %c0_40] : memref<16x128xbf16, #tpu.memory_space<vmem>>, vector<16x128xbf16>
    tpu.vector_store %arg15[%c0_39, %c0_40], %107 {strides = array<i32>} : memref<16x128xbf16, #tpu.memory_space<vmem>>, vector<16x128xbf16>,
    %c0_41 = arith.constant 0 : index
    %c0_42 = arith.constant 0 : index
    %109 = vector.load %arg15[%c0_41, %c0_42] : memref<16x128xbf16, #tpu.memory_space<vmem>>, vector<16x128xbf16>
    %c0_43 = arith.constant 0 : index
    %c0_44 = arith.constant 0 : index
    %110 = vector.load %arg5[%c0_43, %c0_44] : memref<128x128xbf16, #tpu.memory_space<vmem>>, vector<128x128xbf16>
    %cst_45 = arith.constant dense<0.000000e+00> : vector<16x128xf32>
    %111 = tpu.matmul %109, %110, %cst_45 {dimension_numbers = #tpu.dot_dimension_numbers<[1], [0], [0], [1], [0, 0, 1, 1], [], []>} : vector<16x128xbf16>, vector<128x128xbf16>, vector<16x128xf32> -> vector<16x128xf32>
    %c0_46 = arith.constant 0 : index
    %c0_47 = arith.constant 0 : index
    %112 = vector.load %arg6[%c0_46, %c0_47] : memref<1x128xf32, #tpu.memory_space<vmem>>, vector<1x128xf32>
    %113 = vector.broadcast %112 : vector<1x128xf32> to vector<16x128xf32>
    %114 = arith.addf %111, %113 : vector<16x128xf32>
    %115 = arith.addf %1, %114 : vector<16x128xf32>
    %c0_48 = arith.constant 0 : index
    %c0_49 = arith.constant 0 : index
    %116 = vector.load %arg7[%c0_48, %c0_49] : memref<1x128xf32, #tpu.memory_space<vmem>>, vector<1x128xf32>
    %c0_50 = arith.constant 0 : index
    %c0_51 = arith.constant 0 : index
    %117 = vector.load %arg8[%c0_50, %c0_51] : memref<1x128xf32, #tpu.memory_space<vmem>>, vector<1x128xf32>
    %cst_52 = arith.constant dense<0.000000e+00> : vector<16xf32>
    %118 = vector.multi_reduction <add>, %115, %cst_52 [1] : vector<16x128xf32> to vector<16xf32>
    %119 = vector.shape_cast %118 : vector<16xf32> to vector<16x1xf32>
    %cst_53 = arith.constant 1.280000e+02 : f32
    %120 = vector.broadcast %cst_53 : f32 to vector<16x1xf32>
    %121 = arith.divf %119, %120 : vector<16x1xf32>
    %122 = vector.broadcast %121 : vector<16x1xf32> to vector<16x128xf32>
    %123 = arith.subf %115, %122 : vector<16x128xf32>
    %124 = arith.mulf %123, %123 : vector<16x128xf32>
    %cst_54 = arith.constant dense<0.000000e+00> : vector<16xf32>
    %125 = vector.multi_reduction <add>, %124, %cst_54 [1] : vector<16x128xf32> to vector<16xf32>
    %126 = vector.shape_cast %125 : vector<16xf32> to vector<16x1xf32>
    %cst_55 = arith.constant 1.280000e+02 : f32
    %127 = vector.broadcast %cst_55 : f32 to vector<16x1xf32>
    %128 = arith.divf %126, %127 : vector<16x1xf32>
    %129 = vector.broadcast %121 : vector<16x1xf32> to vector<16x128xf32>
    %130 = arith.subf %115, %129 : vector<16x128xf32>
    %cst_56 = arith.constant 9.99999974E-6 : f32
    %131 = vector.broadcast %cst_56 : f32 to vector<16x1xf32>
    %132 = arith.addf %128, %131 : vector<16x1xf32>
    %133 = math.rsqrt %132 : vector<16x1xf32>
    %134 = vector.broadcast %133 : vector<16x1xf32> to vector<16x128xf32>
    %135 = arith.mulf %130, %134 : vector<16x128xf32>
    %136 = vector.broadcast %116 : vector<1x128xf32> to vector<16x128xf32>
    %137 = arith.mulf %135, %136 : vector<16x128xf32>
    %138 = vector.broadcast %117 : vector<1x128xf32> to vector<16x128xf32>
    %139 = arith.addf %137, %138 : vector<16x128xf32>
    %140 = arith.truncf %139 : vector<16x128xf32> to vector<16x128xbf16>
    %c0_57 = arith.constant 0 : index
    %c0_58 = arith.constant 0 : index
    %141 = vector.load %arg9[%c0_57, %c0_58] : memref<128x256xbf16, #tpu.memory_space<vmem>>, vector<128x256xbf16>
    %cst_59 = arith.constant dense<0.000000e+00> : vector<16x256xf32>
    %142 = tpu.matmul %140, %141, %cst_59 {dimension_numbers = #tpu.dot_dimension_numbers<[1], [0], [0], [1], [0, 0, 1, 1], [], []>} : vector<16x128xbf16>, vector<128x256xbf16>, vector<16x256xf32> -> vector<16x256xf32>
    %c0_60 = arith.constant 0 : index
    %c0_61 = arith.constant 0 : index
    %143 = vector.load %arg10[%c0_60, %c0_61] : memref<1x256xf32, #tpu.memory_space<vmem>>, vector<1x256xf32>
    %144 = vector.broadcast %143 : vector<1x256xf32> to vector<16x256xf32>
    %145 = arith.addf %142, %144 : vector<16x256xf32>
    %cst_62 = arith.constant 5.000000e-01 : f32
    %146 = vector.broadcast %cst_62 : f32 to vector<16x256xf32>
    %147 = arith.mulf %146, %145 : vector<16x256xf32>
    %cst_63 = arith.constant 4.471500e-02 : f32
    %148 = vector.broadcast %cst_63 : f32 to vector<16x256xf32>
    %149 = arith.mulf %148, %145 : vector<16x256xf32>
    %150 = arith.mulf %149, %145 : vector<16x256xf32>
    %151 = arith.mulf %150, %145 : vector<16x256xf32>
    %152 = arith.addf %145, %151 : vector<16x256xf32>
    %cst_64 = arith.constant 0.797884583 : f32
    %153 = vector.broadcast %cst_64 : f32 to vector<16x256xf32>
    %154 = arith.mulf %153, %152 : vector<16x256xf32>
    %155 = math.tanh %154 : vector<16x256xf32>
    %cst_65 = arith.constant 1.000000e+00 : f32
    %156 = vector.broadcast %cst_65 : f32 to vector<16x256xf32>
    %157 = arith.addf %156, %155 : vector<16x256xf32>
    %158 = arith.mulf %147, %157 : vector<16x256xf32>
    %159 = arith.truncf %158 : vector<16x256xf32> to vector<16x256xbf16>
    %c0_66 = arith.constant 0 : index
    %c0_67 = arith.constant 0 : index
    %160 = vector.load %arg11[%c0_66, %c0_67] : memref<256x128xbf16, #tpu.memory_space<vmem>>, vector<256x128xbf16>
    %cst_68 = arith.constant dense<0.000000e+00> : vector<16x128xf32>
    %161 = tpu.matmul %159, %160, %cst_68 {dimension_numbers = #tpu.dot_dimension_numbers<[1], [0], [0], [1], [0, 0, 1, 1], [], []>} : vector<16x256xbf16>, vector<256x128xbf16>, vector<16x128xf32> -> vector<16x128xf32>
    %c0_69 = arith.constant 0 : index
    %c0_70 = arith.constant 0 : index
    %162 = vector.load %arg12[%c0_69, %c0_70] : memref<1x128xf32, #tpu.memory_space<vmem>>, vector<1x128xf32>
    %163 = vector.broadcast %162 : vector<1x128xf32> to vector<16x128xf32>
    %164 = arith.addf %161, %163 : vector<16x128xf32>
    %165 = arith.addf %115, %164 : vector<16x128xf32>
    %c0_71 = arith.constant 0 : index
    %c0_72 = arith.constant 0 : index
    %c0_73 = arith.constant 0 : index
    %166 = vector.load %arg13[%c0_71, %c0_72, %c0_73] : memref<1x16x128xf32, #tpu.memory_space<vmem>>, vector<1x16x128xf32>
    %167 = vector.shape_cast %166 : vector<1x16x128xf32> to vector<16x128xf32>
    %168 = vector.shape_cast %165 : vector<16x128xf32> to vector<1x16x128xf32>
    tpu.vector_store %arg13[%c0_71, %c0_72, %c0_73], %168 {strides = array<i32>} : memref<1x16x128xf32, #tpu.memory_space<vmem>>, vector<1x16x128xf32>,
    return
  }
  func.func @transform_0(%arg0: i32) -> (i32, i32, i32) {
    %c0_i32 = arith.constant 0 : i32
    %c0_i32_0 = arith.constant 0 : i32
    %c0_i32_1 = arith.constant 0 : i32
    return %arg0, %c0_i32, %c0_i32_0 : i32, i32, i32
  }
  func.func @transform_1(%arg0: i32) -> (i32, i32) {
    %c0_i32 = arith.constant 0 : i32
    %c0_i32_0 = arith.constant 0 : i32
    %c0_i32_1 = arith.constant 0 : i32
    return %c0_i32, %c0_i32_0 : i32, i32
  }
  func.func @transform_2(%arg0: i32) -> (i32, i32) {
    %c0_i32 = arith.constant 0 : i32
    %c0_i32_0 = arith.constant 0 : i32
    %c0_i32_1 = arith.constant 0 : i32
    return %c0_i32, %c0_i32_0 : i32, i32
  }
  func.func @transform_3(%arg0: i32) -> (i32, i32) {
    %c0_i32 = arith.constant 0 : i32
    %c0_i32_0 = arith.constant 0 : i32
    %c0_i32_1 = arith.constant 0 : i32
    return %c0_i32, %c0_i32_0 : i32, i32
  }
  func.func @transform_4(%arg0: i32) -> (i32, i32) {
    %c0_i32 = arith.constant 0 : i32
    %c0_i32_0 = arith.constant 0 : i32
    %c0_i32_1 = arith.constant 0 : i32
    return %c0_i32, %c0_i32_0 : i32, i32
  }
  func.func @transform_5(%arg0: i32) -> (i32, i32) {
    %c0_i32 = arith.constant 0 : i32
    %c0_i32_0 = arith.constant 0 : i32
    %c0_i32_1 = arith.constant 0 : i32
    return %c0_i32, %c0_i32_0 : i32, i32
  }
  func.func @transform_6(%arg0: i32) -> (i32, i32) {
    %c0_i32 = arith.constant 0 : i32
    %c0_i32_0 = arith.constant 0 : i32
    %c0_i32_1 = arith.constant 0 : i32
    return %c0_i32, %c0_i32_0 : i32, i32
  }
  func.func @transform_7(%arg0: i32) -> (i32, i32) {
    %c0_i32 = arith.constant 0 : i32
    %c0_i32_0 = arith.constant 0 : i32
    %c0_i32_1 = arith.constant 0 : i32
    return %c0_i32, %c0_i32_0 : i32, i32
  }
  func.func @transform_8(%arg0: i32) -> (i32, i32) {
    %c0_i32 = arith.constant 0 : i32
    %c0_i32_0 = arith.constant 0 : i32
    %c0_i32_1 = arith.constant 0 : i32
    return %c0_i32, %c0_i32_0 : i32, i32
  }
  func.func @transform_9(%arg0: i32) -> (i32, i32) {
    %c0_i32 = arith.constant 0 : i32
    %c0_i32_0 = arith.constant 0 : i32
    %c0_i32_1 = arith.constant 0 : i32
    return %c0_i32, %c0_i32_0 : i32, i32
  }
  func.func @transform_10(%arg0: i32) -> (i32, i32) {
    %c0_i32 = arith.constant 0 : i32
    %c0_i32_0 = arith.constant 0 : i32
    %c0_i32_1 = arith.constant 0 : i32
    return %c0_i32, %c0_i32_0 : i32, i32
  }
  func.func @transform_11(%arg0: i32) -> (i32, i32) {
    %c0_i32 = arith.constant 0 : i32
    %c0_i32_0 = arith.constant 0 : i32
    %c0_i32_1 = arith.constant 0 : i32
    return %c0_i32, %c0_i32_0 : i32, i32
  }
  func.func @transform_12(%arg0: i32) -> (i32, i32, i32) {
    %c0_i32 = arith.constant 0 : i32
    %c0_i32_0 = arith.constant 0 : i32
    %c0_i32_1 = arith.constant 0 : i32
    return %arg0, %c0_i32, %c0_i32_0 : i32, i32, i32
  }
}

module attributes {stable_mosaic.version = 11 : i64} {
  func.func @transformer_block_kernel(%arg0: i32, %arg1: memref<1x16x128xf32, #tpu.memory_space<vmem>>, %arg2: memref<1x128xf32, #tpu.memory_space<vmem>>, %arg3: memref<1x128xf32, #tpu.memory_space<vmem>>, %arg4: memref<128x384xbf16, #tpu.memory_space<vmem>>, %arg5: memref<128x128xbf16, #tpu.memory_space<vmem>>, %arg6: memref<1x128xf32, #tpu.memory_space<vmem>>, %arg7: memref<1x128xf32, #tpu.memory_space<vmem>>, %arg8: memref<1x128xf32, #tpu.memory_space<vmem>>, %arg9: memref<128x256xbf16, #tpu.memory_space<vmem>>, %arg10: memref<1x256xf32, #tpu.memory_space<vmem>>, %arg11: memref<256x128xbf16, #tpu.memory_space<vmem>>, %arg12: memref<1x128xf32, #tpu.memory_space<vmem>>, %arg13: memref<1x16x128xf32, #tpu.memory_space<vmem>>, %arg14: memref<16x384xbf16, #tpu.memory_space<vmem>>, %arg15: memref<16x128xbf16, #tpu.memory_space<vmem>>) attributes {dimension_semantics = [#tpu.dimension_semantics<parallel>], iteration_bounds = array<i64: 2>, scalar_prefetch = 0 : i64, scratch_operands = 2 : i64, tpu.core_type = #tpu.core_type<tc>, window_params = [{transform_indices = @transform_0, window_bounds = array<i64: 1, 16, 128>}, {pipeline_mode = #tpu.pipeline_mode<synchronous>, transform_indices = @transform_1, window_bounds = array<i64: 1, 128>}, {pipeline_mode = #tpu.pipeline_mode<synchronous>, transform_indices = @transform_2, window_bounds = array<i64: 1, 128>}, {pipeline_mode = #tpu.pipeline_mode<synchronous>, transform_indices = @transform_3, window_bounds = array<i64: 128, 384>}, {pipeline_mode = #tpu.pipeline_mode<synchronous>, transform_indices = @transform_4, window_bounds = array<i64: 128, 128>}, {pipeline_mode = #tpu.pipeline_mode<synchronous>, transform_indices = @transform_5, window_bounds = array<i64: 1, 128>}, {pipeline_mode = #tpu.pipeline_mode<synchronous>, transform_indices = @transform_6, window_bounds = array<i64: 1, 128>}, {pipeline_mode = #tpu.pipeline_mode<synchronous>, transform_indices = @transform_7, window_bounds = array<i64: 1, 128>}, {pipeline_mode = #tpu.pipeline_mode<synchronous>, transform_indices = @transform_8, window_bounds = array<i64: 128, 256>}, {pipeline_mode = #tpu.pipeline_mode<synchronous>, transform_indices = @transform_9, window_bounds = array<i64: 1, 256>}, {pipeline_mode = #tpu.pipeline_mode<synchronous>, transform_indices = @transform_10, window_bounds = array<i64: 256, 128>}, {pipeline_mode = #tpu.pipeline_mode<synchronous>, transform_indices = @transform_11, window_bounds = array<i64: 1, 128>}, {transform_indices = @transform_12, window_bounds = array<i64: 1, 16, 128>}]} {
    %c0 = arith.constant 0 : index
    %c0_0 = arith.constant 0 : index
    %c0_1 = arith.constant 0 : index
    %0 = vector.load %arg1[%c0, %c0_0, %c0_1] : memref<1x16x128xf32, #tpu.memory_space<vmem>>, vector<1x16x128xf32>
    %1 = vector.shape_cast %0 : vector<1x16x128xf32> to vector<16x128xf32>
    %c0_2 = arith.constant 0 : index
    %c0_3 = arith.constant 0 : index
    %2 = vector.load %arg2[%c0_2, %c0_3] : memref<1x128xf32, #tpu.memory_space<vmem>>, vector<1x128xf32>
    %c0_4 = arith.constant 0 : index
    %c0_5 = arith.constant 0 : index
    %3 = vector.load %arg3[%c0_4, %c0_5] : memref<1x128xf32, #tpu.memory_space<vmem>>, vector<1x128xf32>
    %cst = arith.constant dense<0.000000e+00> : vector<16xf32>
    %4 = vector.multi_reduction <add>, %1, %cst [1] : vector<16x128xf32> to vector<16xf32>
    %5 = vector.shape_cast %4 : vector<16xf32> to vector<16x1xf32>
    %cst_6 = arith.constant 1.280000e+02 : f32
    %6 = vector.broadcast %cst_6 : f32 to vector<16x1xf32>
    %7 = arith.divf %5, %6 : vector<16x1xf32>
    %8 = vector.broadcast %7 : vector<16x1xf32> to vector<16x128xf32>
    %9 = arith.subf %1, %8 : vector<16x128xf32>
    %10 = arith.mulf %9, %9 : vector<16x128xf32>
    %cst_7 = arith.constant dense<0.000000e+00> : vector<16xf32>
    %11 = vector.multi_reduction <add>, %10, %cst_7 [1] : vector<16x128xf32> to vector<16xf32>
    %12 = vector.shape_cast %11 : vector<16xf32> to vector<16x1xf32>
    %cst_8 = arith.constant 1.280000e+02 : f32
    %13 = vector.broadcast %cst_8 : f32 to vector<16x1xf32>
    %14 = arith.divf %12, %13 : vector<16x1xf32>
    %15 = vector.broadcast %7 : vector<16x1xf32> to vector<16x128xf32>
    %16 = arith.subf %1, %15 : vector<16x128xf32>
    %cst_9 = arith.constant 9.99999974E-6 : f32
    %17 = vector.broadcast %cst_9 : f32 to vector<16x1xf32>
    %18 = arith.addf %14, %17 : vector<16x1xf32>
    %19 = math.rsqrt %18 : vector<16x1xf32>
    %20 = vector.broadcast %19 : vector<16x1xf32> to vector<16x128xf32>
    %21 = arith.mulf %16, %20 : vector<16x128xf32>
    %22 = vector.broadcast %2 : vector<1x128xf32> to vector<16x128xf32>
    %23 = arith.mulf %21, %22 : vector<16x128xf32>
    %24 = vector.broadcast %3 : vector<1x128xf32> to vector<16x128xf32>
    %25 = arith.addf %23, %24 : vector<16x128xf32>
    %26 = arith.truncf %25 : vector<16x128xf32> to vector<16x128xbf16>
    %c0_10 = arith.constant 0 : index
    %c0_11 = arith.constant 0 : index
    %27 = vector.load %arg4[%c0_10, %c0_11] : memref<128x384xbf16, #tpu.memory_space<vmem>>, vector<128x384xbf16>
    %cst_12 = arith.constant dense<0.000000e+00> : vector<16x384xf32>
    %28 = tpu.matmul %26, %27, %cst_12 {dimension_numbers = #tpu.dot_dimension_numbers<[1], [0], [0], [1], [0, 0, 1, 1], [], []>} : vector<16x128xbf16>, vector<128x384xbf16>, vector<16x384xf32> -> vector<16x384xf32>
    %29 = arith.truncf %28 : vector<16x384xf32> to vector<16x384xbf16>
    %c0_13 = arith.constant 0 : index
    %c0_14 = arith.constant 0 : index
    %30 = vector.load %arg14[%c0_13, %c0_14] : memref<16x384xbf16, #tpu.memory_space<vmem>>, vector<16x384xbf16>
    tpu.vector_store %arg14[%c0_13, %c0_14], %29 {strides = array<i32>} : memref<16x384xbf16, #tpu.memory_space<vmem>>, vector<16x384xbf16>,
    %c0_15 = arith.constant 0 : index
    %c0_16 = arith.constant 0 : index
    %31 = vector.load %arg14[%c0_15, %c0_16] : memref<16x384xbf16, #tpu.memory_space<vmem>>, vector<16x128xbf16>
    %c0_17 = arith.constant 0 : index
    %c128 = arith.constant 128 : index
    %32 = vector.load %arg14[%c0_17, %c128] : memref<16x384xbf16, #tpu.memory_space<vmem>>, vector<16x128xbf16>
    %c0_18 = arith.constant 0 : index
    %c256 = arith.constant 256 : index
    %33 = vector.load %arg14[%c0_18, %c256] : memref<16x384xbf16, #tpu.memory_space<vmem>>, vector<16x128xbf16>
    %34 = vector.extract_strided_slice %31 {offsets = [0, 0], sizes = [16, 32], strides = [1, 1]} : vector<16x128xbf16> to vector<16x32xbf16>
    %35 = vector.extract_strided_slice %32 {offsets = [0, 0], sizes = [16, 32], strides = [1, 1]} : vector<16x128xbf16> to vector<16x32xbf16>
    %36 = vector.extract_strided_slice %33 {offsets = [0, 0], sizes = [16, 32], strides = [1, 1]} : vector<16x128xbf16> to vector<16x32xbf16>
    %cst_19 = arith.constant dense<0.000000e+00> : vector<16x16xf32>
    %37 = tpu.matmul %34, %35, %cst_19 {dimension_numbers = #tpu.dot_dimension_numbers<[1], [1], [0], [0], [0, 0, 1, 0], [], []>} : vector<16x32xbf16>, vector<16x32xbf16>, vector<16x16xf32> -> vector<16x16xf32>
    %cst_20 = arith.constant 0.176776692 : f32
    %38 = vector.broadcast %cst_20 : f32 to vector<16x16xf32>
    %39 = arith.mulf %37, %38 : vector<16x16xf32>
    %cst_21 = arith.constant dense<0xFF800000> : vector<16xf32>
    %40 = vector.multi_reduction <maximumf>, %39, %cst_21 [1] : vector<16x16xf32> to vector<16xf32>
    %41 = vector.shape_cast %40 : vector<16xf32> to vector<16x1xf32>
    %42 = vector.broadcast %41 : vector<16x1xf32> to vector<16x16xf32>
    %43 = arith.subf %39, %42 : vector<16x16xf32>
    %44 = math.exp %43 : vector<16x16xf32>
    %cst_22 = arith.constant dense<0.000000e+00> : vector<16xf32>
    %45 = vector.multi_reduction <add>, %44, %cst_22 [1] : vector<16x16xf32> to vector<16xf32>
    %46 = vector.shape_cast %45 : vector<16xf32> to vector<16x1xf32>
    %47 = arith.truncf %44 : vector<16x16xf32> to vector<16x16xbf16>
    %cst_23 = arith.constant dense<0.000000e+00> : vector<16x32xf32>
    %48 = tpu.matmul %47, %36, %cst_23 {dimension_numbers = #tpu.dot_dimension_numbers<[1], [0], [0], [1], [0, 0, 1, 1], [], []>} : vector<16x16xbf16>, vector<16x32xbf16>, vector<16x32xf32> -> vector<16x32xf32>
    %49 = tpu.reciprocal %46 {approx = true} : vector<16x1xf32> -> vector<16x1xf32>
    %50 = vector.broadcast %49 : vector<16x1xf32> to vector<16x32xf32>
    %51 = arith.mulf %48, %50 : vector<16x32xf32>
    %52 = vector.extract_strided_slice %31 {offsets = [0, 32], sizes = [16, 32], strides = [1, 1]} : vector<16x128xbf16> to vector<16x32xbf16>
    %53 = vector.extract_strided_slice %32 {offsets = [0, 32], sizes = [16, 32], strides = [1, 1]} : vector<16x128xbf16> to vector<16x32xbf16>
    %54 = vector.extract_strided_slice %33 {offsets = [0, 32], sizes = [16, 32], strides = [1, 1]} : vector<16x128xbf16> to vector<16x32xbf16>
    %cst_24 = arith.constant dense<0.000000e+00> : vector<16x16xf32>
    %55 = tpu.matmul %52, %53, %cst_24 {dimension_numbers = #tpu.dot_dimension_numbers<[1], [1], [0], [0], [0, 0, 1, 0], [], []>} : vector<16x32xbf16>, vector<16x32xbf16>, vector<16x16xf32> -> vector<16x16xf32>
    %cst_25 = arith.constant 0.176776692 : f32
    %56 = vector.broadcast %cst_25 : f32 to vector<16x16xf32>
    %57 = arith.mulf %55, %56 : vector<16x16xf32>
    %cst_26 = arith.constant dense<0xFF800000> : vector<16xf32>
    %58 = vector.multi_reduction <maximumf>, %57, %cst_26 [1] : vector<16x16xf32> to vector<16xf32>
    %59 = vector.shape_cast %58 : vector<16xf32> to vector<16x1xf32>
    %60 = vector.broadcast %59 : vector<16x1xf32> to vector<16x16xf32>
    %61 = arith.subf %57, %60 : vector<16x16xf32>
    %62 = math.exp %61 : vector<16x16xf32>
    %cst_27 = arith.constant dense<0.000000e+00> : vector<16xf32>
    %63 = vector.multi_reduction <add>, %62, %cst_27 [1] : vector<16x16xf32> to vector<16xf32>
    %64 = vector.shape_cast %63 : vector<16xf32> to vector<16x1xf32>
    %65 = arith.truncf %62 : vector<16x16xf32> to vector<16x16xbf16>
    %cst_28 = arith.constant dense<0.000000e+00> : vector<16x32xf32>
    %66 = tpu.matmul %65, %54, %cst_28 {dimension_numbers = #tpu.dot_dimension_numbers<[1], [0], [0], [1], [0, 0, 1, 1], [], []>} : vector<16x16xbf16>, vector<16x32xbf16>, vector<16x32xf32> -> vector<16x32xf32>
    %67 = tpu.reciprocal %64 {approx = true} : vector<16x1xf32> -> vector<16x1xf32>
    %68 = vector.broadcast %67 : vector<16x1xf32> to vector<16x32xf32>
    %69 = arith.mulf %66, %68 : vector<16x32xf32>
    %70 = vector.extract_strided_slice %31 {offsets = [0, 64], sizes = [16, 32], strides = [1, 1]} : vector<16x128xbf16> to vector<16x32xbf16>
    %71 = vector.extract_strided_slice %32 {offsets = [0, 64], sizes = [16, 32], strides = [1, 1]} : vector<16x128xbf16> to vector<16x32xbf16>
    %72 = vector.extract_strided_slice %33 {offsets = [0, 64], sizes = [16, 32], strides = [1, 1]} : vector<16x128xbf16> to vector<16x32xbf16>
    %cst_29 = arith.constant dense<0.000000e+00> : vector<16x16xf32>
    %73 = tpu.matmul %70, %71, %cst_29 {dimension_numbers = #tpu.dot_dimension_numbers<[1], [1], [0], [0], [0, 0, 1, 0], [], []>} : vector<16x32xbf16>, vector<16x32xbf16>, vector<16x16xf32> -> vector<16x16xf32>
    %cst_30 = arith.constant 0.176776692 : f32
    %74 = vector.broadcast %cst_30 : f32 to vector<16x16xf32>
    %75 = arith.mulf %73, %74 : vector<16x16xf32>
    %cst_31 = arith.constant dense<0xFF800000> : vector<16xf32>
    %76 = vector.multi_reduction <maximumf>, %75, %cst_31 [1] : vector<16x16xf32> to vector<16xf32>
    %77 = vector.shape_cast %76 : vector<16xf32> to vector<16x1xf32>
    %78 = vector.broadcast %77 : vector<16x1xf32> to vector<16x16xf32>
    %79 = arith.subf %75, %78 : vector<16x16xf32>
    %80 = math.exp %79 : vector<16x16xf32>
    %cst_32 = arith.constant dense<0.000000e+00> : vector<16xf32>
    %81 = vector.multi_reduction <add>, %80, %cst_32 [1] : vector<16x16xf32> to vector<16xf32>
    %82 = vector.shape_cast %81 : vector<16xf32> to vector<16x1xf32>
    %83 = arith.truncf %80 : vector<16x16xf32> to vector<16x16xbf16>
    %cst_33 = arith.constant dense<0.000000e+00> : vector<16x32xf32>
    %84 = tpu.matmul %83, %72, %cst_33 {dimension_numbers = #tpu.dot_dimension_numbers<[1], [0], [0], [1], [0, 0, 1, 1], [], []>} : vector<16x16xbf16>, vector<16x32xbf16>, vector<16x32xf32> -> vector<16x32xf32>
    %85 = tpu.reciprocal %82 {approx = true} : vector<16x1xf32> -> vector<16x1xf32>
    %86 = vector.broadcast %85 : vector<16x1xf32> to vector<16x32xf32>
    %87 = arith.mulf %84, %86 : vector<16x32xf32>
    %88 = vector.extract_strided_slice %31 {offsets = [0, 96], sizes = [16, 32], strides = [1, 1]} : vector<16x128xbf16> to vector<16x32xbf16>
    %89 = vector.extract_strided_slice %32 {offsets = [0, 96], sizes = [16, 32], strides = [1, 1]} : vector<16x128xbf16> to vector<16x32xbf16>
    %90 = vector.extract_strided_slice %33 {offsets = [0, 96], sizes = [16, 32], strides = [1, 1]} : vector<16x128xbf16> to vector<16x32xbf16>
    %cst_34 = arith.constant dense<0.000000e+00> : vector<16x16xf32>
    %91 = tpu.matmul %88, %89, %cst_34 {dimension_numbers = #tpu.dot_dimension_numbers<[1], [1], [0], [0], [0, 0, 1, 0], [], []>} : vector<16x32xbf16>, vector<16x32xbf16>, vector<16x16xf32> -> vector<16x16xf32>
    %cst_35 = arith.constant 0.176776692 : f32
    %92 = vector.broadcast %cst_35 : f32 to vector<16x16xf32>
    %93 = arith.mulf %91, %92 : vector<16x16xf32>
    %cst_36 = arith.constant dense<0xFF800000> : vector<16xf32>
    %94 = vector.multi_reduction <maximumf>, %93, %cst_36 [1] : vector<16x16xf32> to vector<16xf32>
    %95 = vector.shape_cast %94 : vector<16xf32> to vector<16x1xf32>
    %96 = vector.broadcast %95 : vector<16x1xf32> to vector<16x16xf32>
    %97 = arith.subf %93, %96 : vector<16x16xf32>
    %98 = math.exp %97 : vector<16x16xf32>
    %cst_37 = arith.constant dense<0.000000e+00> : vector<16xf32>
    %99 = vector.multi_reduction <add>, %98, %cst_37 [1] : vector<16x16xf32> to vector<16xf32>
    %100 = vector.shape_cast %99 : vector<16xf32> to vector<16x1xf32>
    %101 = arith.truncf %98 : vector<16x16xf32> to vector<16x16xbf16>
    %cst_38 = arith.constant dense<0.000000e+00> : vector<16x32xf32>
    %102 = tpu.matmul %101, %90, %cst_38 {dimension_numbers = #tpu.dot_dimension_numbers<[1], [0], [0], [1], [0, 0, 1, 1], [], []>} : vector<16x16xbf16>, vector<16x32xbf16>, vector<16x32xf32> -> vector<16x32xf32>
    %103 = tpu.reciprocal %100 {approx = true} : vector<16x1xf32> -> vector<16x1xf32>
    %104 = vector.broadcast %103 : vector<16x1xf32> to vector<16x32xf32>
    %105 = arith.mulf %102, %104 : vector<16x32xf32>
    %106 = tpu.concatenate %51, %69, %87, %105 in 1 : vector<16x32xf32>, vector<16x32xf32>, vector<16x32xf32>, vector<16x32xf32> -> vector<16x128xf32>
    %107 = arith.truncf %106 : vector<16x128xf32> to vector<16x128xbf16>
    %c0_39 = arith.constant 0 : index
    %c0_40 = arith.constant 0 : index
    %108 = vector.load %arg15[%c0_39, %c0_40] : memref<16x128xbf16, #tpu.memory_space<vmem>>, vector<16x128xbf16>
    tpu.vector_store %arg15[%c0_39, %c0_40], %107 {strides = array<i32>} : memref<16x128xbf16, #tpu.memory_space<vmem>>, vector<16x128xbf16>,
    %c0_41 = arith.constant 0 : index
    %c0_42 = arith.constant 0 : index
    %109 = vector.load %arg15[%c0_41, %c0_42] : memref<16x128xbf16, #tpu.memory_space<vmem>>, vector<16x128xbf16>
    %c0_43 = arith.constant 0 : index
    %c0_44 = arith.constant 0 : index
    %110 = vector.load %arg5[%c0_43, %c0_44] : memref<128x128xbf16, #tpu.memory_space<vmem>>, vector<128x128xbf16>
    %cst_45 = arith.constant dense<0.000000e+00> : vector<16x128xf32>
    %111 = tpu.matmul %109, %110, %cst_45 {dimension_numbers = #tpu.dot_dimension_numbers<[1], [0], [0], [1], [0, 0, 1, 1], [], []>} : vector<16x128xbf16>, vector<128x128xbf16>, vector<16x128xf32> -> vector<16x128xf32>
    %c0_46 = arith.constant 0 : index
    %c0_47 = arith.constant 0 : index
    %112 = vector.load %arg6[%c0_46, %c0_47] : memref<1x128xf32, #tpu.memory_space<vmem>>, vector<1x128xf32>
    %113 = vector.broadcast %112 : vector<1x128xf32> to vector<16x128xf32>
    %114 = arith.addf %111, %113 : vector<16x128xf32>
    %115 = arith.addf %1, %114 : vector<16x128xf32>
    %c0_48 = arith.constant 0 : index
    %c0_49 = arith.constant 0 : index
    %116 = vector.load %arg7[%c0_48, %c0_49] : memref<1x128xf32, #tpu.memory_space<vmem>>, vector<1x128xf32>
    %c0_50 = arith.constant 0 : index
    %c0_51 = arith.constant 0 : index
    %117 = vector.load %arg8[%c0_50, %c0_51] : memref<1x128xf32, #tpu.memory_space<vmem>>, vector<1x128xf32>
    %cst_52 = arith.constant dense<0.000000e+00> : vector<16xf32>
    %118 = vector.multi_reduction <add>, %115, %cst_52 [1] : vector<16x128xf32> to vector<16xf32>
    %119 = vector.shape_cast %118 : vector<16xf32> to vector<16x1xf32>
    %cst_53 = arith.constant 1.280000e+02 : f32
    %120 = vector.broadcast %cst_53 : f32 to vector<16x1xf32>
    %121 = arith.divf %119, %120 : vector<16x1xf32>
    %122 = vector.broadcast %121 : vector<16x1xf32> to vector<16x128xf32>
    %123 = arith.subf %115, %122 : vector<16x128xf32>
    %124 = arith.mulf %123, %123 : vector<16x128xf32>
    %cst_54 = arith.constant dense<0.000000e+00> : vector<16xf32>
    %125 = vector.multi_reduction <add>, %124, %cst_54 [1] : vector<16x128xf32> to vector<16xf32>
    %126 = vector.shape_cast %125 : vector<16xf32> to vector<16x1xf32>
    %cst_55 = arith.constant 1.280000e+02 : f32
    %127 = vector.broadcast %cst_55 : f32 to vector<16x1xf32>
    %128 = arith.divf %126, %127 : vector<16x1xf32>
    %129 = vector.broadcast %121 : vector<16x1xf32> to vector<16x128xf32>
    %130 = arith.subf %115, %129 : vector<16x128xf32>
    %cst_56 = arith.constant 9.99999974E-6 : f32
    %131 = vector.broadcast %cst_56 : f32 to vector<16x1xf32>
    %132 = arith.addf %128, %131 : vector<16x1xf32>
    %133 = math.rsqrt %132 : vector<16x1xf32>
    %134 = vector.broadcast %133 : vector<16x1xf32> to vector<16x128xf32>
    %135 = arith.mulf %130, %134 : vector<16x128xf32>
    %136 = vector.broadcast %116 : vector<1x128xf32> to vector<16x128xf32>
    %137 = arith.mulf %135, %136 : vector<16x128xf32>
    %138 = vector.broadcast %117 : vector<1x128xf32> to vector<16x128xf32>
    %139 = arith.addf %137, %138 : vector<16x128xf32>
    %140 = arith.truncf %139 : vector<16x128xf32> to vector<16x128xbf16>
    %c0_57 = arith.constant 0 : index
    %c0_58 = arith.constant 0 : index
    %141 = vector.load %arg9[%c0_57, %c0_58] : memref<128x256xbf16, #tpu.memory_space<vmem>>, vector<128x256xbf16>
    %cst_59 = arith.constant dense<0.000000e+00> : vector<16x256xf32>
    %142 = tpu.matmul %140, %141, %cst_59 {dimension_numbers = #tpu.dot_dimension_numbers<[1], [0], [0], [1], [0, 0, 1, 1], [], []>} : vector<16x128xbf16>, vector<128x256xbf16>, vector<16x256xf32> -> vector<16x256xf32>
    %c0_60 = arith.constant 0 : index
    %c0_61 = arith.constant 0 : index
    %143 = vector.load %arg10[%c0_60, %c0_61] : memref<1x256xf32, #tpu.memory_space<vmem>>, vector<1x256xf32>
    %144 = vector.broadcast %143 : vector<1x256xf32> to vector<16x256xf32>
    %145 = arith.addf %142, %144 : vector<16x256xf32>
    %cst_62 = arith.constant 5.000000e-01 : f32
    %146 = vector.broadcast %cst_62 : f32 to vector<16x256xf32>
    %147 = arith.mulf %146, %145 : vector<16x256xf32>
    %cst_63 = arith.constant 4.471500e-02 : f32
    %148 = vector.broadcast %cst_63 : f32 to vector<16x256xf32>
    %149 = arith.mulf %148, %145 : vector<16x256xf32>
    %150 = arith.mulf %149, %145 : vector<16x256xf32>
    %151 = arith.mulf %150, %145 : vector<16x256xf32>
    %152 = arith.addf %145, %151 : vector<16x256xf32>
    %cst_64 = arith.constant 0.797884583 : f32
    %153 = vector.broadcast %cst_64 : f32 to vector<16x256xf32>
    %154 = arith.mulf %153, %152 : vector<16x256xf32>
    %155 = math.tanh %154 : vector<16x256xf32>
    %cst_65 = arith.constant 1.000000e+00 : f32
    %156 = vector.broadcast %cst_65 : f32 to vector<16x256xf32>
    %157 = arith.addf %156, %155 : vector<16x256xf32>
    %158 = arith.mulf %147, %157 : vector<16x256xf32>
    %159 = arith.truncf %158 : vector<16x256xf32> to vector<16x256xbf16>
    %c0_66 = arith.constant 0 : index
    %c0_67 = arith.constant 0 : index
    %160 = vector.load %arg11[%c0_66, %c0_67] : memref<256x128xbf16, #tpu.memory_space<vmem>>, vector<256x128xbf16>
    %cst_68 = arith.constant dense<0.000000e+00> : vector<16x128xf32>
    %161 = tpu.matmul %159, %160, %cst_68 {dimension_numbers = #tpu.dot_dimension_numbers<[1], [0], [0], [1], [0, 0, 1, 1], [], []>} : vector<16x256xbf16>, vector<256x128xbf16>, vector<16x128xf32> -> vector<16x128xf32>
    %c0_69 = arith.constant 0 : index
    %c0_70 = arith.constant 0 : index
    %162 = vector.load %arg12[%c0_69, %c0_70] : memref<1x128xf32, #tpu.memory_space<vmem>>, vector<1x128xf32>
    %163 = vector.broadcast %162 : vector<1x128xf32> to vector<16x128xf32>
    %164 = arith.addf %161, %163 : vector<16x128xf32>
    %165 = arith.addf %115, %164 : vector<16x128xf32>
    %c0_71 = arith.constant 0 : index
    %c0_72 = arith.constant 0 : index
    %c0_73 = arith.constant 0 : index
    %166 = vector.load %arg13[%c0_71, %c0_72, %c0_73] : memref<1x16x128xf32, #tpu.memory_space<vmem>>, vector<1x16x128xf32>
    %167 = vector.shape_cast %166 : vector<1x16x128xf32> to vector<16x128xf32>
    %168 = vector.shape_cast %165 : vector<16x128xf32> to vector<1x16x128xf32>
    tpu.vector_store %arg13[%c0_71, %c0_72, %c0_73], %168 {strides = array<i32>} : memref<1x16x128xf32, #tpu.memory_space<vmem>>, vector<1x16x128xf32>,
    return
  }
  func.func @transform_0(%arg0: i32) -> (i32, i32, i32) {
    %c0_i32 = arith.constant 0 : i32
    %c0_i32_0 = arith.constant 0 : i32
    %c0_i32_1 = arith.constant 0 : i32
    return %arg0, %c0_i32, %c0_i32_0 : i32, i32, i32
  }
  func.func @transform_1(%arg0: i32) -> (i32, i32) {
    %c0_i32 = arith.constant 0 : i32
    %c0_i32_0 = arith.constant 0 : i32
    %c0_i32_1 = arith.constant 0 : i32
    return %c0_i32, %c0_i32_0 : i32, i32
  }
  func.func @transform_2(%arg0: i32) -> (i32, i32) {
    %c0_i32 = arith.constant 0 : i32
    %c0_i32_0 = arith.constant 0 : i32
    %c0_i32_1 = arith.constant 0 : i32
    return %c0_i32, %c0_i32_0 : i32, i32
  }
  func.func @transform_3(%arg0: i32) -> (i32, i32) {
    %c0_i32 = arith.constant 0 : i32
    %c0_i32_0 = arith.constant 0 : i32
    %c0_i32_1 = arith.constant 0 : i32
    return %c0_i32, %c0_i32_0 : i32, i32
  }
  func.func @transform_4(%arg0: i32) -> (i32, i32) {
    %c0_i32 = arith.constant 0 : i32
    %c0_i32_0 = arith.constant 0 : i32
    %c0_i32_1 = arith.constant 0 : i32
    return %c0_i32, %c0_i32_0 : i32, i32
  }
  func.func @transform_5(%arg0: i32) -> (i32, i32) {
    %c0_i32 = arith.constant 0 : i32
    %c0_i32_0 = arith.constant 0 : i32
    %c0_i32_1 = arith.constant 0 : i32
    return %c0_i32, %c0_i32_0 : i32, i32
  }
  func.func @transform_6(%arg0: i32) -> (i32, i32) {
    %c0_i32 = arith.constant 0 : i32
    %c0_i32_0 = arith.constant 0 : i32
    %c0_i32_1 = arith.constant 0 : i32
    return %c0_i32, %c0_i32_0 : i32, i32
  }
  func.func @transform_7(%arg0: i32) -> (i32, i32) {
    %c0_i32 = arith.constant 0 : i32
    %c0_i32_0 = arith.constant 0 : i32
    %c0_i32_1 = arith.constant 0 : i32
    return %c0_i32, %c0_i32_0 : i32, i32
  }
  func.func @transform_8(%arg0: i32) -> (i32, i32) {
    %c0_i32 = arith.constant 0 : i32
    %c0_i32_0 = arith.constant 0 : i32
    %c0_i32_1 = arith.constant 0 : i32
    return %c0_i32, %c0_i32_0 : i32, i32
  }
  func.func @transform_9(%arg0: i32) -> (i32, i32) {
    %c0_i32 = arith.constant 0 : i32
    %c0_i32_0 = arith.constant 0 : i32
    %c0_i32_1 = arith.constant 0 : i32
    return %c0_i32, %c0_i32_0 : i32, i32
  }
  func.func @transform_10(%arg0: i32) -> (i32, i32) {
    %c0_i32 = arith.constant 0 : i32
    %c0_i32_0 = arith.constant 0 : i32
    %c0_i32_1 = arith.constant 0 : i32
    return %c0_i32, %c0_i32_0 : i32, i32
  }
  func.func @transform_11(%arg0: i32) -> (i32, i32) {
    %c0_i32 = arith.constant 0 : i32
    %c0_i32_0 = arith.constant 0 : i32
    %c0_i32_1 = arith.constant 0 : i32
    return %c0_i32, %c0_i32_0 : i32, i32
  }
  func.func @transform_12(%arg0: i32) -> (i32, i32, i32) {
    %c0_i32 = arith.constant 0 : i32
    %c0_i32_0 = arith.constant 0 : i32
    %c0_i32_1 = arith.constant 0 : i32
    return %arg0, %c0_i32, %c0_i32_0 : i32, i32, i32
  }
}

</mosaic_0001>

<bundles_post_ra>
// kernel: tpu_custom_call.1
= control target key start
LH: loop header
LB: loop body
LE: loop exit
PB: predicated region body
PF: predicated region fallthrough
CT: control target
= control target key end

     0   :  { %s3198_s0 = inlined_call_operand.hbm [shape: f32[2,16,128], index: 0, kind: input, shape index: {}]   ;;  %s3199_s1 = inlined_call_operand.vmem [shape: f32[1,128], index: 1, kind: input, shape index: {}]   ;;  %s3200_s2 = inlined_call_operand.vmem [shape: f32[1,128], index: 2, kind: input, shape index: {}]   ;;  %s3201_s3 = inlined_call_operand.hbm [shape: bf16[128,384], index: 3, kind: input, shape index: {}]   ;;  %s3202_s4 = inlined_call_operand.hbm [shape: bf16[128,128], index: 4, kind: input, shape index: {}]   ;;  %s3203_s5 = inlined_call_operand.vmem [shape: f32[1,128], index: 5, kind: input, shape index: {}]   ;;  %s3204_s6 = inlined_call_operand.vmem [shape: f32[1,128], index: 6, kind: input, shape index: {}]   ;;  %s3205_s7 = inlined_call_operand.vmem [shape: f32[1,128], index: 7, kind: input, shape index: {}]   ;;  %s3206_s8 = inlined_call_operand.hbm [shape: bf16[128,256], index: 8, kind: input, shape index: {}]   ;;  %s3207_s9 = inlined_call_operand.vmem [shape: f32[1,256], index: 9, kind: input, shape index: {}]   ;;  %s3208_s10 = inlined_call_operand.hbm [shape: bf16[256,128], index: 10, kind: input, shape index: {}]   ;;  %s3209_s11 = inlined_call_operand.vmem [shape: f32[1,128], index: 11, kind: input, shape index: {}]   ;;  %s3210_s12 = inlined_call_operand.hbm [shape: f32[2,16,128], index: 12, kind: output, shape index: {}]  }
   0x1   :  { %3219 = sst [smem:[#allocation20_spill]] %s3201_s3 }
   0x2   :  { %3220 = sst [smem:[#allocation21_spill]] %s3207_s9 }
   0x3   :  { %3221 = sst [smem:[#allocation22_spill]] %s3209_s11 }
   0x4   :  { %3222 = sst [smem:[#allocation23_spill]] %s3210_s12 }
   0x5   :  { %17 = vsyncpa [#allocation5], 0 }
   0x6   :  { %19 = vsyncpa [#allocation5 + $0x1], 0 }
   0x7   :  { %20 = vsyncpa [#allocation8], 0 }
   0x8   :  { %21 = vsyncpa [#allocation11], 0 }
   0x9   :  { %22 = vsyncpa [#allocation6], 0 }
   0xa   :  { %24 = vsyncpa [#allocation6 + $0x1], 0  ;;  %s2755_s21 = smov 0   ;;  %s2757_s22 = smov 0  }
   0xb   :  { %s2759_s23 = smov 0   ;;  %s2761_s24 = smov 0  }
   0xc LB: > { %3223 = sst [smem:[#allocation18_spill]] %s2656_s21  ;;  %s2776_s25 = sadd.s32 4294967295, %s2668_s24   ;;  %s2668_s24 = sphi %s2761_s24, %s3253_s24   ;;  %s2664_s23 = sphi %s2759_s23, %s3252_s23   ;;  %s2660_s22 = sphi %s2757_s22, %s3251_s22   ;;  %s2656_s21 = sphi %s2755_s21, %s3250_s21  }
   0xd   : > { %s1962_s26 = sadd.s32 4294967294, %s2668_s24   ;;  %p50_p0 = scmp.ne.s32.totalorder %s2660_s22, %s2656_s21 }
   0xe   : > { %p3212_p1 = scmp.eq.s32.totalorder %s2776_s25, 0  ;;  %p311_p3 = scmp.eq.s32.totalorder %s1962_s26, 1 }
   0xf   : > { %p1963_p5 = scmp.ge.s32.totalorder %s2668_s24, 1  ;;  %p318_p7 = scmp.lt.s32.totalorder %s2668_s24, 3 }
  0x10   : > { %p2785_p4 = por %p3212_p1, %p50_p0  ;;  %p2790_p6 = por %p311_p3, %p50_p0 }
  0x11   : > { %p2795_p8 = pnand %p1963_p5, %p318_p7  ;;  %s2670_s30 = smov [#allocation7]  }
  0x12   : > { %s3224_s27 = scalar_select %p2785_p4, 1, 0 }
  0x13   : > { %s3225_s28 = scalar_select %p2790_p6, 1, 0 }
  0x14   : > { %s3227_s29 = scalar_select %p2795_p8, 1, 0 }
  0x15   : > { %3226 = sst [smem:[#allocation19_spill]] %s3225_s28  ;;  %s336_s13 = sshll.u32 %s2670_s30, 4  ;;  %s2799_s13 = int_to_ptr.vmem [resolvable:$true] %s336_s13 }
  0x16   : > { %p2228_p9 = pneg %p2795_p8  ;;  %s2671_s15 = smov [#allocation10]  }
  0x17   : > { %s371_s16 = sshll.u32 %s2671_s15, 4  ;;  %s3229_s3 = sld [smem:[#allocation20_spill]]  ;;  %s2810_s16 = int_to_ptr.vmem [resolvable:$true] %s371_s16 }
  0x18   : > { %p2806_p11 = pnand %p2228_p9, %p3212_p1 }
  0x1a   : > { %p2820_p13 = pneg %p2806_p11 }
  0x1d   : > { %s2452_s19 = scalar_lea.hbm %s3229_s3, 3072 }
  0x1e   : > { %p2453_p12 = scmp.ne.s32.totalorder %s3229_s3, %s2452_s19  ;;  %p2459_p5 = scmp.lt.u32.totalorder %s2452_s19, %s3229_s3 }
  0x20   : > { %p2455_p0 = pnand %p2820_p13, %p2453_p12 }
  0x22   : > { %p2456_p3 = pneg %p2455_p0 }
  0x24   : > { %p2461_p7 = pnand %p2459_p5, %p2456_p3 }
  0x26   : > { %2464 = shalt.err (!%p2461_p7)
}
  0x27   : > { %s2465_s17 = scalar_lea.vmem %s2799_s13, 3072  ;;  %p2473_p2 = scmp.lt.s32.totalorder %s2799_s13, %s2799_s13 }
  0x28   : > { %p2466_p9 = scmp.ne.s32.totalorder %s2799_s13, %s2465_s17  ;;  %p2474_p6 = scmp.lt.s32.totalorder %s2465_s17, %s2465_s17 }
  0x2a   : > { %p2468_p10 = pnand %p2466_p9, %p2820_p13  ;;  %p2475_p12 = por %p2474_p6, %p2473_p2 }
  0x2c   : > { %p2469_p1 = pneg %p2468_p10 }
  0x2e   : > { %p2476_p0 = pnand %p2475_p12, %p2469_p1 }
  0x30   : > { %2479 = shalt.err (!%p2476_p0)
}
  0x31   : > { %s2672_s18 = smov 192   ;;  %s2673_s28 = smov 12  }
  0x32   : > { %2231 = dma.hbm_to_vmem [thread:$0]  (!%p2806_p11), %s3229_s3, 3072, %s2799_s13, [#allocation8], %s2672_s18, %s2672_s18, %s2673_s28  }
  0x33   : > { %s2480_s21 = scalar_lea.hbm %s3206_s8, 2048 }
  0x34   : > { %p2481_p2 = scmp.ne.s32.totalorder %s3206_s8, %s2480_s21  ;;  %p2487_p10 = scmp.lt.u32.totalorder %s2480_s21, %s3206_s8 }
  0x36   : > { %p2483_p1 = pnand %p2481_p2, %p2820_p13 }
  0x38   : > { %p2484_p6 = pneg %p2483_p1 }
  0x3a   : > { %p2489_p3 = pnand %p2487_p10, %p2484_p6 }
  0x3c   : > { %2492 = shalt.err (!%p2489_p3)
}
  0x3d   : > { %s2493_s13 = scalar_lea.vmem %s2810_s16, 2048  ;;  %p2501_p12 = scmp.lt.s32.totalorder %s2810_s16, %s2810_s16 }
  0x3e   : > { %p2494_p5 = scmp.ne.s32.totalorder %s2810_s16, %s2493_s13  ;;  %p2502_p0 = scmp.lt.s32.totalorder %s2493_s13, %s2493_s13 }
  0x40   : > { %p2496_p7 = pnand %p2494_p5, %p2820_p13  ;;  %p2503_p2 = por %p2502_p0, %p2501_p12 }
  0x42   : > { %p2497_p9 = pneg %p2496_p7 }
  0x44   : > { %p2504_p1 = pnand %p2503_p2, %p2497_p9 }
  0x46   : > { %2507 = shalt.err (!%p2504_p1)
}
  0x47   : > { %s3217_s11 = smov 128   ;;  %s3218_s9 = smov 8  }
  0x48   : > { %2237 = dma.hbm_to_vmem [thread:$0]  (!%p2806_p11), %s3206_s8, 2048, %s2810_s16, [#allocation11], %s3217_s11, %s3217_s11, %s3218_s9  }
  0x49   : > { %s2676_s18 = smov [#allocation9]   ;;  %s2508_s26 = scalar_lea.hbm %s3202_s4, 1024 }
  0x4a   : > { %s349_s28 = sshll.u32 %s2676_s18, 4  ;;  %p2509_p6 = scmp.ne.s32.totalorder %s3202_s4, %s2508_s26  ;;  %s350_s28 = int_to_ptr.vmem [resolvable:$true] %s349_s28 }
  0x4b   : > { %p2515_p5 = scmp.lt.u32.totalorder %s2508_s26, %s3202_s4 }
  0x4c   : > { %p2511_p10 = pnand %p2509_p6, %p2820_p13 }
  0x4e   : > { %p2512_p3 = pneg %p2511_p10 }
  0x50   : > { %p2517_p7 = pnand %p2515_p5, %p2512_p3 }
  0x52   : > { %2520 = shalt.err (!%p2517_p7)
}
  0x53   : > { %s2521_s16 = scalar_lea.vmem %s350_s28, 1024  ;;  %p2529_p2 = scmp.lt.s32.totalorder %s350_s28, %s350_s28 }
  0x54   : > { %p2522_p9 = scmp.ne.s32.totalorder %s350_s28, %s2521_s16  ;;  %p2530_p1 = scmp.lt.s32.totalorder %s2521_s16, %s2521_s16 }
  0x56   : > { %p2524_p12 = pnand %p2522_p9, %p2820_p13  ;;  %p2531_p4 = por %p2530_p1, %p2529_p2 }
  0x58   : > { %p2525_p0 = pneg %p2524_p12 }
  0x5a   : > { %p2532_p8 = pnand %p2531_p4, %p2525_p0 }
  0x5c   : > { %2535 = shalt.err (!%p2532_p8)
}
  0x5d   : > { %s2677_s12 = smov 64   ;;  %s2678_s21 = smov 4  }
  0x5e   : > { %2234 = dma.hbm_to_vmem [thread:$0]  (!%p2806_p11), %s3202_s4, 1024, %s350_s28, [#allocation8], %s2677_s12, %s2677_s12, %s2678_s21  }
  0x5f   : > { %s2679_s19 = smov [#allocation12]   ;;  %s2536_s17 = scalar_lea.hbm %s3208_s10, 2048 }
  0x60   : > { %s387_s20 = sshll.u32 %s2679_s19, 4  ;;  %p2537_p4 = scmp.ne.s32.totalorder %s3208_s10, %s2536_s17  ;;  %s388_s20 = int_to_ptr.vmem [resolvable:$true] %s387_s20 }
  0x61   : > { %p2543_p10 = scmp.lt.u32.totalorder %s2536_s17, %s3208_s10 }
  0x62   : > { %p2539_p8 = pnand %p2537_p4, %p2820_p13 }
  0x64   : > { %p2540_p6 = pneg %p2539_p8 }
  0x66   : > { %p2545_p3 = pnand %p2543_p10, %p2540_p6 }
  0x68   : > { %2548 = shalt.err (!%p2545_p3)
}
  0x69   : > { %s2549_s28 = scalar_lea.vmem %s388_s20, 2048  ;;  %p2557_p12 = scmp.lt.s32.totalorder %s388_s20, %s388_s20 }
  0x6a   : > { %p2550_p5 = scmp.ne.s32.totalorder %s388_s20, %s2549_s28  ;;  %p2558_p0 = scmp.lt.s32.totalorder %s2549_s28, %s2549_s28 }
  0x6c   : > { %p2552_p7 = pnand %p2550_p5, %p2820_p13  ;;  %p2559_p2 = por %p2558_p0, %p2557_p12 }
  0x6e   : > { %p2553_p9 = pneg %p2552_p7 }
  0x70   : > { %p2560_p1 = pnand %p2559_p2, %p2553_p9 }
  0x72   : > { %2563 = shalt.err (!%p2560_p1)
}
  0x73   : > { %2240 = dma.hbm_to_vmem [thread:$0]  (!%p2806_p11), %s3208_s10, 2048, %s388_s20, [#allocation11], %s2677_s12, %s2677_s12, %s2678_s21  }
  0x74   : > { %s2904_s30 = sadd.s32 1, %s2668_s24   ;;  %s37_s11 = sadd.s32 1, %s2664_s23 }
  0x75   : > { %s34_s14 = ssub.s32 %s2668_s24, %s2904_s30  ;;  %p44_p13 = scmp.ne.s32.totalorder %s2664_s23, %s2660_s22 }
  0x76   : > { %p35_p4 = scmp.eq.s32.totalorder %s34_s14, 0  ;;  %p45_p8 = scmp.eq.s32.totalorder %s2668_s24, 0 }
  0x77   : > { %p3231_p6 = scmp.eq.s32.totalorder %s2776_s25, 1  ;;  %p2253_p3 = scmp.lt.s32.totalorder %s2668_s24, 2 }
  0x78   : > { %s2920_s19 = scalar_select %p35_p4, %s2664_s23, %s37_s11  }
  0x79   : > { %p2914_p10 = por %p3231_p6, %p44_p13  ;;  %p46_p5 = por %p45_p8, %p44_p13 }
  0x7a   : > { %s404_s26 = sand.u32 1, %s2664_s23   ;;  %s2062_s12 = sshll.u32 %s2668_s24, 8 }
  0x7b   : > { %s1969_s15 = sshll.u32 %s404_s26, 4  ;;  %s2927_s17 = scalar_lea.hbm %s3198_s0, %s2062_s12 }
  0x7c   : > { %s408_s13 = scalar_lea.vmem [#allocation4], %s1969_s15  ;;  %p2931_p11 = pnand %p2253_p3, %p46_p5 }
  0x7d   : > { %s415_s16 = sshll.u32 %s408_s13, 4  ;;  %s2935_s3 = scalar_lea.sflag [#allocation5], %s404_s26  ;;  %s2929_s16 = int_to_ptr.vmem [resolvable:$true] %s415_s16 }
  0x7e   : > { %s2564_s18 = scalar_lea.hbm %s2927_s17, 256  ;;  %p2566_p9 = pneg %p2931_p11 }
  0x7f   : > { %p2565_p7 = scmp.ne.s32.totalorder %s2927_s17, %s2564_s18  ;;  %s2569_s15 = scalar_lea.hbm %s3198_s0, 512 }
  0x80   : > { %p2570_p2 = scmp.lt.u32.totalorder %s2927_s17, %s3198_s0  ;;  %p2571_p1 = scmp.lt.u32.totalorder %s2569_s15, %s2564_s18 }
  0x81   : > { %p2567_p12 = pnand %p2566_p9, %p2565_p7  ;;  %p2573_p4 = scmp.lt.u32.totalorder %s2564_s18, %s2927_s17 }
  0x82   : > { %p2572_p13 = por %p2571_p1, %p2570_p2 }
  0x83   : > { %p2568_p0 = pneg %p2567_p12 }
  0x84   : > { %p2574_p8 = por %p2573_p4, %p2572_p13 }
  0x86   : > { %p2575_p6 = pnand %p2574_p8, %p2568_p0 }
  0x88   : > { %2578 = shalt.err (!%p2575_p6)
}
  0x89   : > { %s2579_s26 = scalar_lea.vmem %s2929_s16, 256  ;;  %s2680_s20 = smov [#allocation4]  }
  0x8a   : > { %p2580_p3 = scmp.ne.s32.totalorder %s2929_s16, %s2579_s26  ;;  %s2584_s13 = sshll.u32 %s2680_s20, 4  ;;  %s2585_s13 = int_to_ptr.vmem [resolvable:$false] %s2584_s13 }
  0x8b   : > { %s2586_s11 = scalar_lea.vmem %s2585_s13, 512  ;;  %p2587_p12 = scmp.lt.s32.totalorder %s2929_s16, %s2585_s13 }
  0x8c   : > { %p2582_p5 = pnand %p2580_p3, %p2566_p9  ;;  %p2588_p2 = scmp.lt.s32.totalorder %s2586_s11, %s2579_s26 }
  0x8e   : > { %p2583_p7 = pneg %p2582_p5  ;;  %p2589_p1 = por %p2588_p2, %p2587_p12 }
  0x90   : > { %p2590_p13 = pnand %p2589_p1, %p2583_p7 }
  0x92   : > { %2593 = shalt.err (!%p2590_p13)
}
  0x93   : > { %s3234_s18 = smov 8   ;;  %s3235_s14 = smov 128  }
  0x94   : > { %2244 = dma.hbm_to_vmem [thread:$0]  (!%p2931_p11), %s2927_s17, 256, %s2929_s16, %s2935_s3, %s3235_s14, %s3235_s14, %s3234_s18  }
  0x95   : > { %p3236_p9 = scmp.ne.s32.totalorder %s3227_s29, 0 }
  0x96   : > { %s2969_s15 = sand.u32 (!%p3236_p9), 1, %s2660_s22   ;;  %p3237_p0 = scmp.ne.s32.totalorder (!%p3236_p9), %s3224_s27, 0 }
  0x97   : > { %427 = sbr.rel (%p3236_p9) target bundleno = 2838 (0xb16), region = 68  ;;  %s1973_s12 = sshll.u32 (!%p3236_p9), %s2969_s15, 4 }
  0x98   : > { %s430_s21 = scalar_lea.sflag (!%p3236_p9), [#allocation5], %s2969_s15  ;;  %s433_s28 = scalar_lea.vmem (!%p3236_p9), [#allocation4], %s1973_s12 }
  0x9e   : > { %2639 = dma.done.wait (%p3237_p0), %s430_s21, 256  }
  0x9f   : > { %2641 = vsyncadd (%p3237_p0), %s430_s21, 4294967040  ;;  %p3238_p11 = scmp.eq.s32.totalorder %s2776_s25, 0 }
  0xa1   : > { %2643 = dma.done.wait (%p3238_p11), [#allocation8], 4096   ;;  %p3239_p4 = pmov %p3238_p11 }
  0xa3   : > { %2645 = vsyncadd (%p3239_p4), [#allocation8], 4294963200  ;;  %p3240_p8 = pmov %p3239_p4 }
  0xa4   : > { %p3241_p6 = pmov %p3239_p4 }
  0xa5   : > { %2647 = dma.done.wait (%p3240_p8), [#allocation11], 4096  }
  0xa6   : > { %2649 = vsyncadd (%p3241_p6), [#allocation11], 4294963200  ;;  %v2987_v0 = vld [vmem:[%s433_s28] sm:$0xff]  ;;  %v2989_v1 = vld [vmem:[%s433_s28 + $0x8] sm:$0xff]  ;;  %v2681_v4 = vmov 0.0   ;;  %v2682_v30 = vmov 0  }
  0xa7   : > { %495 = vadd.xlane.f32.xlu0 %v2987_v0  ;;  %v2324_v2 = vld [vmem:[#allocation7 + $0x4] ss:$12 sps:$4 sm:$0xff]   ;;  %v2326_v3 = vld [vmem:[#allocation7] ss:$12 sps:$4 sm:$0xff]   ;;  %2120 = vmatprep.subr.bf16.mxu1 %v2681_v4  ;;  %v2327_v5 = vld [vmem:[#allocation7 + $0x8] ss:$12 sps:$4 sm:$0xff]  }
  0xa8   : > { %v2328_v6 = vld [vmem:[#allocation7 + $0x1c] ss:$12 sps:$4 sm:$0xff]   ;;  %695 = vmatprep.subr.bf16.mxu0 %v2324_v2  ;;  %2121 = vmatpush3.bf16.msra.mxu1 %v2327_v5  ;;  %v2330_v15 = vld [vmem:[#allocation7 + $0x18] ss:$12 sps:$4 sm:$0xff]   ;;  %v2331_v16 = vld [vmem:[#allocation7 + $0x20] ss:$12 sps:$4 sm:$0xff]  }
  0xa9   : > { %696 = vmatpush1.bf16.msra.mxu0 %v2326_v3  ;;  %2122 = vmatprep.subr.bf16.mxu1 %v2681_v4  ;;  %v2332_v17 = vld [vmem:[#allocation7 + $0x34] ss:$12 sps:$4 sm:$0xff]   ;;  %v2334_v18 = vld [vmem:[#allocation7 + $0x30] ss:$12 sps:$4 sm:$0xff]   ;;  %v2335_v19 = vld [vmem:[#allocation7 + $0x38] ss:$12 sps:$4 sm:$0xff]  }
  0xaa   : > { %697 = vmatprep.subr.bf16.mxu0 %v2328_v6  ;;  %v2336_v20 = vld [vmem:[#allocation7 + $0x4c] ss:$12 sps:$4 sm:$0xff]   ;;  %v2338_v21 = vld [vmem:[#allocation7 + $0x48] ss:$12 sps:$4 sm:$0xff]   ;;  %v2339_v22 = vld [vmem:[#allocation7 + $0x50] ss:$12 sps:$4 sm:$0xff]   ;;  %727 = vmatprep.mubr.bf16.mxu0 %v2682_v30 }
  0xab   : > { %497 = vadd.xlane.f32.xlu0 %v2989_v1  ;;  %v2340_v23 = vld [vmem:[#allocation7 + $0x64] ss:$12 sps:$4 sm:$0xff]   ;;  %v2342_v24 = vld [vmem:[#allocation7 + $0x60] ss:$12 sps:$4 sm:$0xff]   ;;  %v2343_v25 = vld [vmem:[#allocation7 + $0x68] ss:$12 sps:$4 sm:$0xff]  }
  0xac   : > { %2123 = vmatpush3.bf16.msra.mxu1 %v2331_v16  ;;  %v2344_v26 = vld [vmem:[#allocation7 + $0x7c] ss:$12 sps:$4 sm:$0xff]   ;;  %v2346_v27 = vld [vmem:[#allocation7 + $0x78] ss:$12 sps:$4 sm:$0xff]   ;;  %v2347_v28 = vld [vmem:[#allocation7 + $0x80] ss:$12 sps:$4 sm:$0xff]  }
  0xad   : > { %698 = vmatpush1.bf16.msra.mxu0 %v2330_v15  ;;  %2124 = vmatprep.subr.bf16.mxu1 %v2681_v4  ;;  %v2348_v29 = vld [vmem:[#allocation7 + $0x94] ss:$12 sps:$4 sm:$0xff]   ;;  %vm2683_vm0 = vmmov 0   ;;  %v2350_v31 = vld [vmem:[#allocation7 + $0x90] ss:$12 sps:$4 sm:$0xff]   ;;  %vm788_vm1 = vcmask 261120  }
  0xae   : > { %699 = vmatprep.subr.bf16.mxu0 %v2332_v17  ;;  %2136 = vmatprep.mubr.msk.bf16.mxu1 %vm2683_vm0, %v2681_v4  ;;  %v2351_v32 = vld [vmem:[#allocation7 + $0x98] ss:$12 sps:$4 sm:$0xff]   ;;  %v2354_v34 = vld [vmem:[#allocation7 + $0xa8] ss:$12 sps:$4 sm:$0xff]   ;;  %v2355_v35 = vld [vmem:[#allocation7 + $0xb0] ss:$12 sps:$4 sm:$0xff]  }
  0xaf   : > { %v2352_v33 = vld [vmem:[#allocation7 + $0xac] ss:$12 sps:$4 sm:$0xff]   ;;  %v1979_v44 = vld [vmem:[%s3199_s1] ss:$0 sm:$0xff]  ;;  %vm838_vm2 = vcmask 130048   ;;  %s2684_s3 = smov 96  }
  0xb0   : > { %2125 = vmatpush3.bf16.msra.mxu1 %v2335_v19  ;;  %v1980_v48 = vld [vmem:[%s3200_s2] ss:$0 sm:$0xff]  ;;  %s2685_s26 = smov 64   ;;  %s2686_s20 = smov 32   ;;  %vm1304_vm3 = vcmask 523264   ;;  %vm1307_vm4 = vcmask 785408  }
  0xb1   : > { %700 = vmatpush1.bf16.msra.mxu0 %v2334_v18  ;;  %2126 = vmatprep.subr.bf16.mxu1 %v2681_v4  ;;  %s3242_s17 = sld [smem:[#allocation21_spill]]  ;;  %s2063_s11 = sshll.u32 %s2776_s25, 8 }
  0xb2   : > { %701 = vmatprep.subr.bf16.mxu0 %v2336_v20  ;;  %s3244_s21 = sld [smem:[#allocation23_spill]]  ;;  %s2687_s25 = smov [#allocation13]  }
  0xb4   : > { %2127 = vmatpush3.bf16.msra.mxu1 %v2339_v22 }
  0xb5   : > { %702 = vmatpush1.bf16.msra.mxu0 %v2338_v21  ;;  %2128 = vmatprep.subr.bf16.mxu1 %v2681_v4 }
  0xb6   : > { %703 = vmatprep.subr.bf16.mxu0 %v2340_v23 }
  0xb8   : > { %2129 = vmatpush3.bf16.msra.mxu1 %v2343_v25  ;;  %s3245_s28 = smov %s3244_s21  ;;  %s3153_s27 = scalar_lea.hbm %s3244_s21, %s2063_s11 }
  0xb9   : > { %704 = vmatpush1.bf16.msra.mxu0 %v2342_v24  ;;  %2130 = vmatprep.subr.bf16.mxu1 %v2681_v4 }
  0xba   : > { %705 = vmatprep.subr.bf16.mxu0 %v2344_v26 }
  0xbc   : > { %2131 = vmatpush3.bf16.msra.mxu1 %v2347_v28 }
  0xbd   : > { %706 = vmatpush1.bf16.msra.mxu0 %v2346_v27  ;;  %2132 = vmatprep.subr.bf16.mxu1 %v2681_v4 }
  0xbe   : > { %707 = vmatprep.subr.bf16.mxu0 %v2348_v29 }
  0xc0   : > { %2133 = vmatpush3.bf16.msra.mxu1 %v2351_v32 }
  0xc1   : > { %708 = vmatpush1.bf16.msra.mxu0 %v2350_v31  ;;  %2134 = vmatprep.subr.bf16.mxu1 %v2681_v4 }
  0xc2   : > { %709 = vmatprep.subr.bf16.mxu0 %v2352_v33 }
  0xc4   : > { %2135 = vmatpush3.bf16.msra.mxu1 %v2355_v35 }
  0xc5   : > { %710 = vmatpush1.bf16.msra.mxu0 %v2354_v34  ;;  %2140 = vmatprep.subr.bf16.mxu1 %v2681_v4 }
  0xc6   : > { %2164 = vmatprep.subr.bf16.mxu0 %v2681_v4 }
 0x134   : > { %v496_v7 = vpop.xlane.xlu0 %495 }
 0x135   : > { %v500_v8 = vmul.f32 0.0078125, %v496_v7 }
 0x137   : > { %v2996_v9 = vsub.f32 %v2987_v0, %v500_v8 }
 0x138   : > { %v498_v10 = vpop.xlane.xlu0 %497 }
 0x139   : > { %v501_v11 = vmul.f32 0.0078125, %v498_v10  ;;  %v504_v12 = vmul.f32 %v2996_v9, %v2996_v9 }
 0x13b   : > { %v3001_v13 = vsub.f32 %v2989_v1, %v501_v11  ;;  %506 = vadd.xlane.f32.xlu1 %v504_v12 }
 0x13d   : > { %v505_v14 = vmul.f32 %v3001_v13, %v3001_v13 }
 0x13f   : > { %508 = vadd.xlane.f32.xlu1 %v505_v14 }
 0x1c8   : > { %v507_v36 = vpop.xlane.xlu1 %506 }
 0x1c9   : > { %v510_v37 = vmul.f32 0.0078125, %v507_v36 }
 0x1cb   : > { %v512_v38 = vadd.f32 1e-05, %v510_v37 }
 0x1cc   : > { %v509_v39 = vpop.xlane.xlu1 %508 }
 0x1cd   : > { %2404 = vrsqrt.f32 %v512_v38  ;;  %v511_v40 = vmul.f32 0.0078125, %v509_v39 }
 0x1cf   : > { %v513_v41 = vadd.f32 1e-05, %v511_v40 }
 0x1d1   : > { %2406 = vrsqrt.f32 %v513_v41 }
 0x1d7   : > { %v2405_v42 = vpop.eup %2404 }
 0x1d8   : > { %v516_v43 = vmul.f32 %v2405_v42, %v2996_v9 }
 0x1da   : > { %v524_v47 = vmul.f32 %v1979_v44, %v516_v43 }
 0x1db   : > { %v2407_v45 = vpop.eup %2406 }
 0x1dc   : > { %v517_v46 = vmul.f32 %v2407_v45, %v3001_v13  ;;  %v532_v50 = vadd.f32 %v1980_v48, %v524_v47 }
 0x1de   : > { %v525_v49 = vmul.f32 %v1979_v44, %v517_v46 }
 0x1e0   : > { %v533_v51 = vadd.f32 %v1980_v48, %v525_v49 }
 0x1e2   : > { %v534_v52 = vpack.c.bf16 %v533_v51, %v532_v50 }
 0x1e4   : > { %728 = vmatmul.mubr.bf16.vlgmr.msra.gmra.mrb[0].mxu0 %v534_v52  ;;  %2137 = vmatmul.mubr.bf16.vlgmr.msra.gmra.mrb[0].mxu1 %v534_v52 }
 0x1e5   : > { %2142 = vmatprep.mubr.msk.bf16.mxu1 %vm2683_vm0, %v2681_v4  ;;  %2166 = vmatprep.mubr.msk.bf16.mxu0 %vm2683_vm0, %v2681_v4 }
 0x2b7   : > { %v729_v53 = vpop.f32.mrb[0].mxu0  ;;  %v772_v54 = vpop.f32.mrb[0].mxu1 }
 0x2b8   : > { %v731_v55 = vpop.f32.mrb[1].mxu0  ;;  %v2138_v56 = vpop.f32.mrb[1].mxu1 }
 0x2b9   : > { %v733_v57 = vpop.f32.mrb[2].mxu0  ;;  %v775_v58 = vpop.f32.mrb[2].mxu1 }
 0x2ba   : > { %v779_v59 = vpack.c.bf16 %v733_v57, %v729_v53  ;;  %v3028_v60 = vpack.c.bf16 %v775_v58, %v772_v54  ;;  %v735_v61 = vpop.f32.mrb[3].mxu0  ;;  %v2139_v62 = vpop.f32.mrb[3].mxu1 }
 0x2bb   : > { %v780_v63 = vpack.c.bf16 %v735_v61, %v731_v55 }
 0x2bd   : > { %v793_v2 = vsel %vm788_vm1, %v780_v63, 0 }
 0x2be   : > { %2141 = vmatpush3.bf16.xpose.msra.mxu1 %v793_v2 }
 0x2bf   : > { %2146 = vmatprep.subr.bf16.mxu1 %v2681_v4 }
 0x2c5   : > { %2143 = vmatmul.mubr.msk.bf16.vlgmr.msra.gmra.mrb[4].mxu1 %vm788_vm1, %v779_v59 }
 0x2c6   : > { %2147 = vmatpush3.bf16.msra.mxu1 %v3028_v60  ;;  %2148 = vmatprep.mubr.msk.bf16.mxu1 %vm2683_vm0, %v2681_v4 }
 0x2c7   : > { %2152 = vmatprep.subr.bf16.mxu1 %v2681_v4 }
 0x398   : > { %v829_v3 = vpop.f32.mrb[4].mxu1 }
 0x399   : > { %v836_v5 = vmul.f32 0.17677669, %v829_v3  ;;  %v2144_v6 = vpop.f32.mrb[5].mxu1 }
 0x39a   : > { %v832_v7 = vpop.f32.mrb[6].mxu1 }
 0x39b   : > { %v837_v8 = vmul.f32 0.17677669, %v832_v7  ;;  %v2145_v9 = vpop.f32.mrb[7].mxu1  ;;  %v839_v10 = vsel %vm838_vm2, %v836_v5, -inf }
 0x39c   : > { %840 = vmax.xlane.f32.xlu0 %v839_v10 }
 0x39d   : > { %v842_v11 = vsel %vm838_vm2, %v837_v8, -inf }
 0x39e   : > { %843 = vmax.xlane.f32.xlu1 %v842_v11 }
 0x3af   : > { %907 = vrot.lane.b32.xlu1 %v779_v59, %s2684_s3 }
 0x3b2   : > { %910 = vrot.lane.b32.xlu0 %v780_v63, %s2684_s3 }
 0x3b3   : > { %1034 = vrot.lane.b32.xlu1 %v780_v63, %s2685_s26 }
 0x3b6   : > { %1157 = vrot.lane.b32.xlu0 %v780_v63, %s2686_s20 }
 0x3b7   : > { %1032 = vrot.lane.b32.xlu1 %v779_v59, %s2685_s26 }
 0x3bb   : > { %1155 = vrot.lane.b32.xlu1 %v779_v59, %s2686_s20 }
 0x429   : > { %v841_v12 = vpop.xlane.xlu0 %840 }
 0x42a   : > { %v845_v13 = vsub.f32 %v836_v5, %v841_v12 }
 0x42b   : > { %v844_v14 = vpop.xlane.xlu1 %843 }
 0x42c   : > { %v847_v15 = vmul.f32 1.442695, %v845_v13  ;;  %v846_v16 = vsub.f32 %v837_v8, %v844_v14 }
 0x42d   : > { %v911_v19 = vpop.permute.xlu0 %910 }
 0x42e   : > { %v849_v17 = vmul.f32 1.442695, %v846_v16  ;;  %2408 = vpow2.f32 %v847_v15  ;;  %v916_v28 = vsel %vm788_vm1, %v911_v19, 0 }
 0x42f   : > { %v908_v18 = vpop.permute.xlu1 %907 }
 0x430   : > { %2410 = vpow2.f32 %v849_v17 }
 0x431   : > { %v1158_v23 = vpop.permute.xlu0 %1157 }
 0x432   : > { %v1163_v27 = vsel %vm788_vm1, %v1158_v23, 0 }
 0x433   : > { %v1035_v20 = vpop.permute.xlu1 %1034 }
 0x434   : > { %v1040_v21 = vsel %vm788_vm1, %v1035_v20, 0 }
 0x435   : > { %2165 = vmatpush3.bf16.xpose.msra.mxu0 %v1040_v21 }
 0x436   : > { %2176 = vmatprep.subr.bf16.mxu0 %v2681_v4 }
 0x437   : > { %v1033_v25 = vpop.permute.xlu1 %1032 }
 0x438   : > { %v3047_v22 = vpop.eup %2408 }
 0x43a   : > { %v3049_v24 = vpop.eup %2410 }
 0x43b   : > { %v857_v26 = vpack.c.bf16 %v3049_v24, %v3047_v22  ;;  %v1156_v29 = vpop.permute.xlu1 %1155 }
 0x43c   : > { %2167 = vmatmul.mubr.msk.bf16.vlgmr.msra.gmra.mrb[4].mxu0 %vm788_vm1, %v1033_v25 }
 0x43d   : > { %2149 = vmatmul.mubr.msk.bf16.vlgmr.msra.gmra.mrb[8].mxu1 %vm838_vm2, %v857_v26  ;;  %2177 = vmatpush3.bf16.xpose.msra.mxu0 %v1163_v27 }
 0x43e   : > { %2153 = vmatpush3.bf16.xpose.msra.mxu1 %v916_v28  ;;  %2178 = vmatprep.mubr.msk.bf16.mxu0 %vm2683_vm0, %v2681_v4 }
 0x43f   : > { %2154 = vmatprep.mubr.msk.bf16.mxu1 %vm2683_vm0, %v2681_v4  ;;  %2158 = vmatprep.subr.bf16.mxu1 %v2681_v4 }
 0x440   : > { %2188 = vmatprep.subr.bf16.mxu0 %v2681_v4 }
 0x444   : > { %2179 = vmatmul.mubr.msk.bf16.vlgmr.msra.gmra.mrb[8].mxu0 %vm788_vm1, %v1156_v29 }
 0x445   : > { %2155 = vmatmul.mubr.msk.bf16.vlgmr.msra.gmra.mrb[12].mxu1 %vm788_vm1, %v908_v18  ;;  %2204 = vmatprep.mubr.msk.bf16.mxu0 %vm2683_vm0, %v2681_v4 }
 0x446   : > { %2160 = vmatprep.mubr.msk.bf16.mxu1 %vm2683_vm0, %v2681_v4 }
 0x50f   : > { %v1076_v31 = vpop.f32.mrb[4].mxu0 }
 0x510   : > { %v1083_v32 = vmul.f32 0.17677669, %v1076_v31  ;;  %v3069_v33 = vpop.f32.mrb[8].mxu1  ;;  %v2168_v34 = vpop.f32.mrb[5].mxu0 }
 0x511   : > { %v2150_v35 = vpop.f32.mrb[9].mxu1  ;;  %v1079_v36 = vpop.f32.mrb[6].mxu0 }
 0x512   : > { %v1084_v37 = vmul.f32 0.17677669, %v1079_v36  ;;  %v3071_v38 = vpop.f32.mrb[10].mxu1  ;;  %v2169_v39 = vpop.f32.mrb[7].mxu0  ;;  %v1085_v40 = vsel %vm838_vm2, %v1083_v32, -inf  ;;  %v851_v35 = vsel %vm838_vm2, %v3047_v22, 0.0 }
 0x513   : > { %1086 = vmax.xlane.f32.xlu0 %v1085_v40  ;;  %v2151_v41 = vpop.f32.mrb[11].mxu1  ;;  %v854_v36 = vsel %vm838_vm2, %v3049_v24, 0.0  ;;  %v2357_v22 = vld [vmem:[#allocation9 + $0x8] sm:$0xff]   ;;  %v2358_v24 = vld [vmem:[#allocation9 + $0x10] sm:$0xff]  }
 0x514   : > { %v1088_v42 = vsel %vm838_vm2, %v1084_v37, -inf  ;;  %v2356_v41 = vld [vmem:[#allocation9] sm:$0xff]  }
 0x515   : > { %2189 = vmatpush3.bf16.msra.mxu0 %v2356_v41 }
 0x516   : > { %2190 = vmatprep.subr.bf16.mxu0 %v2681_v4 }
 0x517   : > { %1089 = vmax.xlane.f32.xlu0 %v1088_v42  ;;  %v1199_v43 = vpop.f32.mrb[8].mxu0 }
 0x518   : > { %v1206_v44 = vmul.f32 0.17677669, %v1199_v43  ;;  %v952_v45 = vpop.f32.mrb[12].mxu1  ;;  %v2180_v46 = vpop.f32.mrb[9].mxu0 }
 0x519   : > { %v959_v47 = vmul.f32 0.17677669, %v952_v45  ;;  %v2156_v48 = vpop.f32.mrb[13].mxu1  ;;  %v1202_v49 = vpop.f32.mrb[10].mxu0  ;;  %2191 = vmatpush3.bf16.msra.mxu0 %v2357_v22  ;;  %v2359_v46 = vld [vmem:[#allocation9 + $0x18] sm:$0xff]  }
 0x51a   : > { %v1207_v50 = vmul.f32 0.17677669, %v1202_v49  ;;  %v955_v51 = vpop.f32.mrb[14].mxu1  ;;  %v2181_v52 = vpop.f32.mrb[11].mxu0  ;;  %v1208_v53 = vsel %vm838_vm2, %v1206_v44, -inf  ;;  %2192 = vmatprep.subr.bf16.mxu0 %v2681_v4 }
 0x51b   : > { %1209 = vmax.xlane.f32.xlu0 %v1208_v53  ;;  %v2157_v54 = vpop.f32.mrb[15].mxu1  ;;  %v960_v55 = vmul.f32 0.17677669, %v955_v51  ;;  %v961_v57 = vsel %vm838_vm2, %v959_v47, -inf }
 0x51c   : > { %v1211_v56 = vsel %vm838_vm2, %v1207_v50, -inf }
 0x51d   : > { %1212 = vmax.xlane.f32.xlu1 %v1211_v56  ;;  %v964_v58 = vsel %vm838_vm2, %v960_v55, -inf  ;;  %2193 = vmatpush3.bf16.msra.mxu0 %v2358_v24 }
 0x51e   : > { %2194 = vmatprep.subr.bf16.mxu0 %v2681_v4 }
 0x51f   : > { %962 = vmax.xlane.f32.xlu0 %v961_v57 }
 0x521   : > { %965 = vmax.xlane.f32.xlu1 %v964_v58  ;;  %2195 = vmatpush3.bf16.msra.mxu0 %v2359_v46 }
 0x522   : > { %2196 = vmatprep.subr.bf16.mxu0 %v2681_v4 }
 0x532   : > { %1104 = vrot.lane.b32.xlu1 %v3028_v60, %s2685_s26 }
 0x535   : > { %981 = vrot.lane.b32.xlu0 %v3028_v60, %s2684_s3 }
 0x536   : > { %1227 = vrot.lane.b32.xlu1 %v3028_v60, %s2686_s20 }
 0x5a0   : > { %v1087_v59 = vpop.xlane.xlu0 %1086 }
 0x5a1   : > { %v1091_v61 = vsub.f32 %v1083_v32, %v1087_v59  ;;  %v2362_v59 = vld [vmem:[#allocation9 + $0x30] sm:$0xff]  }
 0x5a3   : > { %v1093_v62 = vmul.f32 1.442695, %v1091_v61 }
 0x5a4   : > { %v1090_v63 = vpop.xlane.xlu0 %1089 }
 0x5a5   : > { %2412 = vpow2.f32 %v1093_v62  ;;  %v1092_v2 = vsub.f32 %v1084_v37, %v1090_v63 }
 0x5a7   : > { %v1095_v3 = vmul.f32 1.442695, %v1092_v2 }
 0x5a8   : > { %v1210_v5 = vpop.xlane.xlu0 %1209 }
 0x5a9   : > { %2414 = vpow2.f32 %v1095_v3  ;;  %v1214_v6 = vsub.f32 %v1206_v44, %v1210_v5 }
 0x5aa   : > { %v1213_v7 = vpop.xlane.xlu1 %1212 }
 0x5ab   : > { %v1215_v9 = vsub.f32 %v1207_v50, %v1213_v7  ;;  %v1216_v11 = vmul.f32 1.442695, %v1214_v6 }
 0x5ac   : > { %v963_v8 = vpop.xlane.xlu0 %962 }
 0x5ad   : > { %v967_v10 = vsub.f32 %v959_v47, %v963_v8  ;;  %v1218_v17 = vmul.f32 1.442695, %v1215_v9  ;;  %v2363_v8 = vld [vmem:[#allocation9 + $0x38] sm:$0xff]  }
 0x5ae   : > { %v966_v12 = vpop.xlane.xlu1 %965 }
 0x5af   : > { %v2413_v13 = vpop.eup %2412  ;;  %v969_v14 = vmul.f32 1.442695, %v967_v10  ;;  %v968_v15 = vsub.f32 %v960_v55, %v966_v12  ;;  %v2361_v55 = vld [vmem:[#allocation9 + $0x28] sm:$0xff]  }
 0x5b0   : > { %v982_v60 = vpop.permute.xlu0 %981  ;;  %v1097_v16 = vsel %vm838_vm2, %v2413_v13, 0.0 }
 0x5b1   : > { %2416 = vpow2.f32 %v969_v14  ;;  %v971_v18 = vmul.f32 1.442695, %v968_v15  ;;  %1098 = vadd.xlane.f32.xlu0 %v1097_v16  ;;  %2159 = vmatpush3.bf16.msra.mxu1 %v982_v60 }
 0x5b2   : > { %2418 = vpow2.f32 %v1216_v11  ;;  %2170 = vmatprep.subr.bf16.mxu1 %v2681_v4  ;;  %v1105_v31 = vpop.permute.xlu1 %1104 }
 0x5b3   : > { %v2415_v19 = vpop.eup %2414  ;;  %2420 = vpow2.f32 %v971_v18 }
 0x5b4   : > { %v1100_v20 = vsel %vm838_vm2, %v2415_v19, 0.0  ;;  %2422 = vpow2.f32 %v1218_v17  ;;  %v1103_v37 = vpack.c.bf16 %v2415_v19, %v2413_v13 }
 0x5b5   : > { %1101 = vadd.xlane.f32.xlu0 %v1100_v20 }
 0x5b6   : > { %v1228_v39 = vpop.permute.xlu1 %1227 }
 0x5bb   : > { %v2417_v21 = vpop.eup %2416 }
 0x5bc   : > { %v2419_v23 = vpop.eup %2418  ;;  %v973_v25 = vsel %vm838_vm2, %v2417_v21, 0.0 }
 0x5bd   : > { %v2421_v26 = vpop.eup %2420  ;;  %974 = vadd.xlane.f32.xlu1 %v973_v25  ;;  %v1220_v32 = vsel %vm838_vm2, %v2419_v23, 0.0 }
 0x5be   : > { %v976_v27 = vsel %vm838_vm2, %v2421_v26, 0.0  ;;  %v979_v28 = vpack.c.bf16 %v2421_v26, %v2417_v21  ;;  %v2423_v29 = vpop.eup %2422 }
 0x5bf   : > { %977 = vadd.xlane.f32.xlu0 %v976_v27  ;;  %v1223_v34 = vsel %vm838_vm2, %v2423_v29, 0.0  ;;  %v1226_v40 = vpack.c.bf16 %v2423_v29, %v2419_v23 }
 0x5c0   : > { %2161 = vmatmul.mubr.msk.bf16.vlgmr.msra.gmra.mrb[16].mxu1 %vm838_vm2, %v979_v28 }
 0x5c1   : > { %2171 = vmatpush3.bf16.msra.mxu1 %v1105_v31  ;;  %1221 = vadd.xlane.f32.xlu1 %v1220_v32 }
 0x5c2   : > { %2172 = vmatprep.mubr.msk.bf16.mxu1 %vm2683_vm0, %v2681_v4  ;;  %2182 = vmatprep.subr.bf16.mxu1 %v2681_v4 }
 0x5c3   : > { %1224 = vadd.xlane.f32.xlu0 %v1223_v34 }
 0x5c5   : > { %852 = vadd.xlane.f32.xlu1 %v851_v35 }
 0x5c7   : > { %855 = vadd.xlane.f32.xlu0 %v854_v36 }
 0x5c8   : > { %2173 = vmatmul.mubr.msk.bf16.vlgmr.msra.gmra.mrb[20].mxu1 %vm838_vm2, %v1103_v37 }
 0x5c9   : > { %2183 = vmatpush3.bf16.msra.mxu1 %v1228_v39  ;;  %2184 = vmatprep.mubr.msk.bf16.mxu1 %vm2683_vm0, %v2681_v4 }
 0x5d0   : > { %2185 = vmatmul.mubr.msk.bf16.vlgmr.msra.gmra.mrb[24].mxu1 %vm838_vm2, %v1226_v40 }
 0x5d1   : > { %1608 = vmatprep.mubr.bf16.mxu1 %v2682_v30  ;;  %v2360_v30 = vld [vmem:[#allocation9 + $0x20] sm:$0xff]  }
 0x5d2   : > { %2197 = vmatpush3.bf16.msra.mxu0 %v2360_v30 }
 0x5d3   : > { %2198 = vmatprep.subr.bf16.mxu0 %v2681_v4 }
 0x5d6   : > { %2199 = vmatpush3.bf16.msra.mxu0 %v2361_v55 }
 0x5d7   : > { %2200 = vmatprep.subr.bf16.mxu0 %v2681_v4 }
 0x5da   : > { %2201 = vmatpush3.bf16.msra.mxu0 %v2362_v59  ;;  %v2370_v59 = vld [vmem:[#allocation10 + $0x20] ss:$8 sps:$4 sm:$0xff]  }
 0x5db   : > { %2202 = vmatprep.subr.bf16.mxu0 %v2681_v4 }
 0x5de   : > { %2203 = vmatpush3.bf16.msra.mxu0 %v2363_v8  ;;  %v2387_v8 = vld [vmem:[#allocation10 + $0x74] ss:$8 sps:$4 sm:$0xff]  }
 0x63e   : > { %v1099_v42 = vpop.xlane.xlu0 %1098 }
 0x642   : > { %v1102_v43 = vpop.xlane.xlu0 %1101 }
 0x64a   : > { %v975_v44 = vpop.xlane.xlu1 %974 }
 0x64b   : > { %2424 = vrcp.f32 %v975_v44 }
 0x64c   : > { %v978_v45 = vpop.xlane.xlu0 %977 }
 0x64d   : > { %2426 = vrcp.f32 %v978_v45 }
 0x64e   : > { %2428 = vrcp.f32 %v1099_v42  ;;  %v1222_v56 = vpop.xlane.xlu1 %1221 }
 0x64f   : > { %2430 = vrcp.f32 %v1102_v43 }
 0x650   : > { %v1225_v57 = vpop.xlane.xlu0 %1224  ;;  %2432 = vrcp.f32 %v1222_v56 }
 0x651   : > { %2434 = vrcp.f32 %v1225_v57 }
 0x652   : > { %v853_v4 = vpop.xlane.xlu1 %852 }
 0x653   : > { %2436 = vrcp.f32 %v853_v4 }
 0x654   : > { %v856_v18 = vpop.xlane.xlu0 %855 }
 0x655   : > { %v2425_v48 = vpop.eup %2424  ;;  %2438 = vrcp.f32 %v856_v18 }
 0x657   : > { %v2427_v50 = vpop.eup %2426 }
 0x658   : > { %v2429_v62 = vpop.eup %2428 }
 0x659   : > { %v2431_v2 = vpop.eup %2430 }
 0x65a   : > { %v2433_v11 = vpop.eup %2432 }
 0x65b   : > { %v2435_v13 = vpop.eup %2434 }
 0x65d   : > { %v2437_v20 = vpop.eup %2436 }
 0x65e   : > { %v904_v29 = vmul.f32 %v2437_v20, %v3069_v33  ;;  %v2013_v33 = vld [vmem:[%s3203_s5] ss:$0 sm:$0xff] }
 0x65f   : > { %v2439_v23 = vpop.eup %2438  ;;  %v2023_v20 = vld [vmem:[%s3205_s7] ss:$0 sm:$0xff] }
 0x660   : > { %v905_v31 = vmul.f32 %v2439_v23, %v3071_v38 }
 0x693   : > { %v1021_v47 = vpop.f32.mrb[16].mxu1 }
 0x694   : > { %v2162_v49 = vpop.f32.mrb[17].mxu1  ;;  %v1030_v52 = vmul.f32 %v2425_v48, %v1021_v47  ;;  %v2364_v48 = vld [vmem:[#allocation10] ss:$8 sps:$4 sm:$0xff]  }
 0x695   : > { %v1024_v51 = vpop.f32.mrb[18].mxu1  ;;  %v2366_v49 = vld [vmem:[#allocation10 + $0x4] ss:$8 sps:$4 sm:$0xff]  }
 0x696   : > { %v1031_v53 = vmul.f32 %v2427_v50, %v1024_v51  ;;  %v2163_v54 = vpop.f32.mrb[19].mxu1  ;;  %v2369_v50 = vld [vmem:[#allocation10 + $0x14] ss:$8 sps:$4 sm:$0xff]   ;;  %1576 = vmatprep.subr.bf16.mxu1 %v2366_v49  ;;  %v2367_v51 = vld [vmem:[#allocation10 + $0x10] ss:$8 sps:$4 sm:$0xff]  }
 0x697   : > { %1577 = vmatpush1.bf16.msra.mxu1 %v2364_v48 }
 0x698   : > { %v2309_v58 = vpack.i.bf16 %v1031_v53, %v1030_v52  ;;  %1578 = vmatprep.subr.bf16.mxu1 %v2369_v50 }
 0x69a   : > { %2310 = vrot.lane.b32.xlu1 %v2309_v58, %s2686_s20  ;;  %v2372_v58 = vld [vmem:[#allocation10 + $0x24] ss:$8 sps:$4 sm:$0xff]   ;;  %s489_s20 = scalar_lea.vmem [#allocation13], %s1973_s12  ;;  %s1838_s12 = scalar_lea.sflag [#allocation6], %s2969_s15 }
 0x69b   : > { %v1144_v61 = vpop.f32.mrb[20].mxu1  ;;  %1579 = vmatpush1.bf16.msra.mxu1 %v2367_v51  ;;  %s1851_s13 = sshll.u32 %s489_s20, 4  ;;  %s3148_s13 = int_to_ptr.vmem [resolvable:$true] %s1851_s13 }
 0x69c   : > { %v2174_v63 = vpop.f32.mrb[21].mxu1  ;;  %v1153_v5 = vmul.f32 %v2429_v62, %v1144_v61  ;;  %1580 = vmatprep.subr.bf16.mxu1 %v2372_v58  ;;  %v2375_v61 = vld [vmem:[#allocation10 + $0x34] ss:$8 sps:$4 sm:$0xff]   ;;  %v2373_v62 = vld [vmem:[#allocation10 + $0x30] ss:$8 sps:$4 sm:$0xff]   ;;  %s2594_s29 = scalar_lea.vmem %s3148_s13, 256 }
 0x69d   : > { %v1147_v3 = vpop.f32.mrb[22].mxu1  ;;  %v2378_v63 = vld [vmem:[#allocation10 + $0x44] ss:$8 sps:$4 sm:$0xff]   ;;  %p2595_p3 = scmp.ne.s32.totalorder %s3148_s13, %s2594_s29 }
 0x69e   : > { %v1154_v6 = vmul.f32 %v2431_v2, %v1147_v3  ;;  %v2175_v7 = vpop.f32.mrb[23].mxu1  ;;  %v2376_v2 = vld [vmem:[#allocation10 + $0x40] ss:$8 sps:$4 sm:$0xff]   ;;  %v2381_v3 = vld [vmem:[#allocation10 + $0x54] ss:$8 sps:$4 sm:$0xff]  }
 0x69f   : > { %1581 = vmatpush1.bf16.msra.mxu1 %v2370_v59  ;;  %v2382_v7 = vld [vmem:[#allocation10 + $0x60] ss:$8 sps:$4 sm:$0xff]   ;;  %p2596_p5 = pnand %p2595_p3, %p2914_p10 }
 0x6a0   : > { %v2314_v9 = vpack.i.bf16 %v1154_v6, %v1153_v5  ;;  %1582 = vmatprep.subr.bf16.mxu1 %v2375_v61  ;;  %v2379_v5 = vld [vmem:[#allocation10 + $0x50] ss:$8 sps:$4 sm:$0xff]   ;;  %v2384_v6 = vld [vmem:[#allocation10 + $0x64] ss:$8 sps:$4 sm:$0xff]  }
 0x6a1   : > { %p2597_p7 = pneg %p2596_p5 }
 0x6a2   : > { %2315 = vrot.lane.b32.xlu0 %v2314_v9, %s2685_s26  ;;  %v2385_v9 = vld [vmem:[#allocation10 + $0x70] ss:$8 sps:$4 sm:$0xff]   ;;  %s3243_s26 = sld [smem:[#allocation22_spill]] }
 0x6a3   : > { %v1267_v10 = vpop.f32.mrb[24].mxu1  ;;  %1583 = vmatpush1.bf16.msra.mxu1 %v2373_v62 }
 0x6a4   : > { %v2186_v12 = vpop.f32.mrb[25].mxu1  ;;  %v1276_v15 = vmul.f32 %v2433_v11, %v1267_v10  ;;  %1584 = vmatprep.subr.bf16.mxu1 %v2378_v63 }
 0x6a5   : > { %v1270_v14 = vpop.f32.mrb[26].mxu1 }
 0x6a6   : > { %v1277_v60 = vmul.f32 %v2435_v13, %v1270_v14  ;;  %v2187_v16 = vpop.f32.mrb[27].mxu1 }
 0x6a7   : > { %1585 = vmatpush1.bf16.msra.mxu1 %v2376_v2  ;;  %v2022_v16 = vld [vmem:[%s3204_s6] ss:$0 sm:$0xff] }
 0x6a8   : > { %v2319_v17 = vpack.i.bf16 %v1277_v60, %v1276_v15  ;;  %1586 = vmatprep.subr.bf16.mxu1 %v2381_v3 }
 0x6aa   : > { %2320 = vrot.lane.b32.xlu1 %v2319_v17, %s2684_s3 }
 0x6ab   : > { %1587 = vmatpush1.bf16.msra.mxu1 %v2379_v5 }
 0x6ac   : > { %1588 = vmatprep.subr.bf16.mxu1 %v2384_v6 }
 0x6af   : > { %1589 = vmatpush1.bf16.msra.mxu1 %v2382_v7 }
 0x6b0   : > { %1590 = vmatprep.subr.bf16.mxu1 %v2387_v8 }
 0x6b3   : > { %1591 = vmatpush1.bf16.msra.mxu1 %v2385_v9 }
 0x70c   : > { %v2311_v19 = vpop.permute.xlu1 %2310 }
 0x70d   : > { %v2313_v25 = vunpack.i.h.bf16 %v2311_v19  ;;  %v2312_v26 = vunpack.i.l.bf16 %v2311_v19 }
 0x70f   : > { %v1303_v34 = vsel %vm788_vm1, %v905_v31, %v2313_v25  ;;  %v1302_v35 = vsel %vm788_vm1, %v904_v29, %v2312_v26  ;;  %v2390_v29 = vld [vmem:[#allocation12 + $0x48] sm:$0xff]  }
 0x710   : > { %v2391_v31 = vld [vmem:[#allocation12 + $0x8] sm:$0xff]  }
 0x714   : > { %v2316_v21 = vpop.permute.xlu0 %2315 }
 0x715   : > { %v2318_v27 = vunpack.i.h.bf16 %v2316_v21  ;;  %v2317_v28 = vunpack.i.l.bf16 %v2316_v21 }
 0x717   : > { %v1306_v39 = vsel %vm1304_vm3, %v1303_v34, %v2318_v27  ;;  %v1305_v40 = vsel %vm1304_vm3, %v1302_v35, %v2317_v28  ;;  %v2388_v27 = vld [vmem:[#allocation12 + $0x40] sm:$0xff]   ;;  %v2393_v34 = vld [vmem:[#allocation12 + $0x10] sm:$0xff]   ;;  %v2394_v35 = vld [vmem:[#allocation12 + $0x58] sm:$0xff]  }
 0x718   : > { %v2389_v28 = vld [vmem:[#allocation12] sm:$0xff]   ;;  %2098 = vmatprep.subr.bf16.mxu0 %v2388_v27 }
 0x71c   : > { %v2321_v32 = vpop.permute.xlu1 %2320 }
 0x71d   : > { %v2323_v36 = vunpack.i.h.bf16 %v2321_v32  ;;  %v2322_v37 = vunpack.i.l.bf16 %v2321_v32  ;;  %v2392_v32 = vld [vmem:[#allocation12 + $0x50] sm:$0xff]  }
 0x71f   : > { %v1309_v41 = vsel %vm1307_vm4, %v1306_v39, %v2323_v36  ;;  %v1308_v22 = vsel %vm1307_vm4, %v1305_v40, %v2322_v37  ;;  %v2395_v36 = vld [vmem:[#allocation12 + $0x18] sm:$0xff]   ;;  %v2396_v37 = vld [vmem:[#allocation12 + $0x60] sm:$0xff]   ;;  %v2398_v40 = vld [vmem:[#allocation12 + $0x68] sm:$0xff]  }
 0x720   : > { %v1310_v24 = vpack.c.bf16 %v1309_v41, %v1308_v22  ;;  %v2397_v39 = vld [vmem:[#allocation12 + $0x20] sm:$0xff]   ;;  %v2399_v41 = vld [vmem:[#allocation12 + $0x28] sm:$0xff]   ;;  %v2400_v22 = vld [vmem:[#allocation12 + $0x70] sm:$0xff]  }
 0x722   : > { %2205 = vmatmul.mubr.bf16.vlgmr.msra.gmra.mrb[12].mxu0 %v1310_v24  ;;  %v2401_v24 = vld [vmem:[#allocation12 + $0x30] sm:$0xff]  }
 0x723   : > { %2099 = vmatpush3.bf16.msra.mxu0 %v2389_v28 }
 0x724   : > { %2100 = vmatprep.subr.bf16.mxu0 %v2390_v29 }
 0x727   : > { %2101 = vmatpush3.bf16.msra.mxu0 %v2391_v31 }
 0x728   : > { %2102 = vmatprep.subr.bf16.mxu0 %v2392_v32 }
 0x72b   : > { %2103 = vmatpush3.bf16.msra.mxu0 %v2393_v34 }
 0x72c   : > { %2104 = vmatprep.subr.bf16.mxu0 %v2394_v35 }
 0x72f   : > { %2105 = vmatpush3.bf16.msra.mxu0 %v2395_v36 }
 0x730   : > { %2106 = vmatprep.subr.bf16.mxu0 %v2396_v37  ;;  %v2040_v37 = vld [vmem:[%s3243_s26] ss:$0 sm:$0xff] }
 0x733   : > { %2107 = vmatpush3.bf16.msra.mxu0 %v2397_v39 }
 0x734   : > { %2108 = vmatprep.subr.bf16.mxu0 %v2398_v40 }
 0x737   : > { %2109 = vmatpush3.bf16.msra.mxu0 %v2399_v41 }
 0x738   : > { %2110 = vmatprep.subr.bf16.mxu0 %v2400_v22 }
 0x73b   : > { %2111 = vmatpush3.bf16.msra.mxu0 %v2401_v24 }
 0x7f5   : > { %v1418_v38 = vpop.f32.mrb[12].mxu0 }
 0x7f6   : > { %v1419_v42 = vadd.f32 %v2013_v33, %v1418_v38  ;;  %v2206_v43 = vpop.f32.mrb[13].mxu0  ;;  %v2403_v38 = vld [vmem:[#allocation12 + $0x38] sm:$0xff]  }
 0x7f7   : > { %v1421_v44 = vpop.f32.mrb[14].mxu0 }
 0x7f8   : > { %v3123_v45 = vadd.f32 %v1419_v42, %v2987_v0  ;;  %v1422_v46 = vadd.f32 %v2013_v33, %v1421_v44  ;;  %v2207_v30 = vpop.f32.mrb[15].mxu0  ;;  %v2402_v33 = vld [vmem:[#allocation12 + $0x78] sm:$0xff]   ;;  %v1486_v42 = vlaneseq }
 0x7f9   : > { %2112 = vmatprep.subr.bf16.mxu0 %v2402_v33 }
 0x7fa   : > { %v3126_v47 = vadd.f32 %v1422_v46, %v2989_v1  ;;  %1429 = vadd.xlane.f32.xlu1 %v3123_v45  ;;  %2113 = vmatpush3.bf16.msra.mxu0 %v2403_v38  ;;  %v1487_v43 = vshrl.u32 %v1486_v42, 7  ;;  %v1484_v46 = vld [vmem:[%s3242_s17] sm:$0x3]  ;;  %s2598_s17 = sshll.u32 %s2687_s25, 4  ;;  %s2599_s17 = int_to_ptr.vmem [resolvable:$false] %s2598_s17 }
 0x7fb   : > { %s2600_s16 = scalar_lea.vmem %s2599_s17, 512  ;;  %p2601_p12 = scmp.lt.s32.totalorder %s3148_s13, %s2599_s17 }
 0x7fc   : > { %1431 = vadd.xlane.f32.xlu0 %v3126_v47  ;;  %v1488_v44 = vsub.s32 0, %v1487_v43  ;;  %v1492_v30 = vsub.s32 1, %v1487_v43  ;;  %p2602_p2 = scmp.lt.s32.totalorder %s2600_s16, %s2594_s29 }
 0x7fe   : > { %v1489_v48 = vrot.slane %v1484_v46, %v1488_v44  ;;  %v1493_v49 = vrot.slane %v1484_v46, %v1492_v30  ;;  %p2603_p1 = por %p2602_p2, %p2601_p12 }
 0x800   : > { %p2604_p13 = pnand %p2603_p1, %p2597_p7 }
 0x887   : > { %v1430_v52 = vpop.xlane.xlu1 %1429 }
 0x888   : > { %v1433_v0 = vmul.f32 0.0078125, %v1430_v52 }
 0x889   : > { %v1432_v53 = vpop.xlane.xlu0 %1431 }
 0x88a   : > { %v1435_v54 = vsub.f32 %v3123_v45, %v1433_v0  ;;  %v1434_v55 = vmul.f32 0.0078125, %v1432_v53 }
 0x88c   : > { %v1436_v1 = vsub.f32 %v3126_v47, %v1434_v55  ;;  %v1437_v56 = vmul.f32 %v1435_v54, %v1435_v54 }
 0x88e   : > { %1439 = vadd.xlane.f32.xlu0 %v1437_v56  ;;  %v1438_v57 = vmul.f32 %v1436_v1, %v1436_v1 }
 0x890   : > { %1441 = vadd.xlane.f32.xlu1 %v1438_v57 }
 0x91b   : > { %v1440_v10 = vpop.xlane.xlu0 %1439 }
 0x91c   : > { %v1443_v11 = vmul.f32 0.0078125, %v1440_v10 }
 0x91d   : > { %v1442_v12 = vpop.xlane.xlu1 %1441 }
 0x91e   : > { %v1445_v13 = vadd.f32 1e-05, %v1443_v11  ;;  %v1444_v14 = vmul.f32 0.0078125, %v1442_v12 }
 0x920   : > { %2440 = vrsqrt.f32 %v1445_v13  ;;  %v1446_v15 = vadd.f32 1e-05, %v1444_v14 }
 0x922   : > { %2442 = vrsqrt.f32 %v1446_v15 }
 0x92a   : > { %v2441_v60 = vpop.eup %2440 }
 0x92b   : > { %v1449_v17 = vmul.f32 %v2441_v60, %v1435_v54 }
 0x92c   : > { %v2443_v4 = vpop.eup %2442 }
 0x92d   : > { %v1450_v18 = vmul.f32 %v2443_v4, %v1436_v1  ;;  %v1457_v19 = vmul.f32 %v2022_v16, %v1449_v17 }
 0x92f   : > { %v1458_v21 = vmul.f32 %v2022_v16, %v1450_v18  ;;  %v1465_v23 = vadd.f32 %v2023_v20, %v1457_v19 }
 0x931   : > { %v1466_v25 = vadd.f32 %v2023_v20, %v1458_v21 }
 0x933   : > { %v1467_v26 = vpack.c.bf16 %v1466_v25, %v1465_v23 }
 0x935   : > { %1609 = vmatmul.mubr.bf16.vlgmr.msra.gmra.mrb[28].mxu1 %v1467_v26 }
 0xa08   : > { %v1610_v50 = vpop.f32.mrb[28].mxu1 }
 0xa09   : > { %v1611_v51 = vadd.f32 %v1610_v50, %v1489_v48  ;;  %v1612_v52 = vpop.f32.mrb[29].mxu1 }
 0xa0a   : > { %v1613_v0 = vadd.f32 %v1612_v52, %v1493_v49  ;;  %v1614_v53 = vpop.f32.mrb[30].mxu1 }
 0xa0b   : > { %v1623_v54 = vmul.f32 0.044715, %v1611_v51  ;;  %v1615_v55 = vadd.f32 %v1614_v53, %v1489_v48  ;;  %v1616_v1 = vpop.f32.mrb[31].mxu1  ;;  %v1619_v20 = vmul.f32 0.5, %v1611_v51 }
 0xa0c   : > { %v1624_v56 = vmul.f32 0.044715, %v1613_v0  ;;  %v1617_v57 = vadd.f32 %v1616_v1, %v1493_v49  ;;  %v1620_v25 = vmul.f32 0.5, %v1613_v0 }
 0xa0d   : > { %v1627_v58 = vmul.f32 %v1623_v54, %v1611_v51  ;;  %v1625_v59 = vmul.f32 0.044715, %v1615_v55  ;;  %v1621_v21 = vmul.f32 0.5, %v1615_v55 }
 0xa0e   : > { %v1628_v61 = vmul.f32 %v1624_v56, %v1613_v0  ;;  %v1626_v62 = vmul.f32 0.044715, %v1617_v57  ;;  %v1622_v26 = vmul.f32 0.5, %v1617_v57 }
 0xa0f   : > { %v1631_v63 = vmul.f32 %v1627_v58, %v1611_v51  ;;  %v1629_v2 = vmul.f32 %v1625_v59, %v1615_v55 }
 0xa10   : > { %v1632_v3 = vmul.f32 %v1628_v61, %v1613_v0  ;;  %v1630_v5 = vmul.f32 %v1626_v62, %v1617_v57 }
 0xa11   : > { %v1635_v6 = vadd.f32 %v1631_v63, %v1611_v51  ;;  %v1633_v7 = vmul.f32 %v1629_v2, %v1615_v55 }
 0xa12   : > { %v1634_v8 = vmul.f32 %v1630_v5, %v1617_v57  ;;  %v1636_v9 = vadd.f32 %v1632_v3, %v1613_v0 }
 0xa13   : > { %v1639_v10 = vmul.f32 0.7978846, %v1635_v6  ;;  %v1637_v11 = vadd.f32 %v1633_v7, %v1615_v55 }
 0xa14   : > { %v1638_v12 = vadd.f32 %v1634_v8, %v1617_v57  ;;  %v1640_v13 = vmul.f32 0.7978846, %v1636_v9 }
 0xa15   : > { %2444 = vtanh.f32 %v1639_v10  ;;  %v1641_v14 = vmul.f32 0.7978846, %v1637_v11 }
 0xa16   : > { %v1642_v15 = vmul.f32 0.7978846, %v1638_v12  ;;  %2446 = vtanh.f32 %v1640_v13 }
 0xa17   : > { %2448 = vtanh.f32 %v1641_v14 }
 0xa18   : > { %2450 = vtanh.f32 %v1642_v15 }
 0xa1f   : > { %v2445_v60 = vpop.eup %2444 }
 0xa20   : > { %v2447_v16 = vpop.eup %2446  ;;  %v1647_v17 = vadd.f32 1.0, %v2445_v60 }
 0xa21   : > { %v2449_v4 = vpop.eup %2448  ;;  %v1648_v18 = vadd.f32 1.0, %v2447_v16 }
 0xa22   : > { %v2451_v19 = vpop.eup %2450  ;;  %v1649_v23 = vadd.f32 1.0, %v2449_v4  ;;  %v1651_v28 = vmul.f32 %v1647_v17, %v1619_v20 }
 0xa23   : > { %v1650_v27 = vadd.f32 1.0, %v2451_v19  ;;  %v1652_v31 = vmul.f32 %v1648_v18, %v1620_v25 }
 0xa24   : > { %v1653_v29 = vmul.f32 %v1649_v23, %v1621_v21 }
 0xa25   : > { %v1654_v32 = vmul.f32 %v1650_v27, %v1622_v26 }
 0xa26   : > { %v1655_v34 = vpack.c.bf16 %v1653_v29, %v1651_v28 }
 0xa27   : > { %v1656_v35 = vpack.c.bf16 %v1654_v32, %v1652_v31 }
 0xa29   : > { %1824 = vmatprep.mubr.bf16.mxu0 %v1656_v35 }
 0xa2a   : > { %1825 = vmatmul.mubr.bf16.vlgmr.msra.gmra.mrb[16].mxu0 %v1655_v34 }
 0xafd   : > { %v2114_v36 = vpop.f32.mrb[16].mxu0 }
 0xafe   : > { %v2115_v39 = vpop.f32.mrb[17].mxu0 }
 0xaff   : > { %v2116_v40 = vadd.f32 %v2115_v39, %v2114_v36  ;;  %v2117_v41 = vpop.f32.mrb[18].mxu0 }
 0xb00   : > { %v2118_v22 = vpop.f32.mrb[19].mxu0 }
 0xb01   : > { %v1827_v24 = vadd.f32 %v2116_v40, %v2040_v37  ;;  %v2119_v33 = vadd.f32 %v2118_v22, %v2117_v41 }
 0xb03   : > { %v1833_v38 = vadd.f32 %v1827_v24, %v3123_v45  ;;  %v1830_v42 = vadd.f32 %v2119_v33, %v2040_v37 }
 0xb05   : > { %1835 = vst [vmem:[%s489_s20] sm:$0xff] %v1833_v38  ;;  %v1834_v43 = vadd.f32 %v1830_v42, %v3126_v47 }
 0xb07   : > { %1836 = vst [vmem:[%s489_s20 + $0x8] sm:$0xff] %v1834_v43 }
 0xb08   : > { %2607 = shalt.err (!%p2604_p13)
}
 0xb09   : > { %s2608_s3 = scalar_lea.hbm %s3153_s27, 256  ;;  %s2612_s11 = scalar_lea.hbm %s3245_s28, 512 }
 0xb0a   : > { %p2609_p9 = scmp.ne.s32.totalorder %s3153_s27, %s2608_s3  ;;  %p2613_p4 = scmp.lt.u32.totalorder %s3153_s27, %s3245_s28 }
 0xb0b   : > { %p2614_p8 = scmp.lt.u32.totalorder %s2612_s11, %s2608_s3  ;;  %p2616_p3 = scmp.lt.u32.totalorder %s2608_s3, %s3153_s27 }
 0xb0c   : > { %p2610_p0 = pnand %p2609_p9, %p2914_p10 }
 0xb0d   : > { %p2615_p6 = por %p2614_p8, %p2613_p4 }
 0xb0e   : > { %p2611_p11 = pneg %p2610_p0 }
 0xb0f   : > { %p2617_p5 = por %p2616_p3, %p2615_p6 }
 0xb11   : > { %p2618_p7 = pnand %p2617_p5, %p2611_p11 }
 0xb13   : > { %2621 = shalt.err (!%p2618_p7)
}
 0xb14   : > { %s2688_s21 = smov 128   ;;  %s2689_s29 = smov 8  }
 0xb15   : > { %2226 = dma.vmem_to_hbm [thread:$0]  (%p2914_p10), %s3148_s13, 256, %s3153_s27, %s1838_s12, %s2688_s21, %s2688_s21, %s2689_s29  }
 0xb16 PF: > { %s3246_s25 = sld [smem:[#allocation18_spill]]  ;;  %s3247_s17 = sld [smem:[#allocation19_spill]] }
 0xb17   : > { %p3249_p2 = scmp.ge.s32.totalorder %s2668_s24, 2 }
 0xb1c   : > { %s1866_s16 = sand.u32 1, %s3246_s25   ;;  %p3248_p12 = scmp.ne.s32.totalorder %s3247_s17, 0 }
 0xb1d   : > { %s1867_s3 = scalar_lea.sflag [#allocation6], %s1866_s16 }
 0xb1e   : > { %p2246_p1 = pnand %p3249_p2, %p3248_p12 }
 0xb20   : > { %2651 = dma.done.wait (!%p2246_p1), %s1867_s3, 256  }
 0xb21   : > { %2653 = vsyncadd (!%p2246_p1), %s1867_s3, 4294967040  ;;  %p27_p13 = scmp.ge.s32.totalorder %s2904_s30, 4   ;;  %s3250_s21 = smov %s2660_s22 }
 0xb22   : > { %s3251_s22 = smov %s2664_s23  ;;  %s3252_s23 = smov %s2920_s19 }
 0xb23   : > { %s3253_s24 = smov %s2904_s30  ;;  %29 = sbr.rel (!%p27_p13) target bundleno = 12 (0xc), region = 129 }
 0xb2a   :  { %1872 = vsyncpa [#allocation5], 1 }
 0xb2b   :  { %1874 = vsyncpa [#allocation5 + $0x1], 1 }
 0xb2c   :  { %1875 = vsyncpa [#allocation8], 1 }
 0xb2d   :  { %1876 = vsyncpa [#allocation11], 1 }
 0xb2e   :  { %1877 = vsyncpa [#allocation6], 1 }
 0xb2f   :  { %1879 = vsyncpa [#allocation6 + $0x1], 1 }

// kernel: tpu_custom_call.1
= control target key start
LH: loop header
LB: loop body
LE: loop exit
PB: predicated region body
PF: predicated region fallthrough
CT: control target
= control target key end

     0   :  { %s3198_s0 = inlined_call_operand.hbm [shape: f32[2,16,128], index: 0, kind: input, shape index: {}]   ;;  %s3199_s1 = inlined_call_operand.vmem [shape: f32[1,128], index: 1, kind: input, shape index: {}]   ;;  %s3200_s2 = inlined_call_operand.vmem [shape: f32[1,128], index: 2, kind: input, shape index: {}]   ;;  %s3201_s3 = inlined_call_operand.hbm [shape: bf16[128,384], index: 3, kind: input, shape index: {}]   ;;  %s3202_s4 = inlined_call_operand.hbm [shape: bf16[128,128], index: 4, kind: input, shape index: {}]   ;;  %s3203_s5 = inlined_call_operand.vmem [shape: f32[1,128], index: 5, kind: input, shape index: {}]   ;;  %s3204_s6 = inlined_call_operand.vmem [shape: f32[1,128], index: 6, kind: input, shape index: {}]   ;;  %s3205_s7 = inlined_call_operand.vmem [shape: f32[1,128], index: 7, kind: input, shape index: {}]   ;;  %s3206_s8 = inlined_call_operand.hbm [shape: bf16[128,256], index: 8, kind: input, shape index: {}]   ;;  %s3207_s9 = inlined_call_operand.vmem [shape: f32[1,256], index: 9, kind: input, shape index: {}]   ;;  %s3208_s10 = inlined_call_operand.hbm [shape: bf16[256,128], index: 10, kind: input, shape index: {}]   ;;  %s3209_s11 = inlined_call_operand.vmem [shape: f32[1,128], index: 11, kind: input, shape index: {}]   ;;  %s3210_s12 = inlined_call_operand.hbm [shape: f32[2,16,128], index: 12, kind: output, shape index: {}]  }
   0x1   :  { %3219 = sst [smem:[#allocation20_spill]] %s3201_s3 }
   0x2   :  { %3220 = sst [smem:[#allocation21_spill]] %s3207_s9 }
   0x3   :  { %3221 = sst [smem:[#allocation22_spill]] %s3209_s11 }
   0x4   :  { %3222 = sst [smem:[#allocation23_spill]] %s3210_s12 }
   0x5   :  { %17 = vsyncpa [#allocation5], 0 }
   0x6   :  { %19 = vsyncpa [#allocation5 + $0x1], 0 }
   0x7   :  { %20 = vsyncpa [#allocation8], 0 }
   0x8   :  { %21 = vsyncpa [#allocation11], 0 }
   0x9   :  { %22 = vsyncpa [#allocation6], 0 }
   0xa   :  { %24 = vsyncpa [#allocation6 + $0x1], 0  ;;  %s2755_s21 = smov 0   ;;  %s2757_s22 = smov 0  }
   0xb   :  { %s2759_s23 = smov 0   ;;  %s2761_s24 = smov 0  }
   0xc LB: > { %3223 = sst [smem:[#allocation18_spill]] %s2656_s21  ;;  %s2776_s25 = sadd.s32 4294967295, %s2668_s24   ;;  %s2668_s24 = sphi %s2761_s24, %s3253_s24   ;;  %s2664_s23 = sphi %s2759_s23, %s3252_s23   ;;  %s2660_s22 = sphi %s2757_s22, %s3251_s22   ;;  %s2656_s21 = sphi %s2755_s21, %s3250_s21  }
   0xd   : > { %s1962_s26 = sadd.s32 4294967294, %s2668_s24   ;;  %p50_p0 = scmp.ne.s32.totalorder %s2660_s22, %s2656_s21 }
   0xe   : > { %p3212_p1 = scmp.eq.s32.totalorder %s2776_s25, 0  ;;  %p311_p3 = scmp.eq.s32.totalorder %s1962_s26, 1 }
   0xf   : > { %p1963_p5 = scmp.ge.s32.totalorder %s2668_s24, 1  ;;  %p318_p7 = scmp.lt.s32.totalorder %s2668_s24, 3 }
  0x10   : > { %p2785_p4 = por %p3212_p1, %p50_p0  ;;  %p2790_p6 = por %p311_p3, %p50_p0 }
  0x11   : > { %p2795_p8 = pnand %p1963_p5, %p318_p7  ;;  %s2670_s30 = smov [#allocation7]  }
  0x12   : > { %s3224_s27 = scalar_select %p2785_p4, 1, 0 }
  0x13   : > { %s3225_s28 = scalar_select %p2790_p6, 1, 0 }
  0x14   : > { %s3227_s29 = scalar_select %p2795_p8, 1, 0 }
  0x15   : > { %3226 = sst [smem:[#allocation19_spill]] %s3225_s28  ;;  %s336_s13 = sshll.u32 %s2670_s30, 4  ;;  %s2799_s13 = int_to_ptr.vmem [resolvable:$true] %s336_s13 }
  0x16   : > { %p2228_p9 = pneg %p2795_p8  ;;  %s2671_s15 = smov [#allocation10]  }
  0x17   : > { %s371_s16 = sshll.u32 %s2671_s15, 4  ;;  %s3229_s3 = sld [smem:[#allocation20_spill]]  ;;  %s2810_s16 = int_to_ptr.vmem [resolvable:$true] %s371_s16 }
  0x18   : > { %p2806_p11 = pnand %p2228_p9, %p3212_p1 }
  0x1a   : > { %p2820_p13 = pneg %p2806_p11 }
  0x1d   : > { %s2452_s19 = scalar_lea.hbm %s3229_s3, 3072 }
  0x1e   : > { %p2453_p12 = scmp.ne.s32.totalorder %s3229_s3, %s2452_s19  ;;  %p2459_p5 = scmp.lt.u32.totalorder %s2452_s19, %s3229_s3 }
  0x20   : > { %p2455_p0 = pnand %p2820_p13, %p2453_p12 }
  0x22   : > { %p2456_p3 = pneg %p2455_p0 }
  0x24   : > { %p2461_p7 = pnand %p2459_p5, %p2456_p3 }
  0x26   : > { %2464 = shalt.err (!%p2461_p7)
}
  0x27   : > { %s2465_s17 = scalar_lea.vmem %s2799_s13, 3072  ;;  %p2473_p2 = scmp.lt.s32.totalorder %s2799_s13, %s2799_s13 }
  0x28   : > { %p2466_p9 = scmp.ne.s32.totalorder %s2799_s13, %s2465_s17  ;;  %p2474_p6 = scmp.lt.s32.totalorder %s2465_s17, %s2465_s17 }
  0x2a   : > { %p2468_p10 = pnand %p2466_p9, %p2820_p13  ;;  %p2475_p12 = por %p2474_p6, %p2473_p2 }
  0x2c   : > { %p2469_p1 = pneg %p2468_p10 }
  0x2e   : > { %p2476_p0 = pnand %p2475_p12, %p2469_p1 }
  0x30   : > { %2479 = shalt.err (!%p2476_p0)
}
  0x31   : > { %s2672_s18 = smov 192   ;;  %s2673_s28 = smov 12  }
  0x32   : > { %2231 = dma.hbm_to_vmem [thread:$0]  (!%p2806_p11), %s3229_s3, 3072, %s2799_s13, [#allocation8], %s2672_s18, %s2672_s18, %s2673_s28  }
  0x33   : > { %s2480_s21 = scalar_lea.hbm %s3206_s8, 2048 }
  0x34   : > { %p2481_p2 = scmp.ne.s32.totalorder %s3206_s8, %s2480_s21  ;;  %p2487_p10 = scmp.lt.u32.totalorder %s2480_s21, %s3206_s8 }
  0x36   : > { %p2483_p1 = pnand %p2481_p2, %p2820_p13 }
  0x38   : > { %p2484_p6 = pneg %p2483_p1 }
  0x3a   : > { %p2489_p3 = pnand %p2487_p10, %p2484_p6 }
  0x3c   : > { %2492 = shalt.err (!%p2489_p3)
}
  0x3d   : > { %s2493_s13 = scalar_lea.vmem %s2810_s16, 2048  ;;  %p2501_p12 = scmp.lt.s32.totalorder %s2810_s16, %s2810_s16 }
  0x3e   : > { %p2494_p5 = scmp.ne.s32.totalorder %s2810_s16, %s2493_s13  ;;  %p2502_p0 = scmp.lt.s32.totalorder %s2493_s13, %s2493_s13 }
  0x40   : > { %p2496_p7 = pnand %p2494_p5, %p2820_p13  ;;  %p2503_p2 = por %p2502_p0, %p2501_p12 }
  0x42   : > { %p2497_p9 = pneg %p2496_p7 }
  0x44   : > { %p2504_p1 = pnand %p2503_p2, %p2497_p9 }
  0x46   : > { %2507 = shalt.err (!%p2504_p1)
}
  0x47   : > { %s3217_s11 = smov 128   ;;  %s3218_s9 = smov 8  }
  0x48   : > { %2237 = dma.hbm_to_vmem [thread:$0]  (!%p2806_p11), %s3206_s8, 2048, %s2810_s16, [#allocation11], %s3217_s11, %s3217_s11, %s3218_s9  }
  0x49   : > { %s2676_s18 = smov [#allocation9]   ;;  %s2508_s26 = scalar_lea.hbm %s3202_s4, 1024 }
  0x4a   : > { %s349_s28 = sshll.u32 %s2676_s18, 4  ;;  %p2509_p6 = scmp.ne.s32.totalorder %s3202_s4, %s2508_s26  ;;  %s350_s28 = int_to_ptr.vmem [resolvable:$true] %s349_s28 }
  0x4b   : > { %p2515_p5 = scmp.lt.u32.totalorder %s2508_s26, %s3202_s4 }
  0x4c   : > { %p2511_p10 = pnand %p2509_p6, %p2820_p13 }
  0x4e   : > { %p2512_p3 = pneg %p2511_p10 }
  0x50   : > { %p2517_p7 = pnand %p2515_p5, %p2512_p3 }
  0x52   : > { %2520 = shalt.err (!%p2517_p7)
}
  0x53   : > { %s2521_s16 = scalar_lea.vmem %s350_s28, 1024  ;;  %p2529_p2 = scmp.lt.s32.totalorder %s350_s28, %s350_s28 }
  0x54   : > { %p2522_p9 = scmp.ne.s32.totalorder %s350_s28, %s2521_s16  ;;  %p2530_p1 = scmp.lt.s32.totalorder %s2521_s16, %s2521_s16 }
  0x56   : > { %p2524_p12 = pnand %p2522_p9, %p2820_p13  ;;  %p2531_p4 = por %p2530_p1, %p2529_p2 }
  0x58   : > { %p2525_p0 = pneg %p2524_p12 }
  0x5a   : > { %p2532_p8 = pnand %p2531_p4, %p2525_p0 }
  0x5c   : > { %2535 = shalt.err (!%p2532_p8)
}
  0x5d   : > { %s2677_s12 = smov 64   ;;  %s2678_s21 = smov 4  }
  0x5e   : > { %2234 = dma.hbm_to_vmem [thread:$0]  (!%p2806_p11), %s3202_s4, 1024, %s350_s28, [#allocation8], %s2677_s12, %s2677_s12, %s2678_s21  }
  0x5f   : > { %s2679_s19 = smov [#allocation12]   ;;  %s2536_s17 = scalar_lea.hbm %s3208_s10, 2048 }
  0x60   : > { %s387_s20 = sshll.u32 %s2679_s19, 4  ;;  %p2537_p4 = scmp.ne.s32.totalorder %s3208_s10, %s2536_s17  ;;  %s388_s20 = int_to_ptr.vmem [resolvable:$true] %s387_s20 }
  0x61   : > { %p2543_p10 = scmp.lt.u32.totalorder %s2536_s17, %s3208_s10 }
  0x62   : > { %p2539_p8 = pnand %p2537_p4, %p2820_p13 }
  0x64   : > { %p2540_p6 = pneg %p2539_p8 }
  0x66   : > { %p2545_p3 = pnand %p2543_p10, %p2540_p6 }
  0x68   : > { %2548 = shalt.err (!%p2545_p3)
}
  0x69   : > { %s2549_s28 = scalar_lea.vmem %s388_s20, 2048  ;;  %p2557_p12 = scmp.lt.s32.totalorder %s388_s20, %s388_s20 }
  0x6a   : > { %p2550_p5 = scmp.ne.s32.totalorder %s388_s20, %s2549_s28  ;;  %p2558_p0 = scmp.lt.s32.totalorder %s2549_s28, %s2549_s28 }
  0x6c   : > { %p2552_p7 = pnand %p2550_p5, %p2820_p13  ;;  %p2559_p2 = por %p2558_p0, %p2557_p12 }
  0x6e   : > { %p2553_p9 = pneg %p2552_p7 }
  0x70   : > { %p2560_p1 = pnand %p2559_p2, %p2553_p9 }
  0x72   : > { %2563 = shalt.err (!%p2560_p1)
}
  0x73   : > { %2240 = dma.hbm_to_vmem [thread:$0]  (!%p2806_p11), %s3208_s10, 2048, %s388_s20, [#allocation11], %s2677_s12, %s2677_s12, %s2678_s21  }
  0x74   : > { %s2904_s30 = sadd.s32 1, %s2668_s24   ;;  %s37_s11 = sadd.s32 1, %s2664_s23 }
  0x75   : > { %s34_s14 = ssub.s32 %s2668_s24, %s2904_s30  ;;  %p44_p13 = scmp.ne.s32.totalorder %s2664_s23, %s2660_s22 }
  0x76   : > { %p35_p4 = scmp.eq.s32.totalorder %s34_s14, 0  ;;  %p45_p8 = scmp.eq.s32.totalorder %s2668_s24, 0 }
  0x77   : > { %p3231_p6 = scmp.eq.s32.totalorder %s2776_s25, 1  ;;  %p2253_p3 = scmp.lt.s32.totalorder %s2668_s24, 2 }
  0x78   : > { %s2920_s19 = scalar_select %p35_p4, %s2664_s23, %s37_s11  }
  0x79   : > { %p2914_p10 = por %p3231_p6, %p44_p13  ;;  %p46_p5 = por %p45_p8, %p44_p13 }
  0x7a   : > { %s404_s26 = sand.u32 1, %s2664_s23   ;;  %s2062_s12 = sshll.u32 %s2668_s24, 8 }
  0x7b   : > { %s1969_s15 = sshll.u32 %s404_s26, 4  ;;  %s2927_s17 = scalar_lea.hbm %s3198_s0, %s2062_s12 }
  0x7c   : > { %s408_s13 = scalar_lea.vmem [#allocation4], %s1969_s15  ;;  %p2931_p11 = pnand %p2253_p3, %p46_p5 }
  0x7d   : > { %s415_s16 = sshll.u32 %s408_s13, 4  ;;  %s2935_s3 = scalar_lea.sflag [#allocation5], %s404_s26  ;;  %s2929_s16 = int_to_ptr.vmem [resolvable:$true] %s415_s16 }
  0x7e   : > { %s2564_s18 = scalar_lea.hbm %s2927_s17, 256  ;;  %p2566_p9 = pneg %p2931_p11 }
  0x7f   : > { %p2565_p7 = scmp.ne.s32.totalorder %s2927_s17, %s2564_s18  ;;  %s2569_s15 = scalar_lea.hbm %s3198_s0, 512 }
  0x80   : > { %p2570_p2 = scmp.lt.u32.totalorder %s2927_s17, %s3198_s0  ;;  %p2571_p1 = scmp.lt.u32.totalorder %s2569_s15, %s2564_s18 }
  0x81   : > { %p2567_p12 = pnand %p2566_p9, %p2565_p7  ;;  %p2573_p4 = scmp.lt.u32.totalorder %s2564_s18, %s2927_s17 }
  0x82   : > { %p2572_p13 = por %p2571_p1, %p2570_p2 }
  0x83   : > { %p2568_p0 = pneg %p2567_p12 }
  0x84   : > { %p2574_p8 = por %p2573_p4, %p2572_p13 }
  0x86   : > { %p2575_p6 = pnand %p2574_p8, %p2568_p0 }
  0x88   : > { %2578 = shalt.err (!%p2575_p6)
}
  0x89   : > { %s2579_s26 = scalar_lea.vmem %s2929_s16, 256  ;;  %s2680_s20 = smov [#allocation4]  }
  0x8a   : > { %p2580_p3 = scmp.ne.s32.totalorder %s2929_s16, %s2579_s26  ;;  %s2584_s13 = sshll.u32 %s2680_s20, 4  ;;  %s2585_s13 = int_to_ptr.vmem [resolvable:$false] %s2584_s13 }
  0x8b   : > { %s2586_s11 = scalar_lea.vmem %s2585_s13, 512  ;;  %p2587_p12 = scmp.lt.s32.totalorder %s2929_s16, %s2585_s13 }
  0x8c   : > { %p2582_p5 = pnand %p2580_p3, %p2566_p9  ;;  %p2588_p2 = scmp.lt.s32.totalorder %s2586_s11, %s2579_s26 }
  0x8e   : > { %p2583_p7 = pneg %p2582_p5  ;;  %p2589_p1 = por %p2588_p2, %p2587_p12 }
  0x90   : > { %p2590_p13 = pnand %p2589_p1, %p2583_p7 }
  0x92   : > { %2593 = shalt.err (!%p2590_p13)
}
  0x93   : > { %s3234_s18 = smov 8   ;;  %s3235_s14 = smov 128  }
  0x94   : > { %2244 = dma.hbm_to_vmem [thread:$0]  (!%p2931_p11), %s2927_s17, 256, %s2929_s16, %s2935_s3, %s3235_s14, %s3235_s14, %s3234_s18  }
  0x95   : > { %p3236_p9 = scmp.ne.s32.totalorder %s3227_s29, 0 }
  0x96   : > { %s2969_s15 = sand.u32 (!%p3236_p9), 1, %s2660_s22   ;;  %p3237_p0 = scmp.ne.s32.totalorder (!%p3236_p9), %s3224_s27, 0 }
  0x97   : > { %427 = sbr.rel (%p3236_p9) target bundleno = 2838 (0xb16), region = 68  ;;  %s1973_s12 = sshll.u32 (!%p3236_p9), %s2969_s15, 4 }
  0x98   : > { %s430_s21 = scalar_lea.sflag (!%p3236_p9), [#allocation5], %s2969_s15  ;;  %s433_s28 = scalar_lea.vmem (!%p3236_p9), [#allocation4], %s1973_s12 }
  0x9e   : > { %2639 = dma.done.wait (%p3237_p0), %s430_s21, 256  }
  0x9f   : > { %2641 = vsyncadd (%p3237_p0), %s430_s21, 4294967040  ;;  %p3238_p11 = scmp.eq.s32.totalorder %s2776_s25, 0 }
  0xa1   : > { %2643 = dma.done.wait (%p3238_p11), [#allocation8], 4096   ;;  %p3239_p4 = pmov %p3238_p11 }
  0xa3   : > { %2645 = vsyncadd (%p3239_p4), [#allocation8], 4294963200  ;;  %p3240_p8 = pmov %p3239_p4 }
  0xa4   : > { %p3241_p6 = pmov %p3239_p4 }
  0xa5   : > { %2647 = dma.done.wait (%p3240_p8), [#allocation11], 4096  }
  0xa6   : > { %2649 = vsyncadd (%p3241_p6), [#allocation11], 4294963200  ;;  %v2987_v0 = vld [vmem:[%s433_s28] sm:$0xff]  ;;  %v2989_v1 = vld [vmem:[%s433_s28 + $0x8] sm:$0xff]  ;;  %v2681_v4 = vmov 0.0   ;;  %v2682_v30 = vmov 0  }
  0xa7   : > { %495 = vadd.xlane.f32.xlu0 %v2987_v0  ;;  %v2324_v2 = vld [vmem:[#allocation7 + $0x4] ss:$12 sps:$4 sm:$0xff]   ;;  %v2326_v3 = vld [vmem:[#allocation7] ss:$12 sps:$4 sm:$0xff]   ;;  %2120 = vmatprep.subr.bf16.mxu1 %v2681_v4  ;;  %v2327_v5 = vld [vmem:[#allocation7 + $0x8] ss:$12 sps:$4 sm:$0xff]  }
  0xa8   : > { %v2328_v6 = vld [vmem:[#allocation7 + $0x1c] ss:$12 sps:$4 sm:$0xff]   ;;  %695 = vmatprep.subr.bf16.mxu0 %v2324_v2  ;;  %2121 = vmatpush3.bf16.msra.mxu1 %v2327_v5  ;;  %v2330_v15 = vld [vmem:[#allocation7 + $0x18] ss:$12 sps:$4 sm:$0xff]   ;;  %v2331_v16 = vld [vmem:[#allocation7 + $0x20] ss:$12 sps:$4 sm:$0xff]  }
  0xa9   : > { %696 = vmatpush1.bf16.msra.mxu0 %v2326_v3  ;;  %2122 = vmatprep.subr.bf16.mxu1 %v2681_v4  ;;  %v2332_v17 = vld [vmem:[#allocation7 + $0x34] ss:$12 sps:$4 sm:$0xff]   ;;  %v2334_v18 = vld [vmem:[#allocation7 + $0x30] ss:$12 sps:$4 sm:$0xff]   ;;  %v2335_v19 = vld [vmem:[#allocation7 + $0x38] ss:$12 sps:$4 sm:$0xff]  }
  0xaa   : > { %697 = vmatprep.subr.bf16.mxu0 %v2328_v6  ;;  %v2336_v20 = vld [vmem:[#allocation7 + $0x4c] ss:$12 sps:$4 sm:$0xff]   ;;  %v2338_v21 = vld [vmem:[#allocation7 + $0x48] ss:$12 sps:$4 sm:$0xff]   ;;  %v2339_v22 = vld [vmem:[#allocation7 + $0x50] ss:$12 sps:$4 sm:$0xff]   ;;  %727 = vmatprep.mubr.bf16.mxu0 %v2682_v30 }
  0xab   : > { %497 = vadd.xlane.f32.xlu0 %v2989_v1  ;;  %v2340_v23 = vld [vmem:[#allocation7 + $0x64] ss:$12 sps:$4 sm:$0xff]   ;;  %v2342_v24 = vld [vmem:[#allocation7 + $0x60] ss:$12 sps:$4 sm:$0xff]   ;;  %v2343_v25 = vld [vmem:[#allocation7 + $0x68] ss:$12 sps:$4 sm:$0xff]  }
  0xac   : > { %2123 = vmatpush3.bf16.msra.mxu1 %v2331_v16  ;;  %v2344_v26 = vld [vmem:[#allocation7 + $0x7c] ss:$12 sps:$4 sm:$0xff]   ;;  %v2346_v27 = vld [vmem:[#allocation7 + $0x78] ss:$12 sps:$4 sm:$0xff]   ;;  %v2347_v28 = vld [vmem:[#allocation7 + $0x80] ss:$12 sps:$4 sm:$0xff]  }
  0xad   : > { %698 = vmatpush1.bf16.msra.mxu0 %v2330_v15  ;;  %2124 = vmatprep.subr.bf16.mxu1 %v2681_v4  ;;  %v2348_v29 = vld [vmem:[#allocation7 + $0x94] ss:$12 sps:$4 sm:$0xff]   ;;  %vm2683_vm0 = vmmov 0   ;;  %v2350_v31 = vld [vmem:[#allocation7 + $0x90] ss:$12 sps:$4 sm:$0xff]   ;;  %vm788_vm1 = vcmask 261120  }
  0xae   : > { %699 = vmatprep.subr.bf16.mxu0 %v2332_v17  ;;  %2136 = vmatprep.mubr.msk.bf16.mxu1 %vm2683_vm0, %v2681_v4  ;;  %v2351_v32 = vld [vmem:[#allocation7 + $0x98] ss:$12 sps:$4 sm:$0xff]   ;;  %v2354_v34 = vld [vmem:[#allocation7 + $0xa8] ss:$12 sps:$4 sm:$0xff]   ;;  %v2355_v35 = vld [vmem:[#allocation7 + $0xb0] ss:$12 sps:$4 sm:$0xff]  }
  0xaf   : > { %v2352_v33 = vld [vmem:[#allocation7 + $0xac] ss:$12 sps:$4 sm:$0xff]   ;;  %v1979_v44 = vld [vmem:[%s3199_s1] ss:$0 sm:$0xff]  ;;  %vm838_vm2 = vcmask 130048   ;;  %s2684_s3 = smov 96  }
  0xb0   : > { %2125 = vmatpush3.bf16.msra.mxu1 %v2335_v19  ;;  %v1980_v48 = vld [vmem:[%s3200_s2] ss:$0 sm:$0xff]  ;;  %s2685_s26 = smov 64   ;;  %s2686_s20 = smov 32   ;;  %vm1304_vm3 = vcmask 523264   ;;  %vm1307_vm4 = vcmask 785408  }
  0xb1   : > { %700 = vmatpush1.bf16.msra.mxu0 %v2334_v18  ;;  %2126 = vmatprep.subr.bf16.mxu1 %v2681_v4  ;;  %s3242_s17 = sld [smem:[#allocation21_spill]]  ;;  %s2063_s11 = sshll.u32 %s2776_s25, 8 }
  0xb2   : > { %701 = vmatprep.subr.bf16.mxu0 %v2336_v20  ;;  %s3244_s21 = sld [smem:[#allocation23_spill]]  ;;  %s2687_s25 = smov [#allocation13]  }
  0xb4   : > { %2127 = vmatpush3.bf16.msra.mxu1 %v2339_v22 }
  0xb5   : > { %702 = vmatpush1.bf16.msra.mxu0 %v2338_v21  ;;  %2128 = vmatprep.subr.bf16.mxu1 %v2681_v4 }
  0xb6   : > { %703 = vmatprep.subr.bf16.mxu0 %v2340_v23 }
  0xb8   : > { %2129 = vmatpush3.bf16.msra.mxu1 %v2343_v25  ;;  %s3245_s28 = smov %s3244_s21  ;;  %s3153_s27 = scalar_lea.hbm %s3244_s21, %s2063_s11 }
  0xb9   : > { %704 = vmatpush1.bf16.msra.mxu0 %v2342_v24  ;;  %2130 = vmatprep.subr.bf16.mxu1 %v2681_v4 }
  0xba   : > { %705 = vmatprep.subr.bf16.mxu0 %v2344_v26 }
  0xbc   : > { %2131 = vmatpush3.bf16.msra.mxu1 %v2347_v28 }
  0xbd   : > { %706 = vmatpush1.bf16.msra.mxu0 %v2346_v27  ;;  %2132 = vmatprep.subr.bf16.mxu1 %v2681_v4 }
  0xbe   : > { %707 = vmatprep.subr.bf16.mxu0 %v2348_v29 }
  0xc0   : > { %2133 = vmatpush3.bf16.msra.mxu1 %v2351_v32 }
  0xc1   : > { %708 = vmatpush1.bf16.msra.mxu0 %v2350_v31  ;;  %2134 = vmatprep.subr.bf16.mxu1 %v2681_v4 }
  0xc2   : > { %709 = vmatprep.subr.bf16.mxu0 %v2352_v33 }
  0xc4   : > { %2135 = vmatpush3.bf16.msra.mxu1 %v2355_v35 }
  0xc5   : > { %710 = vmatpush1.bf16.msra.mxu0 %v2354_v34  ;;  %2140 = vmatprep.subr.bf16.mxu1 %v2681_v4 }
  0xc6   : > { %2164 = vmatprep.subr.bf16.mxu0 %v2681_v4 }
 0x134   : > { %v496_v7 = vpop.xlane.xlu0 %495 }
 0x135   : > { %v500_v8 = vmul.f32 0.0078125, %v496_v7 }
 0x137   : > { %v2996_v9 = vsub.f32 %v2987_v0, %v500_v8 }
 0x138   : > { %v498_v10 = vpop.xlane.xlu0 %497 }
 0x139   : > { %v501_v11 = vmul.f32 0.0078125, %v498_v10  ;;  %v504_v12 = vmul.f32 %v2996_v9, %v2996_v9 }
 0x13b   : > { %v3001_v13 = vsub.f32 %v2989_v1, %v501_v11  ;;  %506 = vadd.xlane.f32.xlu1 %v504_v12 }
 0x13d   : > { %v505_v14 = vmul.f32 %v3001_v13, %v3001_v13 }
 0x13f   : > { %508 = vadd.xlane.f32.xlu1 %v505_v14 }
 0x1c8   : > { %v507_v36 = vpop.xlane.xlu1 %506 }
 0x1c9   : > { %v510_v37 = vmul.f32 0.0078125, %v507_v36 }
 0x1cb   : > { %v512_v38 = vadd.f32 1e-05, %v510_v37 }
 0x1cc   : > { %v509_v39 = vpop.xlane.xlu1 %508 }
 0x1cd   : > { %2404 = vrsqrt.f32 %v512_v38  ;;  %v511_v40 = vmul.f32 0.0078125, %v509_v39 }
 0x1cf   : > { %v513_v41 = vadd.f32 1e-05, %v511_v40 }
 0x1d1   : > { %2406 = vrsqrt.f32 %v513_v41 }
 0x1d7   : > { %v2405_v42 = vpop.eup %2404 }
 0x1d8   : > { %v516_v43 = vmul.f32 %v2405_v42, %v2996_v9 }
 0x1da   : > { %v524_v47 = vmul.f32 %v1979_v44, %v516_v43 }
 0x1db   : > { %v2407_v45 = vpop.eup %2406 }
 0x1dc   : > { %v517_v46 = vmul.f32 %v2407_v45, %v3001_v13  ;;  %v532_v50 = vadd.f32 %v1980_v48, %v524_v47 }
 0x1de   : > { %v525_v49 = vmul.f32 %v1979_v44, %v517_v46 }
 0x1e0   : > { %v533_v51 = vadd.f32 %v1980_v48, %v525_v49 }
 0x1e2   : > { %v534_v52 = vpack.c.bf16 %v533_v51, %v532_v50 }
 0x1e4   : > { %728 = vmatmul.mubr.bf16.vlgmr.msra.gmra.mrb[0].mxu0 %v534_v52  ;;  %2137 = vmatmul.mubr.bf16.vlgmr.msra.gmra.mrb[0].mxu1 %v534_v52 }
 0x1e5   : > { %2142 = vmatprep.mubr.msk.bf16.mxu1 %vm2683_vm0, %v2681_v4  ;;  %2166 = vmatprep.mubr.msk.bf16.mxu0 %vm2683_vm0, %v2681_v4 }
 0x2b7   : > { %v729_v53 = vpop.f32.mrb[0].mxu0  ;;  %v772_v54 = vpop.f32.mrb[0].mxu1 }
 0x2b8   : > { %v731_v55 = vpop.f32.mrb[1].mxu0  ;;  %v2138_v56 = vpop.f32.mrb[1].mxu1 }
 0x2b9   : > { %v733_v57 = vpop.f32.mrb[2].mxu0  ;;  %v775_v58 = vpop.f32.mrb[2].mxu1 }
 0x2ba   : > { %v779_v59 = vpack.c.bf16 %v733_v57, %v729_v53  ;;  %v3028_v60 = vpack.c.bf16 %v775_v58, %v772_v54  ;;  %v735_v61 = vpop.f32.mrb[3].mxu0  ;;  %v2139_v62 = vpop.f32.mrb[3].mxu1 }
 0x2bb   : > { %v780_v63 = vpack.c.bf16 %v735_v61, %v731_v55 }
 0x2bd   : > { %v793_v2 = vsel %vm788_vm1, %v780_v63, 0 }
 0x2be   : > { %2141 = vmatpush3.bf16.xpose.msra.mxu1 %v793_v2 }
 0x2bf   : > { %2146 = vmatprep.subr.bf16.mxu1 %v2681_v4 }
 0x2c5   : > { %2143 = vmatmul.mubr.msk.bf16.vlgmr.msra.gmra.mrb[4].mxu1 %vm788_vm1, %v779_v59 }
 0x2c6   : > { %2147 = vmatpush3.bf16.msra.mxu1 %v3028_v60  ;;  %2148 = vmatprep.mubr.msk.bf16.mxu1 %vm2683_vm0, %v2681_v4 }
 0x2c7   : > { %2152 = vmatprep.subr.bf16.mxu1 %v2681_v4 }
 0x398   : > { %v829_v3 = vpop.f32.mrb[4].mxu1 }
 0x399   : > { %v836_v5 = vmul.f32 0.17677669, %v829_v3  ;;  %v2144_v6 = vpop.f32.mrb[5].mxu1 }
 0x39a   : > { %v832_v7 = vpop.f32.mrb[6].mxu1 }
 0x39b   : > { %v837_v8 = vmul.f32 0.17677669, %v832_v7  ;;  %v2145_v9 = vpop.f32.mrb[7].mxu1  ;;  %v839_v10 = vsel %vm838_vm2, %v836_v5, -inf }
 0x39c   : > { %840 = vmax.xlane.f32.xlu0 %v839_v10 }
 0x39d   : > { %v842_v11 = vsel %vm838_vm2, %v837_v8, -inf }
 0x39e   : > { %843 = vmax.xlane.f32.xlu1 %v842_v11 }
 0x3af   : > { %907 = vrot.lane.b32.xlu1 %v779_v59, %s2684_s3 }
 0x3b2   : > { %910 = vrot.lane.b32.xlu0 %v780_v63, %s2684_s3 }
 0x3b3   : > { %1034 = vrot.lane.b32.xlu1 %v780_v63, %s2685_s26 }
 0x3b6   : > { %1157 = vrot.lane.b32.xlu0 %v780_v63, %s2686_s20 }
 0x3b7   : > { %1032 = vrot.lane.b32.xlu1 %v779_v59, %s2685_s26 }
 0x3bb   : > { %1155 = vrot.lane.b32.xlu1 %v779_v59, %s2686_s20 }
 0x429   : > { %v841_v12 = vpop.xlane.xlu0 %840 }
 0x42a   : > { %v845_v13 = vsub.f32 %v836_v5, %v841_v12 }
 0x42b   : > { %v844_v14 = vpop.xlane.xlu1 %843 }
 0x42c   : > { %v847_v15 = vmul.f32 1.442695, %v845_v13  ;;  %v846_v16 = vsub.f32 %v837_v8, %v844_v14 }
 0x42d   : > { %v911_v19 = vpop.permute.xlu0 %910 }
 0x42e   : > { %v849_v17 = vmul.f32 1.442695, %v846_v16  ;;  %2408 = vpow2.f32 %v847_v15  ;;  %v916_v28 = vsel %vm788_vm1, %v911_v19, 0 }
 0x42f   : > { %v908_v18 = vpop.permute.xlu1 %907 }
 0x430   : > { %2410 = vpow2.f32 %v849_v17 }
 0x431   : > { %v1158_v23 = vpop.permute.xlu0 %1157 }
 0x432   : > { %v1163_v27 = vsel %vm788_vm1, %v1158_v23, 0 }
 0x433   : > { %v1035_v20 = vpop.permute.xlu1 %1034 }
 0x434   : > { %v1040_v21 = vsel %vm788_vm1, %v1035_v20, 0 }
 0x435   : > { %2165 = vmatpush3.bf16.xpose.msra.mxu0 %v1040_v21 }
 0x436   : > { %2176 = vmatprep.subr.bf16.mxu0 %v2681_v4 }
 0x437   : > { %v1033_v25 = vpop.permute.xlu1 %1032 }
 0x438   : > { %v3047_v22 = vpop.eup %2408 }
 0x43a   : > { %v3049_v24 = vpop.eup %2410 }
 0x43b   : > { %v857_v26 = vpack.c.bf16 %v3049_v24, %v3047_v22  ;;  %v1156_v29 = vpop.permute.xlu1 %1155 }
 0x43c   : > { %2167 = vmatmul.mubr.msk.bf16.vlgmr.msra.gmra.mrb[4].mxu0 %vm788_vm1, %v1033_v25 }
 0x43d   : > { %2149 = vmatmul.mubr.msk.bf16.vlgmr.msra.gmra.mrb[8].mxu1 %vm838_vm2, %v857_v26  ;;  %2177 = vmatpush3.bf16.xpose.msra.mxu0 %v1163_v27 }
 0x43e   : > { %2153 = vmatpush3.bf16.xpose.msra.mxu1 %v916_v28  ;;  %2178 = vmatprep.mubr.msk.bf16.mxu0 %vm2683_vm0, %v2681_v4 }
 0x43f   : > { %2154 = vmatprep.mubr.msk.bf16.mxu1 %vm2683_vm0, %v2681_v4  ;;  %2158 = vmatprep.subr.bf16.mxu1 %v2681_v4 }
 0x440   : > { %2188 = vmatprep.subr.bf16.mxu0 %v2681_v4 }
 0x444   : > { %2179 = vmatmul.mubr.msk.bf16.vlgmr.msra.gmra.mrb[8].mxu0 %vm788_vm1, %v1156_v29 }
 0x445   : > { %2155 = vmatmul.mubr.msk.bf16.vlgmr.msra.gmra.mrb[12].mxu1 %vm788_vm1, %v908_v18  ;;  %2204 = vmatprep.mubr.msk.bf16.mxu0 %vm2683_vm0, %v2681_v4 }
 0x446   : > { %2160 = vmatprep.mubr.msk.bf16.mxu1 %vm2683_vm0, %v2681_v4 }
 0x50f   : > { %v1076_v31 = vpop.f32.mrb[4].mxu0 }
 0x510   : > { %v1083_v32 = vmul.f32 0.17677669, %v1076_v31  ;;  %v3069_v33 = vpop.f32.mrb[8].mxu1  ;;  %v2168_v34 = vpop.f32.mrb[5].mxu0 }
 0x511   : > { %v2150_v35 = vpop.f32.mrb[9].mxu1  ;;  %v1079_v36 = vpop.f32.mrb[6].mxu0 }
 0x512   : > { %v1084_v37 = vmul.f32 0.17677669, %v1079_v36  ;;  %v3071_v38 = vpop.f32.mrb[10].mxu1  ;;  %v2169_v39 = vpop.f32.mrb[7].mxu0  ;;  %v1085_v40 = vsel %vm838_vm2, %v1083_v32, -inf  ;;  %v851_v35 = vsel %vm838_vm2, %v3047_v22, 0.0 }
 0x513   : > { %1086 = vmax.xlane.f32.xlu0 %v1085_v40  ;;  %v2151_v41 = vpop.f32.mrb[11].mxu1  ;;  %v854_v36 = vsel %vm838_vm2, %v3049_v24, 0.0  ;;  %v2357_v22 = vld [vmem:[#allocation9 + $0x8] sm:$0xff]   ;;  %v2358_v24 = vld [vmem:[#allocation9 + $0x10] sm:$0xff]  }
 0x514   : > { %v1088_v42 = vsel %vm838_vm2, %v1084_v37, -inf  ;;  %v2356_v41 = vld [vmem:[#allocation9] sm:$0xff]  }
 0x515   : > { %2189 = vmatpush3.bf16.msra.mxu0 %v2356_v41 }
 0x516   : > { %2190 = vmatprep.subr.bf16.mxu0 %v2681_v4 }
 0x517   : > { %1089 = vmax.xlane.f32.xlu0 %v1088_v42  ;;  %v1199_v43 = vpop.f32.mrb[8].mxu0 }
 0x518   : > { %v1206_v44 = vmul.f32 0.17677669, %v1199_v43  ;;  %v952_v45 = vpop.f32.mrb[12].mxu1  ;;  %v2180_v46 = vpop.f32.mrb[9].mxu0 }
 0x519   : > { %v959_v47 = vmul.f32 0.17677669, %v952_v45  ;;  %v2156_v48 = vpop.f32.mrb[13].mxu1  ;;  %v1202_v49 = vpop.f32.mrb[10].mxu0  ;;  %2191 = vmatpush3.bf16.msra.mxu0 %v2357_v22  ;;  %v2359_v46 = vld [vmem:[#allocation9 + $0x18] sm:$0xff]  }
 0x51a   : > { %v1207_v50 = vmul.f32 0.17677669, %v1202_v49  ;;  %v955_v51 = vpop.f32.mrb[14].mxu1  ;;  %v2181_v52 = vpop.f32.mrb[11].mxu0  ;;  %v1208_v53 = vsel %vm838_vm2, %v1206_v44, -inf  ;;  %2192 = vmatprep.subr.bf16.mxu0 %v2681_v4 }
 0x51b   : > { %1209 = vmax.xlane.f32.xlu0 %v1208_v53  ;;  %v2157_v54 = vpop.f32.mrb[15].mxu1  ;;  %v960_v55 = vmul.f32 0.17677669, %v955_v51  ;;  %v961_v57 = vsel %vm838_vm2, %v959_v47, -inf }
 0x51c   : > { %v1211_v56 = vsel %vm838_vm2, %v1207_v50, -inf }
 0x51d   : > { %1212 = vmax.xlane.f32.xlu1 %v1211_v56  ;;  %v964_v58 = vsel %vm838_vm2, %v960_v55, -inf  ;;  %2193 = vmatpush3.bf16.msra.mxu0 %v2358_v24 }
 0x51e   : > { %2194 = vmatprep.subr.bf16.mxu0 %v2681_v4 }
 0x51f   : > { %962 = vmax.xlane.f32.xlu0 %v961_v57 }
 0x521   : > { %965 = vmax.xlane.f32.xlu1 %v964_v58  ;;  %2195 = vmatpush3.bf16.msra.mxu0 %v2359_v46 }
 0x522   : > { %2196 = vmatprep.subr.bf16.mxu0 %v2681_v4 }
 0x532   : > { %1104 = vrot.lane.b32.xlu1 %v3028_v60, %s2685_s26 }
 0x535   : > { %981 = vrot.lane.b32.xlu0 %v3028_v60, %s2684_s3 }
 0x536   : > { %1227 = vrot.lane.b32.xlu1 %v3028_v60, %s2686_s20 }
 0x5a0   : > { %v1087_v59 = vpop.xlane.xlu0 %1086 }
 0x5a1   : > { %v1091_v61 = vsub.f32 %v1083_v32, %v1087_v59  ;;  %v2362_v59 = vld [vmem:[#allocation9 + $0x30] sm:$0xff]  }
 0x5a3   : > { %v1093_v62 = vmul.f32 1.442695, %v1091_v61 }
 0x5a4   : > { %v1090_v63 = vpop.xlane.xlu0 %1089 }
 0x5a5   : > { %2412 = vpow2.f32 %v1093_v62  ;;  %v1092_v2 = vsub.f32 %v1084_v37, %v1090_v63 }
 0x5a7   : > { %v1095_v3 = vmul.f32 1.442695, %v1092_v2 }
 0x5a8   : > { %v1210_v5 = vpop.xlane.xlu0 %1209 }
 0x5a9   : > { %2414 = vpow2.f32 %v1095_v3  ;;  %v1214_v6 = vsub.f32 %v1206_v44, %v1210_v5 }
 0x5aa   : > { %v1213_v7 = vpop.xlane.xlu1 %1212 }
 0x5ab   : > { %v1215_v9 = vsub.f32 %v1207_v50, %v1213_v7  ;;  %v1216_v11 = vmul.f32 1.442695, %v1214_v6 }
 0x5ac   : > { %v963_v8 = vpop.xlane.xlu0 %962 }
 0x5ad   : > { %v967_v10 = vsub.f32 %v959_v47, %v963_v8  ;;  %v1218_v17 = vmul.f32 1.442695, %v1215_v9  ;;  %v2363_v8 = vld [vmem:[#allocation9 + $0x38] sm:$0xff]  }
 0x5ae   : > { %v966_v12 = vpop.xlane.xlu1 %965 }
 0x5af   : > { %v2413_v13 = vpop.eup %2412  ;;  %v969_v14 = vmul.f32 1.442695, %v967_v10  ;;  %v968_v15 = vsub.f32 %v960_v55, %v966_v12  ;;  %v2361_v55 = vld [vmem:[#allocation9 + $0x28] sm:$0xff]  }
 0x5b0   : > { %v982_v60 = vpop.permute.xlu0 %981  ;;  %v1097_v16 = vsel %vm838_vm2, %v2413_v13, 0.0 }
 0x5b1   : > { %2416 = vpow2.f32 %v969_v14  ;;  %v971_v18 = vmul.f32 1.442695, %v968_v15  ;;  %1098 = vadd.xlane.f32.xlu0 %v1097_v16  ;;  %2159 = vmatpush3.bf16.msra.mxu1 %v982_v60 }
 0x5b2   : > { %2418 = vpow2.f32 %v1216_v11  ;;  %2170 = vmatprep.subr.bf16.mxu1 %v2681_v4  ;;  %v1105_v31 = vpop.permute.xlu1 %1104 }
 0x5b3   : > { %v2415_v19 = vpop.eup %2414  ;;  %2420 = vpow2.f32 %v971_v18 }
 0x5b4   : > { %v1100_v20 = vsel %vm838_vm2, %v2415_v19, 0.0  ;;  %2422 = vpow2.f32 %v1218_v17  ;;  %v1103_v37 = vpack.c.bf16 %v2415_v19, %v2413_v13 }
 0x5b5   : > { %1101 = vadd.xlane.f32.xlu0 %v1100_v20 }
 0x5b6   : > { %v1228_v39 = vpop.permute.xlu1 %1227 }
 0x5bb   : > { %v2417_v21 = vpop.eup %2416 }
 0x5bc   : > { %v2419_v23 = vpop.eup %2418  ;;  %v973_v25 = vsel %vm838_vm2, %v2417_v21, 0.0 }
 0x5bd   : > { %v2421_v26 = vpop.eup %2420  ;;  %974 = vadd.xlane.f32.xlu1 %v973_v25  ;;  %v1220_v32 = vsel %vm838_vm2, %v2419_v23, 0.0 }
 0x5be   : > { %v976_v27 = vsel %vm838_vm2, %v2421_v26, 0.0  ;;  %v979_v28 = vpack.c.bf16 %v2421_v26, %v2417_v21  ;;  %v2423_v29 = vpop.eup %2422 }
 0x5bf   : > { %977 = vadd.xlane.f32.xlu0 %v976_v27  ;;  %v1223_v34 = vsel %vm838_vm2, %v2423_v29, 0.0  ;;  %v1226_v40 = vpack.c.bf16 %v2423_v29, %v2419_v23 }
 0x5c0   : > { %2161 = vmatmul.mubr.msk.bf16.vlgmr.msra.gmra.mrb[16].mxu1 %vm838_vm2, %v979_v28 }
 0x5c1   : > { %2171 = vmatpush3.bf16.msra.mxu1 %v1105_v31  ;;  %1221 = vadd.xlane.f32.xlu1 %v1220_v32 }
 0x5c2   : > { %2172 = vmatprep.mubr.msk.bf16.mxu1 %vm2683_vm0, %v2681_v4  ;;  %2182 = vmatprep.subr.bf16.mxu1 %v2681_v4 }
 0x5c3   : > { %1224 = vadd.xlane.f32.xlu0 %v1223_v34 }
 0x5c5   : > { %852 = vadd.xlane.f32.xlu1 %v851_v35 }
 0x5c7   : > { %855 = vadd.xlane.f32.xlu0 %v854_v36 }
 0x5c8   : > { %2173 = vmatmul.mubr.msk.bf16.vlgmr.msra.gmra.mrb[20].mxu1 %vm838_vm2, %v1103_v37 }
 0x5c9   : > { %2183 = vmatpush3.bf16.msra.mxu1 %v1228_v39  ;;  %2184 = vmatprep.mubr.msk.bf16.mxu1 %vm2683_vm0, %v2681_v4 }
 0x5d0   : > { %2185 = vmatmul.mubr.msk.bf16.vlgmr.msra.gmra.mrb[24].mxu1 %vm838_vm2, %v1226_v40 }
 0x5d1   : > { %1608 = vmatprep.mubr.bf16.mxu1 %v2682_v30  ;;  %v2360_v30 = vld [vmem:[#allocation9 + $0x20] sm:$0xff]  }
 0x5d2   : > { %2197 = vmatpush3.bf16.msra.mxu0 %v2360_v30 }
 0x5d3   : > { %2198 = vmatprep.subr.bf16.mxu0 %v2681_v4 }
 0x5d6   : > { %2199 = vmatpush3.bf16.msra.mxu0 %v2361_v55 }
 0x5d7   : > { %2200 = vmatprep.subr.bf16.mxu0 %v2681_v4 }
 0x5da   : > { %2201 = vmatpush3.bf16.msra.mxu0 %v2362_v59  ;;  %v2370_v59 = vld [vmem:[#allocation10 + $0x20] ss:$8 sps:$4 sm:$0xff]  }
 0x5db   : > { %2202 = vmatprep.subr.bf16.mxu0 %v2681_v4 }
 0x5de   : > { %2203 = vmatpush3.bf16.msra.mxu0 %v2363_v8  ;;  %v2387_v8 = vld [vmem:[#allocation10 + $0x74] ss:$8 sps:$4 sm:$0xff]  }
 0x63e   : > { %v1099_v42 = vpop.xlane.xlu0 %1098 }
 0x642   : > { %v1102_v43 = vpop.xlane.xlu0 %1101 }
 0x64a   : > { %v975_v44 = vpop.xlane.xlu1 %974 }
 0x64b   : > { %2424 = vrcp.f32 %v975_v44 }
 0x64c   : > { %v978_v45 = vpop.xlane.xlu0 %977 }
 0x64d   : > { %2426 = vrcp.f32 %v978_v45 }
 0x64e   : > { %2428 = vrcp.f32 %v1099_v42  ;;  %v1222_v56 = vpop.xlane.xlu1 %1221 }
 0x64f   : > { %2430 = vrcp.f32 %v1102_v43 }
 0x650   : > { %v1225_v57 = vpop.xlane.xlu0 %1224  ;;  %2432 = vrcp.f32 %v1222_v56 }
 0x651   : > { %2434 = vrcp.f32 %v1225_v57 }
 0x652   : > { %v853_v4 = vpop.xlane.xlu1 %852 }
 0x653   : > { %2436 = vrcp.f32 %v853_v4 }
 0x654   : > { %v856_v18 = vpop.xlane.xlu0 %855 }
 0x655   : > { %v2425_v48 = vpop.eup %2424  ;;  %2438 = vrcp.f32 %v856_v18 }
 0x657   : > { %v2427_v50 = vpop.eup %2426 }
 0x658   : > { %v2429_v62 = vpop.eup %2428 }
 0x659   : > { %v2431_v2 = vpop.eup %2430 }
 0x65a   : > { %v2433_v11 = vpop.eup %2432 }
 0x65b   : > { %v2435_v13 = vpop.eup %2434 }
 0x65d   : > { %v2437_v20 = vpop.eup %2436 }
 0x65e   : > { %v904_v29 = vmul.f32 %v2437_v20, %v3069_v33  ;;  %v2013_v33 = vld [vmem:[%s3203_s5] ss:$0 sm:$0xff] }
 0x65f   : > { %v2439_v23 = vpop.eup %2438  ;;  %v2023_v20 = vld [vmem:[%s3205_s7] ss:$0 sm:$0xff] }
 0x660   : > { %v905_v31 = vmul.f32 %v2439_v23, %v3071_v38 }
 0x693   : > { %v1021_v47 = vpop.f32.mrb[16].mxu1 }
 0x694   : > { %v2162_v49 = vpop.f32.mrb[17].mxu1  ;;  %v1030_v52 = vmul.f32 %v2425_v48, %v1021_v47  ;;  %v2364_v48 = vld [vmem:[#allocation10] ss:$8 sps:$4 sm:$0xff]  }
 0x695   : > { %v1024_v51 = vpop.f32.mrb[18].mxu1  ;;  %v2366_v49 = vld [vmem:[#allocation10 + $0x4] ss:$8 sps:$4 sm:$0xff]  }
 0x696   : > { %v1031_v53 = vmul.f32 %v2427_v50, %v1024_v51  ;;  %v2163_v54 = vpop.f32.mrb[19].mxu1  ;;  %v2369_v50 = vld [vmem:[#allocation10 + $0x14] ss:$8 sps:$4 sm:$0xff]   ;;  %1576 = vmatprep.subr.bf16.mxu1 %v2366_v49  ;;  %v2367_v51 = vld [vmem:[#allocation10 + $0x10] ss:$8 sps:$4 sm:$0xff]  }
 0x697   : > { %1577 = vmatpush1.bf16.msra.mxu1 %v2364_v48 }
 0x698   : > { %v2309_v58 = vpack.i.bf16 %v1031_v53, %v1030_v52  ;;  %1578 = vmatprep.subr.bf16.mxu1 %v2369_v50 }
 0x69a   : > { %2310 = vrot.lane.b32.xlu1 %v2309_v58, %s2686_s20  ;;  %v2372_v58 = vld [vmem:[#allocation10 + $0x24] ss:$8 sps:$4 sm:$0xff]   ;;  %s489_s20 = scalar_lea.vmem [#allocation13], %s1973_s12  ;;  %s1838_s12 = scalar_lea.sflag [#allocation6], %s2969_s15 }
 0x69b   : > { %v1144_v61 = vpop.f32.mrb[20].mxu1  ;;  %1579 = vmatpush1.bf16.msra.mxu1 %v2367_v51  ;;  %s1851_s13 = sshll.u32 %s489_s20, 4  ;;  %s3148_s13 = int_to_ptr.vmem [resolvable:$true] %s1851_s13 }
 0x69c   : > { %v2174_v63 = vpop.f32.mrb[21].mxu1  ;;  %v1153_v5 = vmul.f32 %v2429_v62, %v1144_v61  ;;  %1580 = vmatprep.subr.bf16.mxu1 %v2372_v58  ;;  %v2375_v61 = vld [vmem:[#allocation10 + $0x34] ss:$8 sps:$4 sm:$0xff]   ;;  %v2373_v62 = vld [vmem:[#allocation10 + $0x30] ss:$8 sps:$4 sm:$0xff]   ;;  %s2594_s29 = scalar_lea.vmem %s3148_s13, 256 }
 0x69d   : > { %v1147_v3 = vpop.f32.mrb[22].mxu1  ;;  %v2378_v63 = vld [vmem:[#allocation10 + $0x44] ss:$8 sps:$4 sm:$0xff]   ;;  %p2595_p3 = scmp.ne.s32.totalorder %s3148_s13, %s2594_s29 }
 0x69e   : > { %v1154_v6 = vmul.f32 %v2431_v2, %v1147_v3  ;;  %v2175_v7 = vpop.f32.mrb[23].mxu1  ;;  %v2376_v2 = vld [vmem:[#allocation10 + $0x40] ss:$8 sps:$4 sm:$0xff]   ;;  %v2381_v3 = vld [vmem:[#allocation10 + $0x54] ss:$8 sps:$4 sm:$0xff]  }
 0x69f   : > { %1581 = vmatpush1.bf16.msra.mxu1 %v2370_v59  ;;  %v2382_v7 = vld [vmem:[#allocation10 + $0x60] ss:$8 sps:$4 sm:$0xff]   ;;  %p2596_p5 = pnand %p2595_p3, %p2914_p10 }
 0x6a0   : > { %v2314_v9 = vpack.i.bf16 %v1154_v6, %v1153_v5  ;;  %1582 = vmatprep.subr.bf16.mxu1 %v2375_v61  ;;  %v2379_v5 = vld [vmem:[#allocation10 + $0x50] ss:$8 sps:$4 sm:$0xff]   ;;  %v2384_v6 = vld [vmem:[#allocation10 + $0x64] ss:$8 sps:$4 sm:$0xff]  }
 0x6a1   : > { %p2597_p7 = pneg %p2596_p5 }
 0x6a2   : > { %2315 = vrot.lane.b32.xlu0 %v2314_v9, %s2685_s26  ;;  %v2385_v9 = vld [vmem:[#allocation10 + $0x70] ss:$8 sps:$4 sm:$0xff]   ;;  %s3243_s26 = sld [smem:[#allocation22_spill]] }
 0x6a3   : > { %v1267_v10 = vpop.f32.mrb[24].mxu1  ;;  %1583 = vmatpush1.bf16.msra.mxu1 %v2373_v62 }
 0x6a4   : > { %v2186_v12 = vpop.f32.mrb[25].mxu1  ;;  %v1276_v15 = vmul.f32 %v2433_v11, %v1267_v10  ;;  %1584 = vmatprep.subr.bf16.mxu1 %v2378_v63 }
 0x6a5   : > { %v1270_v14 = vpop.f32.mrb[26].mxu1 }
 0x6a6   : > { %v1277_v60 = vmul.f32 %v2435_v13, %v1270_v14  ;;  %v2187_v16 = vpop.f32.mrb[27].mxu1 }
 0x6a7   : > { %1585 = vmatpush1.bf16.msra.mxu1 %v2376_v2  ;;  %v2022_v16 = vld [vmem:[%s3204_s6] ss:$0 sm:$0xff] }
 0x6a8   : > { %v2319_v17 = vpack.i.bf16 %v1277_v60, %v1276_v15  ;;  %1586 = vmatprep.subr.bf16.mxu1 %v2381_v3 }
 0x6aa   : > { %2320 = vrot.lane.b32.xlu1 %v2319_v17, %s2684_s3 }
 0x6ab   : > { %1587 = vmatpush1.bf16.msra.mxu1 %v2379_v5 }
 0x6ac   : > { %1588 = vmatprep.subr.bf16.mxu1 %v2384_v6 }
 0x6af   : > { %1589 = vmatpush1.bf16.msra.mxu1 %v2382_v7 }
 0x6b0   : > { %1590 = vmatprep.subr.bf16.mxu1 %v2387_v8 }
 0x6b3   : > { %1591 = vmatpush1.bf16.msra.mxu1 %v2385_v9 }
 0x70c   : > { %v2311_v19 = vpop.permute.xlu1 %2310 }
 0x70d   : > { %v2313_v25 = vunpack.i.h.bf16 %v2311_v19  ;;  %v2312_v26 = vunpack.i.l.bf16 %v2311_v19 }
 0x70f   : > { %v1303_v34 = vsel %vm788_vm1, %v905_v31, %v2313_v25  ;;  %v1302_v35 = vsel %vm788_vm1, %v904_v29, %v2312_v26  ;;  %v2390_v29 = vld [vmem:[#allocation12 + $0x48] sm:$0xff]  }
 0x710   : > { %v2391_v31 = vld [vmem:[#allocation12 + $0x8] sm:$0xff]  }
 0x714   : > { %v2316_v21 = vpop.permute.xlu0 %2315 }
 0x715   : > { %v2318_v27 = vunpack.i.h.bf16 %v2316_v21  ;;  %v2317_v28 = vunpack.i.l.bf16 %v2316_v21 }
 0x717   : > { %v1306_v39 = vsel %vm1304_vm3, %v1303_v34, %v2318_v27  ;;  %v1305_v40 = vsel %vm1304_vm3, %v1302_v35, %v2317_v28  ;;  %v2388_v27 = vld [vmem:[#allocation12 + $0x40] sm:$0xff]   ;;  %v2393_v34 = vld [vmem:[#allocation12 + $0x10] sm:$0xff]   ;;  %v2394_v35 = vld [vmem:[#allocation12 + $0x58] sm:$0xff]  }
 0x718   : > { %v2389_v28 = vld [vmem:[#allocation12] sm:$0xff]   ;;  %2098 = vmatprep.subr.bf16.mxu0 %v2388_v27 }
 0x71c   : > { %v2321_v32 = vpop.permute.xlu1 %2320 }
 0x71d   : > { %v2323_v36 = vunpack.i.h.bf16 %v2321_v32  ;;  %v2322_v37 = vunpack.i.l.bf16 %v2321_v32  ;;  %v2392_v32 = vld [vmem:[#allocation12 + $0x50] sm:$0xff]  }
 0x71f   : > { %v1309_v41 = vsel %vm1307_vm4, %v1306_v39, %v2323_v36  ;;  %v1308_v22 = vsel %vm1307_vm4, %v1305_v40, %v2322_v37  ;;  %v2395_v36 = vld [vmem:[#allocation12 + $0x18] sm:$0xff]   ;;  %v2396_v37 = vld [vmem:[#allocation12 + $0x60] sm:$0xff]   ;;  %v2398_v40 = vld [vmem:[#allocation12 + $0x68] sm:$0xff]  }
 0x720   : > { %v1310_v24 = vpack.c.bf16 %v1309_v41, %v1308_v22  ;;  %v2397_v39 = vld [vmem:[#allocation12 + $0x20] sm:$0xff]   ;;  %v2399_v41 = vld [vmem:[#allocation12 + $0x28] sm:$0xff]   ;;  %v2400_v22 = vld [vmem:[#allocation12 + $0x70] sm:$0xff]  }
 0x722   : > { %2205 = vmatmul.mubr.bf16.vlgmr.msra.gmra.mrb[12].mxu0 %v1310_v24  ;;  %v2401_v24 = vld [vmem:[#allocation12 + $0x30] sm:$0xff]  }
 0x723   : > { %2099 = vmatpush3.bf16.msra.mxu0 %v2389_v28 }
 0x724   : > { %2100 = vmatprep.subr.bf16.mxu0 %v2390_v29 }
 0x727   : > { %2101 = vmatpush3.bf16.msra.mxu0 %v2391_v31 }
 0x728   : > { %2102 = vmatprep.subr.bf16.mxu0 %v2392_v32 }
 0x72b   : > { %2103 = vmatpush3.bf16.msra.mxu0 %v2393_v34 }
 0x72c   : > { %2104 = vmatprep.subr.bf16.mxu0 %v2394_v35 }
 0x72f   : > { %2105 = vmatpush3.bf16.msra.mxu0 %v2395_v36 }
 0x730   : > { %2106 = vmatprep.subr.bf16.mxu0 %v2396_v37  ;;  %v2040_v37 = vld [vmem:[%s3243_s26] ss:$0 sm:$0xff] }
 0x733   : > { %2107 = vmatpush3.bf16.msra.mxu0 %v2397_v39 }
 0x734   : > { %2108 = vmatprep.subr.bf16.mxu0 %v2398_v40 }
 0x737   : > { %2109 = vmatpush3.bf16.msra.mxu0 %v2399_v41 }
 0x738   : > { %2110 = vmatprep.subr.bf16.mxu0 %v2400_v22 }
 0x73b   : > { %2111 = vmatpush3.bf16.msra.mxu0 %v2401_v24 }
 0x7f5   : > { %v1418_v38 = vpop.f32.mrb[12].mxu0 }
 0x7f6   : > { %v1419_v42 = vadd.f32 %v2013_v33, %v1418_v38  ;;  %v2206_v43 = vpop.f32.mrb[13].mxu0  ;;  %v2403_v38 = vld [vmem:[#allocation12 + $0x38] sm:$0xff]  }
 0x7f7   : > { %v1421_v44 = vpop.f32.mrb[14].mxu0 }
 0x7f8   : > { %v3123_v45 = vadd.f32 %v1419_v42, %v2987_v0  ;;  %v1422_v46 = vadd.f32 %v2013_v33, %v1421_v44  ;;  %v2207_v30 = vpop.f32.mrb[15].mxu0  ;;  %v2402_v33 = vld [vmem:[#allocation12 + $0x78] sm:$0xff]   ;;  %v1486_v42 = vlaneseq }
 0x7f9   : > { %2112 = vmatprep.subr.bf16.mxu0 %v2402_v33 }
 0x7fa   : > { %v3126_v47 = vadd.f32 %v1422_v46, %v2989_v1  ;;  %1429 = vadd.xlane.f32.xlu1 %v3123_v45  ;;  %2113 = vmatpush3.bf16.msra.mxu0 %v2403_v38  ;;  %v1487_v43 = vshrl.u32 %v1486_v42, 7  ;;  %v1484_v46 = vld [vmem:[%s3242_s17] sm:$0x3]  ;;  %s2598_s17 = sshll.u32 %s2687_s25, 4  ;;  %s2599_s17 = int_to_ptr.vmem [resolvable:$false] %s2598_s17 }
 0x7fb   : > { %s2600_s16 = scalar_lea.vmem %s2599_s17, 512  ;;  %p2601_p12 = scmp.lt.s32.totalorder %s3148_s13, %s2599_s17 }
 0x7fc   : > { %1431 = vadd.xlane.f32.xlu0 %v3126_v47  ;;  %v1488_v44 = vsub.s32 0, %v1487_v43  ;;  %v1492_v30 = vsub.s32 1, %v1487_v43  ;;  %p2602_p2 = scmp.lt.s32.totalorder %s2600_s16, %s2594_s29 }
 0x7fe   : > { %v1489_v48 = vrot.slane %v1484_v46, %v1488_v44  ;;  %v1493_v49 = vrot.slane %v1484_v46, %v1492_v30  ;;  %p2603_p1 = por %p2602_p2, %p2601_p12 }
 0x800   : > { %p2604_p13 = pnand %p2603_p1, %p2597_p7 }
 0x887   : > { %v1430_v52 = vpop.xlane.xlu1 %1429 }
 0x888   : > { %v1433_v0 = vmul.f32 0.0078125, %v1430_v52 }
 0x889   : > { %v1432_v53 = vpop.xlane.xlu0 %1431 }
 0x88a   : > { %v1435_v54 = vsub.f32 %v3123_v45, %v1433_v0  ;;  %v1434_v55 = vmul.f32 0.0078125, %v1432_v53 }
 0x88c   : > { %v1436_v1 = vsub.f32 %v3126_v47, %v1434_v55  ;;  %v1437_v56 = vmul.f32 %v1435_v54, %v1435_v54 }
 0x88e   : > { %1439 = vadd.xlane.f32.xlu0 %v1437_v56  ;;  %v1438_v57 = vmul.f32 %v1436_v1, %v1436_v1 }
 0x890   : > { %1441 = vadd.xlane.f32.xlu1 %v1438_v57 }
 0x91b   : > { %v1440_v10 = vpop.xlane.xlu0 %1439 }
 0x91c   : > { %v1443_v11 = vmul.f32 0.0078125, %v1440_v10 }
 0x91d   : > { %v1442_v12 = vpop.xlane.xlu1 %1441 }
 0x91e   : > { %v1445_v13 = vadd.f32 1e-05, %v1443_v11  ;;  %v1444_v14 = vmul.f32 0.0078125, %v1442_v12 }
 0x920   : > { %2440 = vrsqrt.f32 %v1445_v13  ;;  %v1446_v15 = vadd.f32 1e-05, %v1444_v14 }
 0x922   : > { %2442 = vrsqrt.f32 %v1446_v15 }
 0x92a   : > { %v2441_v60 = vpop.eup %2440 }
 0x92b   : > { %v1449_v17 = vmul.f32 %v2441_v60, %v1435_v54 }
 0x92c   : > { %v2443_v4 = vpop.eup %2442 }
 0x92d   : > { %v1450_v18 = vmul.f32 %v2443_v4, %v1436_v1  ;;  %v1457_v19 = vmul.f32 %v2022_v16, %v1449_v17 }
 0x92f   : > { %v1458_v21 = vmul.f32 %v2022_v16, %v1450_v18  ;;  %v1465_v23 = vadd.f32 %v2023_v20, %v1457_v19 }
 0x931   : > { %v1466_v25 = vadd.f32 %v2023_v20, %v1458_v21 }
 0x933   : > { %v1467_v26 = vpack.c.bf16 %v1466_v25, %v1465_v23 }
 0x935   : > { %1609 = vmatmul.mubr.bf16.vlgmr.msra.gmra.mrb[28].mxu1 %v1467_v26 }
 0xa08   : > { %v1610_v50 = vpop.f32.mrb[28].mxu1 }
 0xa09   : > { %v1611_v51 = vadd.f32 %v1610_v50, %v1489_v48  ;;  %v1612_v52 = vpop.f32.mrb[29].mxu1 }
 0xa0a   : > { %v1613_v0 = vadd.f32 %v1612_v52, %v1493_v49  ;;  %v1614_v53 = vpop.f32.mrb[30].mxu1 }
 0xa0b   : > { %v1623_v54 = vmul.f32 0.044715, %v1611_v51  ;;  %v1615_v55 = vadd.f32 %v1614_v53, %v1489_v48  ;;  %v1616_v1 = vpop.f32.mrb[31].mxu1  ;;  %v1619_v20 = vmul.f32 0.5, %v1611_v51 }
 0xa0c   : > { %v1624_v56 = vmul.f32 0.044715, %v1613_v0  ;;  %v1617_v57 = vadd.f32 %v1616_v1, %v1493_v49  ;;  %v1620_v25 = vmul.f32 0.5, %v1613_v0 }
 0xa0d   : > { %v1627_v58 = vmul.f32 %v1623_v54, %v1611_v51  ;;  %v1625_v59 = vmul.f32 0.044715, %v1615_v55  ;;  %v1621_v21 = vmul.f32 0.5, %v1615_v55 }
 0xa0e   : > { %v1628_v61 = vmul.f32 %v1624_v56, %v1613_v0  ;;  %v1626_v62 = vmul.f32 0.044715, %v1617_v57  ;;  %v1622_v26 = vmul.f32 0.5, %v1617_v57 }
 0xa0f   : > { %v1631_v63 = vmul.f32 %v1627_v58, %v1611_v51  ;;  %v1629_v2 = vmul.f32 %v1625_v59, %v1615_v55 }
 0xa10   : > { %v1632_v3 = vmul.f32 %v1628_v61, %v1613_v0  ;;  %v1630_v5 = vmul.f32 %v1626_v62, %v1617_v57 }
 0xa11   : > { %v1635_v6 = vadd.f32 %v1631_v63, %v1611_v51  ;;  %v1633_v7 = vmul.f32 %v1629_v2, %v1615_v55 }
 0xa12   : > { %v1634_v8 = vmul.f32 %v1630_v5, %v1617_v57  ;;  %v1636_v9 = vadd.f32 %v1632_v3, %v1613_v0 }
 0xa13   : > { %v1639_v10 = vmul.f32 0.7978846, %v1635_v6  ;;  %v1637_v11 = vadd.f32 %v1633_v7, %v1615_v55 }
 0xa14   : > { %v1638_v12 = vadd.f32 %v1634_v8, %v1617_v57  ;;  %v1640_v13 = vmul.f32 0.7978846, %v1636_v9 }
 0xa15   : > { %2444 = vtanh.f32 %v1639_v10  ;;  %v1641_v14 = vmul.f32 0.7978846, %v1637_v11 }
 0xa16   : > { %v1642_v15 = vmul.f32 0.7978846, %v1638_v12  ;;  %2446 = vtanh.f32 %v1640_v13 }
 0xa17   : > { %2448 = vtanh.f32 %v1641_v14 }
 0xa18   : > { %2450 = vtanh.f32 %v1642_v15 }
 0xa1f   : > { %v2445_v60 = vpop.eup %2444 }
 0xa20   : > { %v2447_v16 = vpop.eup %2446  ;;  %v1647_v17 = vadd.f32 1.0, %v2445_v60 }
 0xa21   : > { %v2449_v4 = vpop.eup %2448  ;;  %v1648_v18 = vadd.f32 1.0, %v2447_v16 }
 0xa22   : > { %v2451_v19 = vpop.eup %2450  ;;  %v1649_v23 = vadd.f32 1.0, %v2449_v4  ;;  %v1651_v28 = vmul.f32 %v1647_v17, %v1619_v20 }
 0xa23   : > { %v1650_v27 = vadd.f32 1.0, %v2451_v19  ;;  %v1652_v31 = vmul.f32 %v1648_v18, %v1620_v25 }
 0xa24   : > { %v1653_v29 = vmul.f32 %v1649_v23, %v1621_v21 }
 0xa25   : > { %v1654_v32 = vmul.f32 %v1650_v27, %v1622_v26 }
 0xa26   : > { %v1655_v34 = vpack.c.bf16 %v1653_v29, %v1651_v28 }
 0xa27   : > { %v1656_v35 = vpack.c.bf16 %v1654_v32, %v1652_v31 }
 0xa29   : > { %1824 = vmatprep.mubr.bf16.mxu0 %v1656_v35 }
 0xa2a   : > { %1825 = vmatmul.mubr.bf16.vlgmr.msra.gmra.mrb[16].mxu0 %v1655_v34 }
 0xafd   : > { %v2114_v36 = vpop.f32.mrb[16].mxu0 }
 0xafe   : > { %v2115_v39 = vpop.f32.mrb[17].mxu0 }
 0xaff   : > { %v2116_v40 = vadd.f32 %v2115_v39, %v2114_v36  ;;  %v2117_v41 = vpop.f32.mrb[18].mxu0 }
 0xb00   : > { %v2118_v22 = vpop.f32.mrb[19].mxu0 }
 0xb01   : > { %v1827_v24 = vadd.f32 %v2116_v40, %v2040_v37  ;;  %v2119_v33 = vadd.f32 %v2118_v22, %v2117_v41 }
 0xb03   : > { %v1833_v38 = vadd.f32 %v1827_v24, %v3123_v45  ;;  %v1830_v42 = vadd.f32 %v2119_v33, %v2040_v37 }
 0xb05   : > { %1835 = vst [vmem:[%s489_s20] sm:$0xff] %v1833_v38  ;;  %v1834_v43 = vadd.f32 %v1830_v42, %v3126_v47 }
 0xb07   : > { %1836 = vst [vmem:[%s489_s20 + $0x8] sm:$0xff] %v1834_v43 }
 0xb08   : > { %2607 = shalt.err (!%p2604_p13)
}
 0xb09   : > { %s2608_s3 = scalar_lea.hbm %s3153_s27, 256  ;;  %s2612_s11 = scalar_lea.hbm %s3245_s28, 512 }
 0xb0a   : > { %p2609_p9 = scmp.ne.s32.totalorder %s3153_s27, %s2608_s3  ;;  %p2613_p4 = scmp.lt.u32.totalorder %s3153_s27, %s3245_s28 }
 0xb0b   : > { %p2614_p8 = scmp.lt.u32.totalorder %s2612_s11, %s2608_s3  ;;  %p2616_p3 = scmp.lt.u32.totalorder %s2608_s3, %s3153_s27 }
 0xb0c   : > { %p2610_p0 = pnand %p2609_p9, %p2914_p10 }
 0xb0d   : > { %p2615_p6 = por %p2614_p8, %p2613_p4 }
 0xb0e   : > { %p2611_p11 = pneg %p2610_p0 }
 0xb0f   : > { %p2617_p5 = por %p2616_p3, %p2615_p6 }
 0xb11   : > { %p2618_p7 = pnand %p2617_p5, %p2611_p11 }
 0xb13   : > { %2621 = shalt.err (!%p2618_p7)
}
 0xb14   : > { %s2688_s21 = smov 128   ;;  %s2689_s29 = smov 8  }
 0xb15   : > { %2226 = dma.vmem_to_hbm [thread:$0]  (%p2914_p10), %s3148_s13, 256, %s3153_s27, %s1838_s12, %s2688_s21, %s2688_s21, %s2689_s29  }
 0xb16 PF: > { %s3246_s25 = sld [smem:[#allocation18_spill]]  ;;  %s3247_s17 = sld [smem:[#allocation19_spill]] }
 0xb17   : > { %p3249_p2 = scmp.ge.s32.totalorder %s2668_s24, 2 }
 0xb1c   : > { %s1866_s16 = sand.u32 1, %s3246_s25   ;;  %p3248_p12 = scmp.ne.s32.totalorder %s3247_s17, 0 }
 0xb1d   : > { %s1867_s3 = scalar_lea.sflag [#allocation6], %s1866_s16 }
 0xb1e   : > { %p2246_p1 = pnand %p3249_p2, %p3248_p12 }
 0xb20   : > { %2651 = dma.done.wait (!%p2246_p1), %s1867_s3, 256  }
 0xb21   : > { %2653 = vsyncadd (!%p2246_p1), %s1867_s3, 4294967040  ;;  %p27_p13 = scmp.ge.s32.totalorder %s2904_s30, 4   ;;  %s3250_s21 = smov %s2660_s22 }
 0xb22   : > { %s3251_s22 = smov %s2664_s23  ;;  %s3252_s23 = smov %s2920_s19 }
 0xb23   : > { %s3253_s24 = smov %s2904_s30  ;;  %29 = sbr.rel (!%p27_p13) target bundleno = 12 (0xc), region = 129 }
 0xb2a   :  { %1872 = vsyncpa [#allocation5], 1 }
 0xb2b   :  { %1874 = vsyncpa [#allocation5 + $0x1], 1 }
 0xb2c   :  { %1875 = vsyncpa [#allocation8], 1 }
 0xb2d   :  { %1876 = vsyncpa [#allocation11], 1 }
 0xb2e   :  { %1877 = vsyncpa [#allocation6], 1 }
 0xb2f   :  { %1879 = vsyncpa [#allocation6 + $0x1], 1 }

</bundles_post_ra>
